<compile_context>
chip_gen: v7x
topology: tpu7x:2x2x1
jax: 0.10.0
libtpu: 0.0.40
codegen_flags: <defaults>
</compile_context>

<pallas_src>
import functools

import jax
import jax.numpy as jnp
import numpy as np
from jax.experimental import pallas as pl
from jax.experimental.pallas import tpu as pltpu

COMPUTE_DTYPE = jnp.bfloat16   # matmul operand dtype; accumulation is always f32
LANE = 128


def _round_up(x, m):
    return (x + m - 1) // m * m


def _nbytes(a):
    return int(a.size) * int(jnp.dtype(a.dtype).itemsize)


# ---------------------------------------------------------------------------
# Kernel bodies
# ---------------------------------------------------------------------------
def _conv_taps_kernel(x_ref, w_ref, b_ref, o_ref, *, wp, act):
    """Fused 3x3 conv (stride 1 on the padded, flattened spatial grid).

    x_ref: (1, Cin, Lin)   flattened padded input row for one sample
    w_ref: (9, Cout, Cin)  per-tap channel-mixing matrices
    b_ref: (Cout, 1)       f32 bias column (broadcast over lanes)
    o_ref: (1, Cout, Lout) lane-dense output
    """
    cout = o_ref.shape[1]
    lout = o_ref.shape[2]
    xv = x_ref[0]                                   # (Cin, Lin) loaded once into VMEM/vregs
    acc = jnp.zeros((cout, lout), jnp.float32)
    for dh in range(3):                             # 9 taps, unrolled
        for dw in range(3):
            off = dh * wp + dw                      # constant lane shift per tap
            acc += jnp.dot(w_ref[dh * 3 + dw], xv[:, off:off + lout],
                           preferred_element_type=jnp.float32)
    acc = acc + b_ref[...]                          # (Cout, 1) column broadcast
    if act == "relu":
        acc = jnp.maximum(acc, 0.0)
    elif act == "tanh":
        acc = jnp.tanh(acc)
    o_ref[0] = acc.astype(o_ref.dtype)


def _fc_linear_kernel(x_ref, wf_ref, bf_ref, wl_ref, bl_ref, o_ref):
    """rev = relu(x @ Wfc^T + bfc) @ Wlin^T + blin, fused (hidden stays in VMEM)."""
    h = jnp.dot(x_ref[...], wf_ref[...], preferred_element_type=jnp.float32)
    h = jnp.maximum(h + bf_ref[...], 0.0)           # ReLU in f32
    r = jnp.dot(h.astype(wl_ref.dtype), wl_ref[...],
                preferred_element_type=jnp.float32)
    o_ref[...] = (r + bl_ref[...]).astype(o_ref.dtype)


def _upsample_kernel(x_ref, u_ref, o_ref):
    """2D bilinear 2x upsample of one sample as a single matmul with kron(Ah, Aw)^T."""
    o_ref[0] = jnp.dot(x_ref[0], u_ref[...],
                       preferred_element_type=jnp.float32).astype(o_ref.dtype)


# ---------------------------------------------------------------------------
# Layer wrappers (plain-JAX glue is only pad / reshape / strided slice)
# ---------------------------------------------------------------------------
def _conv3x3(x_nchw, w, b, *, stride, act, out_dtype=None):
    """3x3 conv, padding=1 (PyTorch cross-correlation). x: (N,C,H,W), w: (Cout,Cin,3,3)."""
    N, Cin, H, W = x_nchw.shape
    Cout = int(w.shape[0])
    Hp, Wp = H + 2, W + 2
    lout = _round_up(H * Wp, LANE)                  # lane-dense, multiple of 128
    lin = lout + 2 * Wp + 2                         # room for the largest tap shift
    out_dtype = COMPUTE_DTYPE if out_dtype is None else out_dtype

    # (N, Cin, Lin): spatial zero-pad, flatten (H, W) -> lanes, zero tail.
    xp = jnp.pad(x_nchw.astype(COMPUTE_DTYPE), ((0, 0), (0, 0), (1, 1), (1, 1)))
    xf = jnp.pad(xp.reshape(N, Cin, Hp * Wp),
                 ((0, 0), (0, 0), (0, lin - Hp * Wp)))

    # (9, Cout, Cin) with tap index t = dh*3 + dw.
    w_taps = w.transpose(2, 3, 0, 1).reshape(9, Cout, Cin).astype(COMPUTE_DTYPE)
    b_col = b.reshape(Cout, 1).astype(jnp.float32)

    cost = pl.CostEstimate(
        flops=2 * N * 9 * Cout * Cin * lout,
        transcendentals=N * Cout * lout if act == "tanh" else 0,
        bytes_accessed=_nbytes(xf) + _nbytes(w_taps) + _nbytes(b_col)
        + N * Cout * lout * int(jnp.dtype(out_dtype).itemsize),
    )

    y = pl.pallas_call(
        functools.partial(_conv_taps_kernel, wp=Wp, act=act),
        out_shape=jax.ShapeDtypeStruct((N, Cout, lout), out_dtype),
        grid=(N,),
        in_specs=[
            pl.BlockSpec((1, Cin, lin), lambda n: (n, 0, 0)),
            pl.BlockSpec((9, Cout, Cin), lambda n: (0, 0, 0)),   # weights stay resident
            pl.BlockSpec((Cout, 1), lambda n: (0, 0)),
        ],
        out_specs=pl.BlockSpec((1, Cout, lout), lambda n: (n, 0, 0)),
        compiler_params=pltpu.CompilerParams(dimension_semantics=("parallel",)),
        cost_estimate=cost,
    )(xf, w_taps, b_col)

    # Un-flatten the padded stride-1 grid, then take the strided valid positions.
    y = y[:, :, :H * Wp].reshape(N, Cout, H, Wp)
    return y[:, :, ::stride, 0:W:stride]            # (N, Cout, Ho, Wo), NCHW


def _conv_transpose3x3(x_nchw, w_t, b, *, act, out_dtype=None):
    """ConvTranspose2d(k=3, stride=1, padding=1): conv with flipped kernel, pad 1.
    w_t: (Cin, Cout, 3, 3) PyTorch ConvTranspose layout."""
    w_eq = jnp.flip(w_t, axis=(2, 3)).transpose(1, 0, 2, 3)     # (Cout, Cin, 3, 3)
    return _conv3x3(x_nchw, w_eq, b, stride=1, act=act, out_dtype=out_dtype)


def _bilinear_matrix(in_size, scale=2):
    """Row-interpolation matrix of nn.Upsample(scale_factor=2, mode='bilinear',
    align_corners=False), including the edge clamp."""
    out_size = in_size * scale
    A = np.zeros((out_size, in_size), dtype=np.float32)
    for i in range(out_size):
        src = max((i + 0.5) / scale - 0.5, 0.0)
        i0 = min(int(np.floor(src)), in_size - 1)
        i1 = min(i0 + 1, in_size - 1)
        f = src - i0
        A[i, i0] += 1.0 - f
        A[i, i1] += f
    return A


def _upsample_bilinear_2x(x_nchw):
    """(N, C, H, W) -> (N, C, 2H, 2W) via one kron(Ah, Aw) matmul per sample."""
    N, C, H, W = x_nchw.shape
    ukron_t = jnp.asarray(
        np.kron(_bilinear_matrix(H), _bilinear_matrix(W)).T, COMPUTE_DTYPE)  # (H*W, 4*H*W)
    xf = x_nchw.reshape(N, C, H * W).astype(COMPUTE_DTYPE)

    cost = pl.CostEstimate(
        flops=2 * N * C * (H * W) * (4 * H * W),
        transcendentals=0,
        bytes_accessed=_nbytes(xf) + _nbytes(ukron_t)
        + N * C * 4 * H * W * int(jnp.dtype(COMPUTE_DTYPE).itemsize),
    )

    y = pl.pallas_call(
        _upsample_kernel,
        out_shape=jax.ShapeDtypeStruct((N, C, 4 * H * W), COMPUTE_DTYPE),
        grid=(N,),
        in_specs=[
            pl.BlockSpec((1, C, H * W), lambda n: (n, 0, 0)),
            pl.BlockSpec((H * W, 4 * H * W), lambda n: (0, 0)),  # resident weights
        ],
        out_specs=pl.BlockSpec((1, C, 4 * H * W), lambda n: (n, 0, 0)),
        compiler_params=pltpu.CompilerParams(dimension_semantics=("parallel",)),
        cost_estimate=cost,
    )(xf, ukron_t)
    return y.reshape(N, C, 2 * H, 2 * W)


def _fc_linear(flat, fc_w, fc_b, lin_w, lin_b):
    """Fused: rev = relu(flat @ fc_w.T + fc_b) @ lin_w.T + lin_b."""
    N, K = flat.shape
    Hd = int(fc_w.shape[0])
    M2 = int(lin_w.shape[0])
    x = flat.astype(COMPUTE_DTYPE)
    wf = fc_w.T.astype(COMPUTE_DTYPE)               # (K, Hd)
    wl = lin_w.T.astype(COMPUTE_DTYPE)              # (Hd, M2)
    bf = fc_b.reshape(1, Hd).astype(jnp.float32)
    bl = lin_b.reshape(1, M2).astype(jnp.float32)

    cost = pl.CostEstimate(
        flops=2 * N * K * Hd + 2 * N * Hd * M2,
        transcendentals=0,
        bytes_accessed=_nbytes(x) + _nbytes(wf) + _nbytes(wl) + _nbytes(bf)
        + _nbytes(bl) + N * M2 * int(jnp.dtype(COMPUTE_DTYPE).itemsize),
    )

    return pl.pallas_call(
        _fc_linear_kernel,
        out_shape=jax.ShapeDtypeStruct((N, M2), COMPUTE_DTYPE),
        grid=(1,),
        in_specs=[
            pl.BlockSpec((N, K), lambda i: (0, 0)),
            pl.BlockSpec((K, Hd), lambda i: (0, 0)),
            pl.BlockSpec((1, Hd), lambda i: (0, 0)),
            pl.BlockSpec((Hd, M2), lambda i: (0, 0)),
            pl.BlockSpec((1, M2), lambda i: (0, 0)),
        ],
        out_specs=pl.BlockSpec((N, M2), lambda i: (0, 0)),
        cost_estimate=cost,
    )(x, wf, bf, wl, bl)


# ---------------------------------------------------------------------------
# Conv_Autoencoder forward
# ---------------------------------------------------------------------------
def conv_autoencoder_forward(x, params, channel_2):
    N = x.shape[0]
    # --- encoder ---
    h = _conv3x3(x, params["enc_w1"], params["enc_b1"], stride=2, act="relu")
    h = _conv3x3(h, params["enc_w2"], params["enc_b2"], stride=2, act="relu")
    flat = h.reshape(N, -1)                         # Flatten (NCHW order, like x.view(N,-1))
    # --- fc (encoder tail) + self.linear, fused ---
    rev = _fc_linear(flat, params["fc_w"], params["fc_b"],
                     params["lin_w"], params["lin_b"])
    d = rev.reshape(N, channel_2, 8, 8)
    # --- decoder ---
    d = _upsample_bilinear_2x(d)
    d = _conv_transpose3x3(d, params["dec_w1"], params["dec_b1"], act="relu")
    d = _upsample_bilinear_2x(d)
    d = _conv_transpose3x3(d, params["dec_w2"], params["dec_b2"], act="tanh",
                           out_dtype=jnp.float32)
    return d


def init_params(key, input_c, channel_1, channel_2, hidden_dim):
    """Deterministic PyTorch-style uniform(-1/sqrt(fan_in), 1/sqrt(fan_in)) init."""
    def uinit(k, shape, fan_in):
        bound = 1.0 / np.sqrt(fan_in)
        return jax.random.uniform(k, shape, jnp.float32, -bound, bound)

    ks = jax.random.split(key, 12)
    p = {}
    p["enc_w1"] = uinit(ks[0], (channel_1, 3, 3, 3), 3 * 9)
    p["enc_b1"] = uinit(ks[1], (channel_1,), 3 * 9)
    p["enc_w2"] = uinit(ks[2], (channel_2, channel_1, 3, 3), channel_1 * 9)
    p["enc_b2"] = uinit(ks[3], (channel_2,), channel_1 * 9)
    p["fc_w"] = uinit(ks[4], (hidden_dim, channel_2 * 64), channel_2 * 64)
    p["fc_b"] = uinit(ks[5], (hidden_dim,), channel_2 * 64)
    p["lin_w"] = uinit(ks[6], (channel_2 * 64, hidden_dim), hidden_dim)
    p["lin_b"] = uinit(ks[7], (channel_2 * 64,), hidden_dim)
    # ConvTranspose2d weights use the (in_channels, out_channels, k, k) layout
    p["dec_w1"] = uinit(ks[8], (channel_2, channel_1, 3, 3), channel_2 * 9)
    p["dec_b1"] = uinit(ks[9], (channel_1,), channel_2 * 9)
    p["dec_w2"] = uinit(ks[10], (channel_1, input_c, 3, 3), channel_1 * 9)
    p["dec_b2"] = uinit(ks[11], (input_c,), channel_1 * 9)
    return p


if __name__ == "__main__":
    input_c, channel_1, channel_2, hidden_dim = 3, 4, 8, 32
    key = jax.random.PRNGKey(0)
    kx, kp = jax.random.split(key)
    # Spatial size 32 is implied by Linear(channel_2 * 8 * 8) after two stride-2 convs.
    x = jax.random.normal(kx, (2, 3, 32, 32), jnp.float32)
    params = init_params(kp, input_c, channel_1, channel_2, hidden_dim)

    fwd = jax.jit(conv_autoencoder_forward, static_argnames=("channel_2",))
    out = jax.block_until_ready(fwd(x, params, channel_2=channel_2))
    assert out.shape == (2, input_c, 32, 32), out.shape
    assert bool(jnp.all(jnp.isfinite(out)))
    print("KERNEL_OK")
</pallas_src>

<mosaic_0001>
module attributes {stable_mosaic.version = 11 : i64} {
  func.func @_conv_taps_kernel(%arg0: i32, %arg1: memref<1x3x1222xbf16, #tpu.memory_space<vmem>>, %arg2: memref<9x4x3xbf16, #tpu.memory_space<vmem>>, %arg3: memref<4x1xf32, #tpu.memory_space<vmem>>, %arg4: memref<1x4x1152xbf16, #tpu.memory_space<vmem>>) attributes {dimension_semantics = [#tpu.dimension_semantics<parallel>], iteration_bounds = array<i64: 2>, scalar_prefetch = 0 : i64, scratch_operands = 0 : i64, tpu.core_type = #tpu.core_type<tc>, window_params = [{transform_indices = @transform_0, window_bounds = array<i64: 1, 3, 1222>}, {pipeline_mode = #tpu.pipeline_mode<synchronous>, transform_indices = @transform_1, window_bounds = array<i64: 9, 4, 3>}, {pipeline_mode = #tpu.pipeline_mode<synchronous>, transform_indices = @transform_2, window_bounds = array<i64: 4, 1>}, {transform_indices = @transform_3, window_bounds = array<i64: 1, 4, 1152>}]} {
    %c0 = arith.constant 0 : index
    %c0_0 = arith.constant 0 : index
    %c0_1 = arith.constant 0 : index
    %0 = vector.load %arg1[%c0, %c0_0, %c0_1] : memref<1x3x1222xbf16, #tpu.memory_space<vmem>>, vector<1x3x1222xbf16>
    %1 = vector.shape_cast %0 : vector<1x3x1222xbf16> to vector<3x1222xbf16>
    %cst = arith.constant 0.000000e+00 : f32
    %2 = vector.broadcast %cst : f32 to vector<4x1152xf32>
    %c0_2 = arith.constant 0 : index
    %c0_3 = arith.constant 0 : index
    %c0_4 = arith.constant 0 : index
    %3 = vector.load %arg2[%c0_2, %c0_3, %c0_4] : memref<9x4x3xbf16, #tpu.memory_space<vmem>>, vector<1x4x3xbf16>
    %4 = vector.shape_cast %3 : vector<1x4x3xbf16> to vector<4x3xbf16>
    %5 = vector.extract_strided_slice %1 {offsets = [0, 0], sizes = [3, 1152], strides = [1, 1]} : vector<3x1222xbf16> to vector<3x1152xbf16>
    %cst_5 = arith.constant dense<0.000000e+00> : vector<4x1152xf32>
    %6 = tpu.matmul %4, %5, %cst_5 {dimension_numbers = #tpu.dot_dimension_numbers<[1], [0], [0], [1], [0, 0, 1, 1], [], []>} : vector<4x3xbf16>, vector<3x1152xbf16>, vector<4x1152xf32> -> vector<4x1152xf32>
    %7 = arith.addf %2, %6 : vector<4x1152xf32>
    %c1 = arith.constant 1 : index
    %c0_6 = arith.constant 0 : index
    %c0_7 = arith.constant 0 : index
    %8 = vector.load %arg2[%c1, %c0_6, %c0_7] : memref<9x4x3xbf16, #tpu.memory_space<vmem>>, vector<1x4x3xbf16>
    %9 = vector.shape_cast %8 : vector<1x4x3xbf16> to vector<4x3xbf16>
    %10 = vector.extract_strided_slice %1 {offsets = [0, 1], sizes = [3, 1152], strides = [1, 1]} : vector<3x1222xbf16> to vector<3x1152xbf16>
    %cst_8 = arith.constant dense<0.000000e+00> : vector<4x1152xf32>
    %11 = tpu.matmul %9, %10, %cst_8 {dimension_numbers = #tpu.dot_dimension_numbers<[1], [0], [0], [1], [0, 0, 1, 1], [], []>} : vector<4x3xbf16>, vector<3x1152xbf16>, vector<4x1152xf32> -> vector<4x1152xf32>
    %12 = arith.addf %7, %11 : vector<4x1152xf32>
    %c2 = arith.constant 2 : index
    %c0_9 = arith.constant 0 : index
    %c0_10 = arith.constant 0 : index
    %13 = vector.load %arg2[%c2, %c0_9, %c0_10] : memref<9x4x3xbf16, #tpu.memory_space<vmem>>, vector<1x4x3xbf16>
    %14 = vector.shape_cast %13 : vector<1x4x3xbf16> to vector<4x3xbf16>
    %15 = vector.extract_strided_slice %1 {offsets = [0, 2], sizes = [3, 1152], strides = [1, 1]} : vector<3x1222xbf16> to vector<3x1152xbf16>
    %cst_11 = arith.constant dense<0.000000e+00> : vector<4x1152xf32>
    %16 = tpu.matmul %14, %15, %cst_11 {dimension_numbers = #tpu.dot_dimension_numbers<[1], [0], [0], [1], [0, 0, 1, 1], [], []>} : vector<4x3xbf16>, vector<3x1152xbf16>, vector<4x1152xf32> -> vector<4x1152xf32>
    %17 = arith.addf %12, %16 : vector<4x1152xf32>
    %c3 = arith.constant 3 : index
    %c0_12 = arith.constant 0 : index
    %c0_13 = arith.constant 0 : index
    %18 = vector.load %arg2[%c3, %c0_12, %c0_13] : memref<9x4x3xbf16, #tpu.memory_space<vmem>>, vector<1x4x3xbf16>
    %19 = vector.shape_cast %18 : vector<1x4x3xbf16> to vector<4x3xbf16>
    %20 = vector.extract_strided_slice %1 {offsets = [0, 34], sizes = [3, 1152], strides = [1, 1]} : vector<3x1222xbf16> to vector<3x1152xbf16>
    %cst_14 = arith.constant dense<0.000000e+00> : vector<4x1152xf32>
    %21 = tpu.matmul %19, %20, %cst_14 {dimension_numbers = #tpu.dot_dimension_numbers<[1], [0], [0], [1], [0, 0, 1, 1], [], []>} : vector<4x3xbf16>, vector<3x1152xbf16>, vector<4x1152xf32> -> vector<4x1152xf32>
    %22 = arith.addf %17, %21 : vector<4x1152xf32>
    %c4 = arith.constant 4 : index
    %c0_15 = arith.constant 0 : index
    %c0_16 = arith.constant 0 : index
    %23 = vector.load %arg2[%c4, %c0_15, %c0_16] : memref<9x4x3xbf16, #tpu.memory_space<vmem>>, vector<1x4x3xbf16>
    %24 = vector.shape_cast %23 : vector<1x4x3xbf16> to vector<4x3xbf16>
    %25 = vector.extract_strided_slice %1 {offsets = [0, 35], sizes = [3, 1152], strides = [1, 1]} : vector<3x1222xbf16> to vector<3x1152xbf16>
    %cst_17 = arith.constant dense<0.000000e+00> : vector<4x1152xf32>
    %26 = tpu.matmul %24, %25, %cst_17 {dimension_numbers = #tpu.dot_dimension_numbers<[1], [0], [0], [1], [0, 0, 1, 1], [], []>} : vector<4x3xbf16>, vector<3x1152xbf16>, vector<4x1152xf32> -> vector<4x1152xf32>
    %27 = arith.addf %22, %26 : vector<4x1152xf32>
    %c5 = arith.constant 5 : index
    %c0_18 = arith.constant 0 : index
    %c0_19 = arith.constant 0 : index
    %28 = vector.load %arg2[%c5, %c0_18, %c0_19] : memref<9x4x3xbf16, #tpu.memory_space<vmem>>, vector<1x4x3xbf16>
    %29 = vector.shape_cast %28 : vector<1x4x3xbf16> to vector<4x3xbf16>
    %30 = vector.extract_strided_slice %1 {offsets = [0, 36], sizes = [3, 1152], strides = [1, 1]} : vector<3x1222xbf16> to vector<3x1152xbf16>
    %cst_20 = arith.constant dense<0.000000e+00> : vector<4x1152xf32>
    %31 = tpu.matmul %29, %30, %cst_20 {dimension_numbers = #tpu.dot_dimension_numbers<[1], [0], [0], [1], [0, 0, 1, 1], [], []>} : vector<4x3xbf16>, vector<3x1152xbf16>, vector<4x1152xf32> -> vector<4x1152xf32>
    %32 = arith.addf %27, %31 : vector<4x1152xf32>
    %c6 = arith.constant 6 : index
    %c0_21 = arith.constant 0 : index
    %c0_22 = arith.constant 0 : index
    %33 = vector.load %arg2[%c6, %c0_21, %c0_22] : memref<9x4x3xbf16, #tpu.memory_space<vmem>>, vector<1x4x3xbf16>
    %34 = vector.shape_cast %33 : vector<1x4x3xbf16> to vector<4x3xbf16>
    %35 = vector.extract_strided_slice %1 {offsets = [0, 68], sizes = [3, 1152], strides = [1, 1]} : vector<3x1222xbf16> to vector<3x1152xbf16>
    %cst_23 = arith.constant dense<0.000000e+00> : vector<4x1152xf32>
    %36 = tpu.matmul %34, %35, %cst_23 {dimension_numbers = #tpu.dot_dimension_numbers<[1], [0], [0], [1], [0, 0, 1, 1], [], []>} : vector<4x3xbf16>, vector<3x1152xbf16>, vector<4x1152xf32> -> vector<4x1152xf32>
    %37 = arith.addf %32, %36 : vector<4x1152xf32>
    %c7 = arith.constant 7 : index
    %c0_24 = arith.constant 0 : index
    %c0_25 = arith.constant 0 : index
    %38 = vector.load %arg2[%c7, %c0_24, %c0_25] : memref<9x4x3xbf16, #tpu.memory_space<vmem>>, vector<1x4x3xbf16>
    %39 = vector.shape_cast %38 : vector<1x4x3xbf16> to vector<4x3xbf16>
    %40 = vector.extract_strided_slice %1 {offsets = [0, 69], sizes = [3, 1152], strides = [1, 1]} : vector<3x1222xbf16> to vector<3x1152xbf16>
    %cst_26 = arith.constant dense<0.000000e+00> : vector<4x1152xf32>
    %41 = tpu.matmul %39, %40, %cst_26 {dimension_numbers = #tpu.dot_dimension_numbers<[1], [0], [0], [1], [0, 0, 1, 1], [], []>} : vector<4x3xbf16>, vector<3x1152xbf16>, vector<4x1152xf32> -> vector<4x1152xf32>
    %42 = arith.addf %37, %41 : vector<4x1152xf32>
    %c8 = arith.constant 8 : index
    %c0_27 = arith.constant 0 : index
    %c0_28 = arith.constant 0 : index
    %43 = vector.load %arg2[%c8, %c0_27, %c0_28] : memref<9x4x3xbf16, #tpu.memory_space<vmem>>, vector<1x4x3xbf16>
    %44 = vector.shape_cast %43 : vector<1x4x3xbf16> to vector<4x3xbf16>
    %45 = vector.extract_strided_slice %1 {offsets = [0, 70], sizes = [3, 1152], strides = [1, 1]} : vector<3x1222xbf16> to vector<3x1152xbf16>
    %cst_29 = arith.constant dense<0.000000e+00> : vector<4x1152xf32>
    %46 = tpu.matmul %44, %45, %cst_29 {dimension_numbers = #tpu.dot_dimension_numbers<[1], [0], [0], [1], [0, 0, 1, 1], [], []>} : vector<4x3xbf16>, vector<3x1152xbf16>, vector<4x1152xf32> -> vector<4x1152xf32>
    %47 = arith.addf %42, %46 : vector<4x1152xf32>
    %c0_30 = arith.constant 0 : index
    %c0_31 = arith.constant 0 : index
    %48 = vector.load %arg3[%c0_30, %c0_31] : memref<4x1xf32, #tpu.memory_space<vmem>>, vector<4x1xf32>
    %49 = vector.broadcast %48 : vector<4x1xf32> to vector<4x1152xf32>
    %50 = arith.addf %47, %49 : vector<4x1152xf32>
    %cst_32 = arith.constant 0.000000e+00 : f32
    %51 = vector.broadcast %cst_32 : f32 to vector<4x1152xf32>
    %52 = arith.maximumf %50, %51 : vector<4x1152xf32>
    %53 = arith.truncf %52 : vector<4x1152xf32> to vector<4x1152xbf16>
    %c0_33 = arith.constant 0 : index
    %c0_34 = arith.constant 0 : index
    %c0_35 = arith.constant 0 : index
    %54 = vector.load %arg4[%c0_33, %c0_34, %c0_35] : memref<1x4x1152xbf16, #tpu.memory_space<vmem>>, vector<1x4x1152xbf16>
    %55 = vector.shape_cast %54 : vector<1x4x1152xbf16> to vector<4x1152xbf16>
    %56 = vector.shape_cast %53 : vector<4x1152xbf16> to vector<1x4x1152xbf16>
    tpu.vector_store %arg4[%c0_33, %c0_34, %c0_35], %56 {strides = array<i32>} : memref<1x4x1152xbf16, #tpu.memory_space<vmem>>, vector<1x4x1152xbf16>,
    return
  }
  func.func @transform_0(%arg0: i32) -> (i32, i32, i32) {
    %c0_i32 = arith.constant 0 : i32
    %c0_i32_0 = arith.constant 0 : i32
    %c0_i32_1 = arith.constant 0 : i32
    return %arg0, %c0_i32, %c0_i32_0 : i32, i32, i32
  }
  func.func @transform_1(%arg0: i32) -> (i32, i32, i32) {
    %c0_i32 = arith.constant 0 : i32
    %c0_i32_0 = arith.constant 0 : i32
    %c0_i32_1 = arith.constant 0 : i32
    %c0_i32_2 = arith.constant 0 : i32
    return %c0_i32, %c0_i32_0, %c0_i32_1 : i32, i32, i32
  }
  func.func @transform_2(%arg0: i32) -> (i32, i32) {
    %c0_i32 = arith.constant 0 : i32
    %c0_i32_0 = arith.constant 0 : i32
    %c0_i32_1 = arith.constant 0 : i32
    return %c0_i32, %c0_i32_0 : i32, i32
  }
  func.func @transform_3(%arg0: i32) -> (i32, i32, i32) {
    %c0_i32 = arith.constant 0 : i32
    %c0_i32_0 = arith.constant 0 : i32
    %c0_i32_1 = arith.constant 0 : i32
    return %arg0, %c0_i32, %c0_i32_0 : i32, i32, i32
  }
}

module attributes {stable_mosaic.version = 11 : i64} {
  func.func @_conv_taps_kernel(%arg0: i32, %arg1: memref<1x4x422xbf16, #tpu.memory_space<vmem>>, %arg2: memref<9x8x4xbf16, #tpu.memory_space<vmem>>, %arg3: memref<8x1xf32, #tpu.memory_space<vmem>>, %arg4: memref<1x8x384xbf16, #tpu.memory_space<vmem>>) attributes {dimension_semantics = [#tpu.dimension_semantics<parallel>], iteration_bounds = array<i64: 2>, scalar_prefetch = 0 : i64, scratch_operands = 0 : i64, tpu.core_type = #tpu.core_type<tc>, window_params = [{transform_indices = @transform_0, window_bounds = array<i64: 1, 4, 422>}, {pipeline_mode = #tpu.pipeline_mode<synchronous>, transform_indices = @transform_1, window_bounds = array<i64: 9, 8, 4>}, {pipeline_mode = #tpu.pipeline_mode<synchronous>, transform_indices = @transform_2, window_bounds = array<i64: 8, 1>}, {transform_indices = @transform_3, window_bounds = array<i64: 1, 8, 384>}]} {
    %c0 = arith.constant 0 : index
    %c0_0 = arith.constant 0 : index
    %c0_1 = arith.constant 0 : index
    %0 = vector.load %arg1[%c0, %c0_0, %c0_1] : memref<1x4x422xbf16, #tpu.memory_space<vmem>>, vector<1x4x422xbf16>
    %1 = vector.shape_cast %0 : vector<1x4x422xbf16> to vector<4x422xbf16>
    %cst = arith.constant 0.000000e+00 : f32
    %2 = vector.broadcast %cst : f32 to vector<8x384xf32>
    %c0_2 = arith.constant 0 : index
    %c0_3 = arith.constant 0 : index
    %c0_4 = arith.constant 0 : index
    %3 = vector.load %arg2[%c0_2, %c0_3, %c0_4] : memref<9x8x4xbf16, #tpu.memory_space<vmem>>, vector<1x8x4xbf16>
    %4 = vector.shape_cast %3 : vector<1x8x4xbf16> to vector<8x4xbf16>
    %5 = vector.extract_strided_slice %1 {offsets = [0, 0], sizes = [4, 384], strides = [1, 1]} : vector<4x422xbf16> to vector<4x384xbf16>
    %cst_5 = arith.constant dense<0.000000e+00> : vector<8x384xf32>
    %6 = tpu.matmul %4, %5, %cst_5 {dimension_numbers = #tpu.dot_dimension_numbers<[1], [0], [0], [1], [0, 0, 1, 1], [], []>} : vector<8x4xbf16>, vector<4x384xbf16>, vector<8x384xf32> -> vector<8x384xf32>
    %7 = arith.addf %2, %6 : vector<8x384xf32>
    %c1 = arith.constant 1 : index
    %c0_6 = arith.constant 0 : index
    %c0_7 = arith.constant 0 : index
    %8 = vector.load %arg2[%c1, %c0_6, %c0_7] : memref<9x8x4xbf16, #tpu.memory_space<vmem>>, vector<1x8x4xbf16>
    %9 = vector.shape_cast %8 : vector<1x8x4xbf16> to vector<8x4xbf16>
    %10 = vector.extract_strided_slice %1 {offsets = [0, 1], sizes = [4, 384], strides = [1, 1]} : vector<4x422xbf16> to vector<4x384xbf16>
    %cst_8 = arith.constant dense<0.000000e+00> : vector<8x384xf32>
    %11 = tpu.matmul %9, %10, %cst_8 {dimension_numbers = #tpu.dot_dimension_numbers<[1], [0], [0], [1], [0, 0, 1, 1], [], []>} : vector<8x4xbf16>, vector<4x384xbf16>, vector<8x384xf32> -> vector<8x384xf32>
    %12 = arith.addf %7, %11 : vector<8x384xf32>
    %c2 = arith.constant 2 : index
    %c0_9 = arith.constant 0 : index
    %c0_10 = arith.constant 0 : index
    %13 = vector.load %arg2[%c2, %c0_9, %c0_10] : memref<9x8x4xbf16, #tpu.memory_space<vmem>>, vector<1x8x4xbf16>
    %14 = vector.shape_cast %13 : vector<1x8x4xbf16> to vector<8x4xbf16>
    %15 = vector.extract_strided_slice %1 {offsets = [0, 2], sizes = [4, 384], strides = [1, 1]} : vector<4x422xbf16> to vector<4x384xbf16>
    %cst_11 = arith.constant dense<0.000000e+00> : vector<8x384xf32>
    %16 = tpu.matmul %14, %15, %cst_11 {dimension_numbers = #tpu.dot_dimension_numbers<[1], [0], [0], [1], [0, 0, 1, 1], [], []>} : vector<8x4xbf16>, vector<4x384xbf16>, vector<8x384xf32> -> vector<8x384xf32>
    %17 = arith.addf %12, %16 : vector<8x384xf32>
    %c3 = arith.constant 3 : index
    %c0_12 = arith.constant 0 : index
    %c0_13 = arith.constant 0 : index
    %18 = vector.load %arg2[%c3, %c0_12, %c0_13] : memref<9x8x4xbf16, #tpu.memory_space<vmem>>, vector<1x8x4xbf16>
    %19 = vector.shape_cast %18 : vector<1x8x4xbf16> to vector<8x4xbf16>
    %20 = vector.extract_strided_slice %1 {offsets = [0, 18], sizes = [4, 384], strides = [1, 1]} : vector<4x422xbf16> to vector<4x384xbf16>
    %cst_14 = arith.constant dense<0.000000e+00> : vector<8x384xf32>
    %21 = tpu.matmul %19, %20, %cst_14 {dimension_numbers = #tpu.dot_dimension_numbers<[1], [0], [0], [1], [0, 0, 1, 1], [], []>} : vector<8x4xbf16>, vector<4x384xbf16>, vector<8x384xf32> -> vector<8x384xf32>
    %22 = arith.addf %17, %21 : vector<8x384xf32>
    %c4 = arith.constant 4 : index
    %c0_15 = arith.constant 0 : index
    %c0_16 = arith.constant 0 : index
    %23 = vector.load %arg2[%c4, %c0_15, %c0_16] : memref<9x8x4xbf16, #tpu.memory_space<vmem>>, vector<1x8x4xbf16>
    %24 = vector.shape_cast %23 : vector<1x8x4xbf16> to vector<8x4xbf16>
    %25 = vector.extract_strided_slice %1 {offsets = [0, 19], sizes = [4, 384], strides = [1, 1]} : vector<4x422xbf16> to vector<4x384xbf16>
    %cst_17 = arith.constant dense<0.000000e+00> : vector<8x384xf32>
    %26 = tpu.matmul %24, %25, %cst_17 {dimension_numbers = #tpu.dot_dimension_numbers<[1], [0], [0], [1], [0, 0, 1, 1], [], []>} : vector<8x4xbf16>, vector<4x384xbf16>, vector<8x384xf32> -> vector<8x384xf32>
    %27 = arith.addf %22, %26 : vector<8x384xf32>
    %c5 = arith.constant 5 : index
    %c0_18 = arith.constant 0 : index
    %c0_19 = arith.constant 0 : index
    %28 = vector.load %arg2[%c5, %c0_18, %c0_19] : memref<9x8x4xbf16, #tpu.memory_space<vmem>>, vector<1x8x4xbf16>
    %29 = vector.shape_cast %28 : vector<1x8x4xbf16> to vector<8x4xbf16>
    %30 = vector.extract_strided_slice %1 {offsets = [0, 20], sizes = [4, 384], strides = [1, 1]} : vector<4x422xbf16> to vector<4x384xbf16>
    %cst_20 = arith.constant dense<0.000000e+00> : vector<8x384xf32>
    %31 = tpu.matmul %29, %30, %cst_20 {dimension_numbers = #tpu.dot_dimension_numbers<[1], [0], [0], [1], [0, 0, 1, 1], [], []>} : vector<8x4xbf16>, vector<4x384xbf16>, vector<8x384xf32> -> vector<8x384xf32>
    %32 = arith.addf %27, %31 : vector<8x384xf32>
    %c6 = arith.constant 6 : index
    %c0_21 = arith.constant 0 : index
    %c0_22 = arith.constant 0 : index
    %33 = vector.load %arg2[%c6, %c0_21, %c0_22] : memref<9x8x4xbf16, #tpu.memory_space<vmem>>, vector<1x8x4xbf16>
    %34 = vector.shape_cast %33 : vector<1x8x4xbf16> to vector<8x4xbf16>
    %35 = vector.extract_strided_slice %1 {offsets = [0, 36], sizes = [4, 384], strides = [1, 1]} : vector<4x422xbf16> to vector<4x384xbf16>
    %cst_23 = arith.constant dense<0.000000e+00> : vector<8x384xf32>
    %36 = tpu.matmul %34, %35, %cst_23 {dimension_numbers = #tpu.dot_dimension_numbers<[1], [0], [0], [1], [0, 0, 1, 1], [], []>} : vector<8x4xbf16>, vector<4x384xbf16>, vector<8x384xf32> -> vector<8x384xf32>
    %37 = arith.addf %32, %36 : vector<8x384xf32>
    %c7 = arith.constant 7 : index
    %c0_24 = arith.constant 0 : index
    %c0_25 = arith.constant 0 : index
    %38 = vector.load %arg2[%c7, %c0_24, %c0_25] : memref<9x8x4xbf16, #tpu.memory_space<vmem>>, vector<1x8x4xbf16>
    %39 = vector.shape_cast %38 : vector<1x8x4xbf16> to vector<8x4xbf16>
    %40 = vector.extract_strided_slice %1 {offsets = [0, 37], sizes = [4, 384], strides = [1, 1]} : vector<4x422xbf16> to vector<4x384xbf16>
    %cst_26 = arith.constant dense<0.000000e+00> : vector<8x384xf32>
    %41 = tpu.matmul %39, %40, %cst_26 {dimension_numbers = #tpu.dot_dimension_numbers<[1], [0], [0], [1], [0, 0, 1, 1], [], []>} : vector<8x4xbf16>, vector<4x384xbf16>, vector<8x384xf32> -> vector<8x384xf32>
    %42 = arith.addf %37, %41 : vector<8x384xf32>
    %c8 = arith.constant 8 : index
    %c0_27 = arith.constant 0 : index
    %c0_28 = arith.constant 0 : index
    %43 = vector.load %arg2[%c8, %c0_27, %c0_28] : memref<9x8x4xbf16, #tpu.memory_space<vmem>>, vector<1x8x4xbf16>
    %44 = vector.shape_cast %43 : vector<1x8x4xbf16> to vector<8x4xbf16>
    %45 = vector.extract_strided_slice %1 {offsets = [0, 38], sizes = [4, 384], strides = [1, 1]} : vector<4x422xbf16> to vector<4x384xbf16>
    %cst_29 = arith.constant dense<0.000000e+00> : vector<8x384xf32>
    %46 = tpu.matmul %44, %45, %cst_29 {dimension_numbers = #tpu.dot_dimension_numbers<[1], [0], [0], [1], [0, 0, 1, 1], [], []>} : vector<8x4xbf16>, vector<4x384xbf16>, vector<8x384xf32> -> vector<8x384xf32>
    %47 = arith.addf %42, %46 : vector<8x384xf32>
    %c0_30 = arith.constant 0 : index
    %c0_31 = arith.constant 0 : index
    %48 = vector.load %arg3[%c0_30, %c0_31] : memref<8x1xf32, #tpu.memory_space<vmem>>, vector<8x1xf32>
    %49 = vector.broadcast %48 : vector<8x1xf32> to vector<8x384xf32>
    %50 = arith.addf %47, %49 : vector<8x384xf32>
    %cst_32 = arith.constant 0.000000e+00 : f32
    %51 = vector.broadcast %cst_32 : f32 to vector<8x384xf32>
    %52 = arith.maximumf %50, %51 : vector<8x384xf32>
    %53 = arith.truncf %52 : vector<8x384xf32> to vector<8x384xbf16>
    %c0_33 = arith.constant 0 : index
    %c0_34 = arith.constant 0 : index
    %c0_35 = arith.constant 0 : index
    %54 = vector.load %arg4[%c0_33, %c0_34, %c0_35] : memref<1x8x384xbf16, #tpu.memory_space<vmem>>, vector<1x8x384xbf16>
    %55 = vector.shape_cast %54 : vector<1x8x384xbf16> to vector<8x384xbf16>
    %56 = vector.shape_cast %53 : vector<8x384xbf16> to vector<1x8x384xbf16>
    tpu.vector_store %arg4[%c0_33, %c0_34, %c0_35], %56 {strides = array<i32>} : memref<1x8x384xbf16, #tpu.memory_space<vmem>>, vector<1x8x384xbf16>,
    return
  }
  func.func @transform_0(%arg0: i32) -> (i32, i32, i32) {
    %c0_i32 = arith.constant 0 : i32
    %c0_i32_0 = arith.constant 0 : i32
    %c0_i32_1 = arith.constant 0 : i32
    return %arg0, %c0_i32, %c0_i32_0 : i32, i32, i32
  }
  func.func @transform_1(%arg0: i32) -> (i32, i32, i32) {
    %c0_i32 = arith.constant 0 : i32
    %c0_i32_0 = arith.constant 0 : i32
    %c0_i32_1 = arith.constant 0 : i32
    %c0_i32_2 = arith.constant 0 : i32
    return %c0_i32, %c0_i32_0, %c0_i32_1 : i32, i32, i32
  }
  func.func @transform_2(%arg0: i32) -> (i32, i32) {
    %c0_i32 = arith.constant 0 : i32
    %c0_i32_0 = arith.constant 0 : i32
    %c0_i32_1 = arith.constant 0 : i32
    return %c0_i32, %c0_i32_0 : i32, i32
  }
  func.func @transform_3(%arg0: i32) -> (i32, i32, i32) {
    %c0_i32 = arith.constant 0 : i32
    %c0_i32_0 = arith.constant 0 : i32
    %c0_i32_1 = arith.constant 0 : i32
    return %arg0, %c0_i32, %c0_i32_0 : i32, i32, i32
  }
}

module attributes {stable_mosaic.version = 11 : i64} {
  func.func @_fc_linear_kernel(%arg0: i32, %arg1: memref<2x512xbf16, #tpu.memory_space<vmem>>, %arg2: memref<512x32xbf16, #tpu.memory_space<vmem>>, %arg3: memref<1x32xf32, #tpu.memory_space<vmem>>, %arg4: memref<32x512xbf16, #tpu.memory_space<vmem>>, %arg5: memref<1x512xf32, #tpu.memory_space<vmem>>, %arg6: memref<2x512xbf16, #tpu.memory_space<vmem>>) attributes {dimension_semantics = [#tpu.dimension_semantics<arbitrary>], iteration_bounds = array<i64: 1>, scalar_prefetch = 0 : i64, scratch_operands = 0 : i64, tpu.core_type = #tpu.core_type<tc>, window_params = [{pipeline_mode = #tpu.pipeline_mode<synchronous>, transform_indices = @transform_0, window_bounds = array<i64: 2, 512>}, {pipeline_mode = #tpu.pipeline_mode<synchronous>, transform_indices = @transform_1, window_bounds = array<i64: 512, 32>}, {pipeline_mode = #tpu.pipeline_mode<synchronous>, transform_indices = @transform_2, window_bounds = array<i64: 1, 32>}, {pipeline_mode = #tpu.pipeline_mode<synchronous>, transform_indices = @transform_3, window_bounds = array<i64: 32, 512>}, {pipeline_mode = #tpu.pipeline_mode<synchronous>, transform_indices = @transform_4, window_bounds = array<i64: 1, 512>}, {pipeline_mode = #tpu.pipeline_mode<synchronous>, transform_indices = @transform_5, window_bounds = array<i64: 2, 512>}]} {
    %c0 = arith.constant 0 : index
    %c0_0 = arith.constant 0 : index
    %0 = vector.load %arg1[%c0, %c0_0] : memref<2x512xbf16, #tpu.memory_space<vmem>>, vector<2x512xbf16>
    %c0_1 = arith.constant 0 : index
    %c0_2 = arith.constant 0 : index
    %1 = vector.load %arg2[%c0_1, %c0_2] : memref<512x32xbf16, #tpu.memory_space<vmem>>, vector<512x32xbf16>
    %cst = arith.constant dense<0.000000e+00> : vector<2x32xf32>
    %2 = tpu.matmul %0, %1, %cst {dimension_numbers = #tpu.dot_dimension_numbers<[1], [0], [0], [1], [0, 0, 1, 1], [], []>} : vector<2x512xbf16>, vector<512x32xbf16>, vector<2x32xf32> -> vector<2x32xf32>
    %c0_3 = arith.constant 0 : index
    %c0_4 = arith.constant 0 : index
    %3 = vector.load %arg3[%c0_3, %c0_4] : memref<1x32xf32, #tpu.memory_space<vmem>>, vector<1x32xf32>
    %4 = vector.broadcast %3 : vector<1x32xf32> to vector<2x32xf32>
    %5 = arith.addf %2, %4 : vector<2x32xf32>
    %cst_5 = arith.constant 0.000000e+00 : f32
    %6 = vector.broadcast %cst_5 : f32 to vector<2x32xf32>
    %7 = arith.maximumf %5, %6 : vector<2x32xf32>
    %8 = arith.truncf %7 : vector<2x32xf32> to vector<2x32xbf16>
    %c0_6 = arith.constant 0 : index
    %c0_7 = arith.constant 0 : index
    %9 = vector.load %arg4[%c0_6, %c0_7] : memref<32x512xbf16, #tpu.memory_space<vmem>>, vector<32x512xbf16>
    %cst_8 = arith.constant dense<0.000000e+00> : vector<2x512xf32>
    %10 = tpu.matmul %8, %9, %cst_8 {dimension_numbers = #tpu.dot_dimension_numbers<[1], [0], [0], [1], [0, 0, 1, 1], [], []>} : vector<2x32xbf16>, vector<32x512xbf16>, vector<2x512xf32> -> vector<2x512xf32>
    %c0_9 = arith.constant 0 : index
    %c0_10 = arith.constant 0 : index
    %11 = vector.load %arg5[%c0_9, %c0_10] : memref<1x512xf32, #tpu.memory_space<vmem>>, vector<1x512xf32>
    %12 = vector.broadcast %11 : vector<1x512xf32> to vector<2x512xf32>
    %13 = arith.addf %10, %12 : vector<2x512xf32>
    %14 = arith.truncf %13 : vector<2x512xf32> to vector<2x512xbf16>
    %c0_11 = arith.constant 0 : index
    %c0_12 = arith.constant 0 : index
    %15 = vector.load %arg6[%c0_11, %c0_12] : memref<2x512xbf16, #tpu.memory_space<vmem>>, vector<2x512xbf16>
    tpu.vector_store %arg6[%c0_11, %c0_12], %14 {strides = array<i32>} : memref<2x512xbf16, #tpu.memory_space<vmem>>, vector<2x512xbf16>,
    return
  }
  func.func @transform_0(%arg0: i32) -> (i32, i32) {
    %c0_i32 = arith.constant 0 : i32
    %c0_i32_0 = arith.constant 0 : i32
    %c0_i32_1 = arith.constant 0 : i32
    return %c0_i32, %c0_i32_0 : i32, i32
  }
  func.func @transform_1(%arg0: i32) -> (i32, i32) {
    %c0_i32 = arith.constant 0 : i32
    %c0_i32_0 = arith.constant 0 : i32
    %c0_i32_1 = arith.constant 0 : i32
    return %c0_i32, %c0_i32_0 : i32, i32
  }
  func.func @transform_2(%arg0: i32) -> (i32, i32) {
    %c0_i32 = arith.constant 0 : i32
    %c0_i32_0 = arith.constant 0 : i32
    %c0_i32_1 = arith.constant 0 : i32
    return %c0_i32, %c0_i32_0 : i32, i32
  }
  func.func @transform_3(%arg0: i32) -> (i32, i32) {
    %c0_i32 = arith.constant 0 : i32
    %c0_i32_0 = arith.constant 0 : i32
    %c0_i32_1 = arith.constant 0 : i32
    return %c0_i32, %c0_i32_0 : i32, i32
  }
  func.func @transform_4(%arg0: i32) -> (i32, i32) {
    %c0_i32 = arith.constant 0 : i32
    %c0_i32_0 = arith.constant 0 : i32
    %c0_i32_1 = arith.constant 0 : i32
    return %c0_i32, %c0_i32_0 : i32, i32
  }
  func.func @transform_5(%arg0: i32) -> (i32, i32) {
    %c0_i32 = arith.constant 0 : i32
    %c0_i32_0 = arith.constant 0 : i32
    %c0_i32_1 = arith.constant 0 : i32
    return %c0_i32, %c0_i32_0 : i32, i32
  }
}

module attributes {stable_mosaic.version = 11 : i64} {
  func.func @_upsample_kernel(%arg0: i32, %arg1: memref<1x8x64xbf16, #tpu.memory_space<vmem>>, %arg2: memref<64x256xbf16, #tpu.memory_space<vmem>>, %arg3: memref<1x8x256xbf16, #tpu.memory_space<vmem>>) attributes {dimension_semantics = [#tpu.dimension_semantics<parallel>], iteration_bounds = array<i64: 2>, scalar_prefetch = 0 : i64, scratch_operands = 0 : i64, tpu.core_type = #tpu.core_type<tc>, window_params = [{transform_indices = @transform_0, window_bounds = array<i64: 1, 8, 64>}, {pipeline_mode = #tpu.pipeline_mode<synchronous>, transform_indices = @transform_1, window_bounds = array<i64: 64, 256>}, {transform_indices = @transform_2, window_bounds = array<i64: 1, 8, 256>}]} {
    %c0 = arith.constant 0 : index
    %c0_0 = arith.constant 0 : index
    %c0_1 = arith.constant 0 : index
    %0 = vector.load %arg1[%c0, %c0_0, %c0_1] : memref<1x8x64xbf16, #tpu.memory_space<vmem>>, vector<1x8x64xbf16>
    %1 = vector.shape_cast %0 : vector<1x8x64xbf16> to vector<8x64xbf16>
    %c0_2 = arith.constant 0 : index
    %c0_3 = arith.constant 0 : index
    %2 = vector.load %arg2[%c0_2, %c0_3] : memref<64x256xbf16, #tpu.memory_space<vmem>>, vector<64x256xbf16>
    %cst = arith.constant dense<0.000000e+00> : vector<8x256xf32>
    %3 = tpu.matmul %1, %2, %cst {dimension_numbers = #tpu.dot_dimension_numbers<[1], [0], [0], [1], [0, 0, 1, 1], [], []>} : vector<8x64xbf16>, vector<64x256xbf16>, vector<8x256xf32> -> vector<8x256xf32>
    %4 = arith.truncf %3 : vector<8x256xf32> to vector<8x256xbf16>
    %c0_4 = arith.constant 0 : index
    %c0_5 = arith.constant 0 : index
    %c0_6 = arith.constant 0 : index
    %5 = vector.load %arg3[%c0_4, %c0_5, %c0_6] : memref<1x8x256xbf16, #tpu.memory_space<vmem>>, vector<1x8x256xbf16>
    %6 = vector.shape_cast %5 : vector<1x8x256xbf16> to vector<8x256xbf16>
    %7 = vector.shape_cast %4 : vector<8x256xbf16> to vector<1x8x256xbf16>
    tpu.vector_store %arg3[%c0_4, %c0_5, %c0_6], %7 {strides = array<i32>} : memref<1x8x256xbf16, #tpu.memory_space<vmem>>, vector<1x8x256xbf16>,
    return
  }
  func.func @transform_0(%arg0: i32) -> (i32, i32, i32) {
    %c0_i32 = arith.constant 0 : i32
    %c0_i32_0 = arith.constant 0 : i32
    %c0_i32_1 = arith.constant 0 : i32
    return %arg0, %c0_i32, %c0_i32_0 : i32, i32, i32
  }
  func.func @transform_1(%arg0: i32) -> (i32, i32) {
    %c0_i32 = arith.constant 0 : i32
    %c0_i32_0 = arith.constant 0 : i32
    %c0_i32_1 = arith.constant 0 : i32
    return %c0_i32, %c0_i32_0 : i32, i32
  }
  func.func @transform_2(%arg0: i32) -> (i32, i32, i32) {
    %c0_i32 = arith.constant 0 : i32
    %c0_i32_0 = arith.constant 0 : i32
    %c0_i32_1 = arith.constant 0 : i32
    return %arg0, %c0_i32, %c0_i32_0 : i32, i32, i32
  }
}

module attributes {stable_mosaic.version = 11 : i64} {
  func.func @_conv_taps_kernel(%arg0: i32, %arg1: memref<1x8x422xbf16, #tpu.memory_space<vmem>>, %arg2: memref<9x4x8xbf16, #tpu.memory_space<vmem>>, %arg3: memref<4x1xf32, #tpu.memory_space<vmem>>, %arg4: memref<1x4x384xbf16, #tpu.memory_space<vmem>>) attributes {dimension_semantics = [#tpu.dimension_semantics<parallel>], iteration_bounds = array<i64: 2>, scalar_prefetch = 0 : i64, scratch_operands = 0 : i64, tpu.core_type = #tpu.core_type<tc>, window_params = [{transform_indices = @transform_0, window_bounds = array<i64: 1, 8, 422>}, {pipeline_mode = #tpu.pipeline_mode<synchronous>, transform_indices = @transform_1, window_bounds = array<i64: 9, 4, 8>}, {pipeline_mode = #tpu.pipeline_mode<synchronous>, transform_indices = @transform_2, window_bounds = array<i64: 4, 1>}, {transform_indices = @transform_3, window_bounds = array<i64: 1, 4, 384>}]} {
    %c0 = arith.constant 0 : index
    %c0_0 = arith.constant 0 : index
    %c0_1 = arith.constant 0 : index
    %0 = vector.load %arg1[%c0, %c0_0, %c0_1] : memref<1x8x422xbf16, #tpu.memory_space<vmem>>, vector<1x8x422xbf16>
    %1 = vector.shape_cast %0 : vector<1x8x422xbf16> to vector<8x422xbf16>
    %cst = arith.constant 0.000000e+00 : f32
    %2 = vector.broadcast %cst : f32 to vector<4x384xf32>
    %c0_2 = arith.constant 0 : index
    %c0_3 = arith.constant 0 : index
    %c0_4 = arith.constant 0 : index
    %3 = vector.load %arg2[%c0_2, %c0_3, %c0_4] : memref<9x4x8xbf16, #tpu.memory_space<vmem>>, vector<1x4x8xbf16>
    %4 = vector.shape_cast %3 : vector<1x4x8xbf16> to vector<4x8xbf16>
    %5 = vector.extract_strided_slice %1 {offsets = [0, 0], sizes = [8, 384], strides = [1, 1]} : vector<8x422xbf16> to vector<8x384xbf16>
    %cst_5 = arith.constant dense<0.000000e+00> : vector<4x384xf32>
    %6 = tpu.matmul %4, %5, %cst_5 {dimension_numbers = #tpu.dot_dimension_numbers<[1], [0], [0], [1], [0, 0, 1, 1], [], []>} : vector<4x8xbf16>, vector<8x384xbf16>, vector<4x384xf32> -> vector<4x384xf32>
    %7 = arith.addf %2, %6 : vector<4x384xf32>
    %c1 = arith.constant 1 : index
    %c0_6 = arith.constant 0 : index
    %c0_7 = arith.constant 0 : index
    %8 = vector.load %arg2[%c1, %c0_6, %c0_7] : memref<9x4x8xbf16, #tpu.memory_space<vmem>>, vector<1x4x8xbf16>
    %9 = vector.shape_cast %8 : vector<1x4x8xbf16> to vector<4x8xbf16>
    %10 = vector.extract_strided_slice %1 {offsets = [0, 1], sizes = [8, 384], strides = [1, 1]} : vector<8x422xbf16> to vector<8x384xbf16>
    %cst_8 = arith.constant dense<0.000000e+00> : vector<4x384xf32>
    %11 = tpu.matmul %9, %10, %cst_8 {dimension_numbers = #tpu.dot_dimension_numbers<[1], [0], [0], [1], [0, 0, 1, 1], [], []>} : vector<4x8xbf16>, vector<8x384xbf16>, vector<4x384xf32> -> vector<4x384xf32>
    %12 = arith.addf %7, %11 : vector<4x384xf32>
    %c2 = arith.constant 2 : index
    %c0_9 = arith.constant 0 : index
    %c0_10 = arith.constant 0 : index
    %13 = vector.load %arg2[%c2, %c0_9, %c0_10] : memref<9x4x8xbf16, #tpu.memory_space<vmem>>, vector<1x4x8xbf16>
    %14 = vector.shape_cast %13 : vector<1x4x8xbf16> to vector<4x8xbf16>
    %15 = vector.extract_strided_slice %1 {offsets = [0, 2], sizes = [8, 384], strides = [1, 1]} : vector<8x422xbf16> to vector<8x384xbf16>
    %cst_11 = arith.constant dense<0.000000e+00> : vector<4x384xf32>
    %16 = tpu.matmul %14, %15, %cst_11 {dimension_numbers = #tpu.dot_dimension_numbers<[1], [0], [0], [1], [0, 0, 1, 1], [], []>} : vector<4x8xbf16>, vector<8x384xbf16>, vector<4x384xf32> -> vector<4x384xf32>
    %17 = arith.addf %12, %16 : vector<4x384xf32>
    %c3 = arith.constant 3 : index
    %c0_12 = arith.constant 0 : index
    %c0_13 = arith.constant 0 : index
    %18 = vector.load %arg2[%c3, %c0_12, %c0_13] : memref<9x4x8xbf16, #tpu.memory_space<vmem>>, vector<1x4x8xbf16>
    %19 = vector.shape_cast %18 : vector<1x4x8xbf16> to vector<4x8xbf16>
    %20 = vector.extract_strided_slice %1 {offsets = [0, 18], sizes = [8, 384], strides = [1, 1]} : vector<8x422xbf16> to vector<8x384xbf16>
    %cst_14 = arith.constant dense<0.000000e+00> : vector<4x384xf32>
    %21 = tpu.matmul %19, %20, %cst_14 {dimension_numbers = #tpu.dot_dimension_numbers<[1], [0], [0], [1], [0, 0, 1, 1], [], []>} : vector<4x8xbf16>, vector<8x384xbf16>, vector<4x384xf32> -> vector<4x384xf32>
    %22 = arith.addf %17, %21 : vector<4x384xf32>
    %c4 = arith.constant 4 : index
    %c0_15 = arith.constant 0 : index
    %c0_16 = arith.constant 0 : index
    %23 = vector.load %arg2[%c4, %c0_15, %c0_16] : memref<9x4x8xbf16, #tpu.memory_space<vmem>>, vector<1x4x8xbf16>
    %24 = vector.shape_cast %23 : vector<1x4x8xbf16> to vector<4x8xbf16>
    %25 = vector.extract_strided_slice %1 {offsets = [0, 19], sizes = [8, 384], strides = [1, 1]} : vector<8x422xbf16> to vector<8x384xbf16>
    %cst_17 = arith.constant dense<0.000000e+00> : vector<4x384xf32>
    %26 = tpu.matmul %24, %25, %cst_17 {dimension_numbers = #tpu.dot_dimension_numbers<[1], [0], [0], [1], [0, 0, 1, 1], [], []>} : vector<4x8xbf16>, vector<8x384xbf16>, vector<4x384xf32> -> vector<4x384xf32>
    %27 = arith.addf %22, %26 : vector<4x384xf32>
    %c5 = arith.constant 5 : index
    %c0_18 = arith.constant 0 : index
    %c0_19 = arith.constant 0 : index
    %28 = vector.load %arg2[%c5, %c0_18, %c0_19] : memref<9x4x8xbf16, #tpu.memory_space<vmem>>, vector<1x4x8xbf16>
    %29 = vector.shape_cast %28 : vector<1x4x8xbf16> to vector<4x8xbf16>
    %30 = vector.extract_strided_slice %1 {offsets = [0, 20], sizes = [8, 384], strides = [1, 1]} : vector<8x422xbf16> to vector<8x384xbf16>
    %cst_20 = arith.constant dense<0.000000e+00> : vector<4x384xf32>
    %31 = tpu.matmul %29, %30, %cst_20 {dimension_numbers = #tpu.dot_dimension_numbers<[1], [0], [0], [1], [0, 0, 1, 1], [], []>} : vector<4x8xbf16>, vector<8x384xbf16>, vector<4x384xf32> -> vector<4x384xf32>
    %32 = arith.addf %27, %31 : vector<4x384xf32>
    %c6 = arith.constant 6 : index
    %c0_21 = arith.constant 0 : index
    %c0_22 = arith.constant 0 : index
    %33 = vector.load %arg2[%c6, %c0_21, %c0_22] : memref<9x4x8xbf16, #tpu.memory_space<vmem>>, vector<1x4x8xbf16>
    %34 = vector.shape_cast %33 : vector<1x4x8xbf16> to vector<4x8xbf16>
    %35 = vector.extract_strided_slice %1 {offsets = [0, 36], sizes = [8, 384], strides = [1, 1]} : vector<8x422xbf16> to vector<8x384xbf16>
    %cst_23 = arith.constant dense<0.000000e+00> : vector<4x384xf32>
    %36 = tpu.matmul %34, %35, %cst_23 {dimension_numbers = #tpu.dot_dimension_numbers<[1], [0], [0], [1], [0, 0, 1, 1], [], []>} : vector<4x8xbf16>, vector<8x384xbf16>, vector<4x384xf32> -> vector<4x384xf32>
    %37 = arith.addf %32, %36 : vector<4x384xf32>
    %c7 = arith.constant 7 : index
    %c0_24 = arith.constant 0 : index
    %c0_25 = arith.constant 0 : index
    %38 = vector.load %arg2[%c7, %c0_24, %c0_25] : memref<9x4x8xbf16, #tpu.memory_space<vmem>>, vector<1x4x8xbf16>
    %39 = vector.shape_cast %38 : vector<1x4x8xbf16> to vector<4x8xbf16>
    %40 = vector.extract_strided_slice %1 {offsets = [0, 37], sizes = [8, 384], strides = [1, 1]} : vector<8x422xbf16> to vector<8x384xbf16>
    %cst_26 = arith.constant dense<0.000000e+00> : vector<4x384xf32>
    %41 = tpu.matmul %39, %40, %cst_26 {dimension_numbers = #tpu.dot_dimension_numbers<[1], [0], [0], [1], [0, 0, 1, 1], [], []>} : vector<4x8xbf16>, vector<8x384xbf16>, vector<4x384xf32> -> vector<4x384xf32>
    %42 = arith.addf %37, %41 : vector<4x384xf32>
    %c8 = arith.constant 8 : index
    %c0_27 = arith.constant 0 : index
    %c0_28 = arith.constant 0 : index
    %43 = vector.load %arg2[%c8, %c0_27, %c0_28] : memref<9x4x8xbf16, #tpu.memory_space<vmem>>, vector<1x4x8xbf16>
    %44 = vector.shape_cast %43 : vector<1x4x8xbf16> to vector<4x8xbf16>
    %45 = vector.extract_strided_slice %1 {offsets = [0, 38], sizes = [8, 384], strides = [1, 1]} : vector<8x422xbf16> to vector<8x384xbf16>
    %cst_29 = arith.constant dense<0.000000e+00> : vector<4x384xf32>
    %46 = tpu.matmul %44, %45, %cst_29 {dimension_numbers = #tpu.dot_dimension_numbers<[1], [0], [0], [1], [0, 0, 1, 1], [], []>} : vector<4x8xbf16>, vector<8x384xbf16>, vector<4x384xf32> -> vector<4x384xf32>
    %47 = arith.addf %42, %46 : vector<4x384xf32>
    %c0_30 = arith.constant 0 : index
    %c0_31 = arith.constant 0 : index
    %48 = vector.load %arg3[%c0_30, %c0_31] : memref<4x1xf32, #tpu.memory_space<vmem>>, vector<4x1xf32>
    %49 = vector.broadcast %48 : vector<4x1xf32> to vector<4x384xf32>
    %50 = arith.addf %47, %49 : vector<4x384xf32>
    %cst_32 = arith.constant 0.000000e+00 : f32
    %51 = vector.broadcast %cst_32 : f32 to vector<4x384xf32>
    %52 = arith.maximumf %50, %51 : vector<4x384xf32>
    %53 = arith.truncf %52 : vector<4x384xf32> to vector<4x384xbf16>
    %c0_33 = arith.constant 0 : index
    %c0_34 = arith.constant 0 : index
    %c0_35 = arith.constant 0 : index
    %54 = vector.load %arg4[%c0_33, %c0_34, %c0_35] : memref<1x4x384xbf16, #tpu.memory_space<vmem>>, vector<1x4x384xbf16>
    %55 = vector.shape_cast %54 : vector<1x4x384xbf16> to vector<4x384xbf16>
    %56 = vector.shape_cast %53 : vector<4x384xbf16> to vector<1x4x384xbf16>
    tpu.vector_store %arg4[%c0_33, %c0_34, %c0_35], %56 {strides = array<i32>} : memref<1x4x384xbf16, #tpu.memory_space<vmem>>, vector<1x4x384xbf16>,
    return
  }
  func.func @transform_0(%arg0: i32) -> (i32, i32, i32) {
    %c0_i32 = arith.constant 0 : i32
    %c0_i32_0 = arith.constant 0 : i32
    %c0_i32_1 = arith.constant 0 : i32
    return %arg0, %c0_i32, %c0_i32_0 : i32, i32, i32
  }
  func.func @transform_1(%arg0: i32) -> (i32, i32, i32) {
    %c0_i32 = arith.constant 0 : i32
    %c0_i32_0 = arith.constant 0 : i32
    %c0_i32_1 = arith.constant 0 : i32
    %c0_i32_2 = arith.constant 0 : i32
    return %c0_i32, %c0_i32_0, %c0_i32_1 : i32, i32, i32
  }
  func.func @transform_2(%arg0: i32) -> (i32, i32) {
    %c0_i32 = arith.constant 0 : i32
    %c0_i32_0 = arith.constant 0 : i32
    %c0_i32_1 = arith.constant 0 : i32
    return %c0_i32, %c0_i32_0 : i32, i32
  }
  func.func @transform_3(%arg0: i32) -> (i32, i32, i32) {
    %c0_i32 = arith.constant 0 : i32
    %c0_i32_0 = arith.constant 0 : i32
    %c0_i32_1 = arith.constant 0 : i32
    return %arg0, %c0_i32, %c0_i32_0 : i32, i32, i32
  }
}

module attributes {stable_mosaic.version = 11 : i64} {
  func.func @_upsample_kernel(%arg0: i32, %arg1: memref<1x4x256xbf16, #tpu.memory_space<vmem>>, %arg2: memref<256x1024xbf16, #tpu.memory_space<vmem>>, %arg3: memref<1x4x1024xbf16, #tpu.memory_space<vmem>>) attributes {dimension_semantics = [#tpu.dimension_semantics<parallel>], iteration_bounds = array<i64: 2>, scalar_prefetch = 0 : i64, scratch_operands = 0 : i64, tpu.core_type = #tpu.core_type<tc>, window_params = [{transform_indices = @transform_0, window_bounds = array<i64: 1, 4, 256>}, {pipeline_mode = #tpu.pipeline_mode<synchronous>, transform_indices = @transform_1, window_bounds = array<i64: 256, 1024>}, {transform_indices = @transform_2, window_bounds = array<i64: 1, 4, 1024>}]} {
    %c0 = arith.constant 0 : index
    %c0_0 = arith.constant 0 : index
    %c0_1 = arith.constant 0 : index
    %0 = vector.load %arg1[%c0, %c0_0, %c0_1] : memref<1x4x256xbf16, #tpu.memory_space<vmem>>, vector<1x4x256xbf16>
    %1 = vector.shape_cast %0 : vector<1x4x256xbf16> to vector<4x256xbf16>
    %c0_2 = arith.constant 0 : index
    %c0_3 = arith.constant 0 : index
    %2 = vector.load %arg2[%c0_2, %c0_3] : memref<256x1024xbf16, #tpu.memory_space<vmem>>, vector<256x1024xbf16>
    %cst = arith.constant dense<0.000000e+00> : vector<4x1024xf32>
    %3 = tpu.matmul %1, %2, %cst {dimension_numbers = #tpu.dot_dimension_numbers<[1], [0], [0], [1], [0, 0, 1, 1], [], []>} : vector<4x256xbf16>, vector<256x1024xbf16>, vector<4x1024xf32> -> vector<4x1024xf32>
    %4 = arith.truncf %3 : vector<4x1024xf32> to vector<4x1024xbf16>
    %c0_4 = arith.constant 0 : index
    %c0_5 = arith.constant 0 : index
    %c0_6 = arith.constant 0 : index
    %5 = vector.load %arg3[%c0_4, %c0_5, %c0_6] : memref<1x4x1024xbf16, #tpu.memory_space<vmem>>, vector<1x4x1024xbf16>
    %6 = vector.shape_cast %5 : vector<1x4x1024xbf16> to vector<4x1024xbf16>
    %7 = vector.shape_cast %4 : vector<4x1024xbf16> to vector<1x4x1024xbf16>
    tpu.vector_store %arg3[%c0_4, %c0_5, %c0_6], %7 {strides = array<i32>} : memref<1x4x1024xbf16, #tpu.memory_space<vmem>>, vector<1x4x1024xbf16>,
    return
  }
  func.func @transform_0(%arg0: i32) -> (i32, i32, i32) {
    %c0_i32 = arith.constant 0 : i32
    %c0_i32_0 = arith.constant 0 : i32
    %c0_i32_1 = arith.constant 0 : i32
    return %arg0, %c0_i32, %c0_i32_0 : i32, i32, i32
  }
  func.func @transform_1(%arg0: i32) -> (i32, i32) {
    %c0_i32 = arith.constant 0 : i32
    %c0_i32_0 = arith.constant 0 : i32
    %c0_i32_1 = arith.constant 0 : i32
    return %c0_i32, %c0_i32_0 : i32, i32
  }
  func.func @transform_2(%arg0: i32) -> (i32, i32, i32) {
    %c0_i32 = arith.constant 0 : i32
    %c0_i32_0 = arith.constant 0 : i32
    %c0_i32_1 = arith.constant 0 : i32
    return %arg0, %c0_i32, %c0_i32_0 : i32, i32, i32
  }
}

module attributes {stable_mosaic.version = 11 : i64} {
  func.func @_conv_taps_kernel(%arg0: i32, %arg1: memref<1x4x1222xbf16, #tpu.memory_space<vmem>>, %arg2: memref<9x3x4xbf16, #tpu.memory_space<vmem>>, %arg3: memref<3x1xf32, #tpu.memory_space<vmem>>, %arg4: memref<1x3x1152xf32, #tpu.memory_space<vmem>>) attributes {dimension_semantics = [#tpu.dimension_semantics<parallel>], iteration_bounds = array<i64: 2>, scalar_prefetch = 0 : i64, scratch_operands = 0 : i64, tpu.core_type = #tpu.core_type<tc>, window_params = [{transform_indices = @transform_0, window_bounds = array<i64: 1, 4, 1222>}, {pipeline_mode = #tpu.pipeline_mode<synchronous>, transform_indices = @transform_1, window_bounds = array<i64: 9, 3, 4>}, {pipeline_mode = #tpu.pipeline_mode<synchronous>, transform_indices = @transform_2, window_bounds = array<i64: 3, 1>}, {transform_indices = @transform_3, window_bounds = array<i64: 1, 3, 1152>}]} {
    %c0 = arith.constant 0 : index
    %c0_0 = arith.constant 0 : index
    %c0_1 = arith.constant 0 : index
    %0 = vector.load %arg1[%c0, %c0_0, %c0_1] : memref<1x4x1222xbf16, #tpu.memory_space<vmem>>, vector<1x4x1222xbf16>
    %1 = vector.shape_cast %0 : vector<1x4x1222xbf16> to vector<4x1222xbf16>
    %cst = arith.constant 0.000000e+00 : f32
    %2 = vector.broadcast %cst : f32 to vector<3x1152xf32>
    %c0_2 = arith.constant 0 : index
    %c0_3 = arith.constant 0 : index
    %c0_4 = arith.constant 0 : index
    %3 = vector.load %arg2[%c0_2, %c0_3, %c0_4] : memref<9x3x4xbf16, #tpu.memory_space<vmem>>, vector<1x3x4xbf16>
    %4 = vector.shape_cast %3 : vector<1x3x4xbf16> to vector<3x4xbf16>
    %5 = vector.extract_strided_slice %1 {offsets = [0, 0], sizes = [4, 1152], strides = [1, 1]} : vector<4x1222xbf16> to vector<4x1152xbf16>
    %cst_5 = arith.constant dense<0.000000e+00> : vector<3x1152xf32>
    %6 = tpu.matmul %4, %5, %cst_5 {dimension_numbers = #tpu.dot_dimension_numbers<[1], [0], [0], [1], [0, 0, 1, 1], [], []>} : vector<3x4xbf16>, vector<4x1152xbf16>, vector<3x1152xf32> -> vector<3x1152xf32>
    %7 = arith.addf %2, %6 : vector<3x1152xf32>
    %c1 = arith.constant 1 : index
    %c0_6 = arith.constant 0 : index
    %c0_7 = arith.constant 0 : index
    %8 = vector.load %arg2[%c1, %c0_6, %c0_7] : memref<9x3x4xbf16, #tpu.memory_space<vmem>>, vector<1x3x4xbf16>
    %9 = vector.shape_cast %8 : vector<1x3x4xbf16> to vector<3x4xbf16>
    %10 = vector.extract_strided_slice %1 {offsets = [0, 1], sizes = [4, 1152], strides = [1, 1]} : vector<4x1222xbf16> to vector<4x1152xbf16>
    %cst_8 = arith.constant dense<0.000000e+00> : vector<3x1152xf32>
    %11 = tpu.matmul %9, %10, %cst_8 {dimension_numbers = #tpu.dot_dimension_numbers<[1], [0], [0], [1], [0, 0, 1, 1], [], []>} : vector<3x4xbf16>, vector<4x1152xbf16>, vector<3x1152xf32> -> vector<3x1152xf32>
    %12 = arith.addf %7, %11 : vector<3x1152xf32>
    %c2 = arith.constant 2 : index
    %c0_9 = arith.constant 0 : index
    %c0_10 = arith.constant 0 : index
    %13 = vector.load %arg2[%c2, %c0_9, %c0_10] : memref<9x3x4xbf16, #tpu.memory_space<vmem>>, vector<1x3x4xbf16>
    %14 = vector.shape_cast %13 : vector<1x3x4xbf16> to vector<3x4xbf16>
    %15 = vector.extract_strided_slice %1 {offsets = [0, 2], sizes = [4, 1152], strides = [1, 1]} : vector<4x1222xbf16> to vector<4x1152xbf16>
    %cst_11 = arith.constant dense<0.000000e+00> : vector<3x1152xf32>
    %16 = tpu.matmul %14, %15, %cst_11 {dimension_numbers = #tpu.dot_dimension_numbers<[1], [0], [0], [1], [0, 0, 1, 1], [], []>} : vector<3x4xbf16>, vector<4x1152xbf16>, vector<3x1152xf32> -> vector<3x1152xf32>
    %17 = arith.addf %12, %16 : vector<3x1152xf32>
    %c3 = arith.constant 3 : index
    %c0_12 = arith.constant 0 : index
    %c0_13 = arith.constant 0 : index
    %18 = vector.load %arg2[%c3, %c0_12, %c0_13] : memref<9x3x4xbf16, #tpu.memory_space<vmem>>, vector<1x3x4xbf16>
    %19 = vector.shape_cast %18 : vector<1x3x4xbf16> to vector<3x4xbf16>
    %20 = vector.extract_strided_slice %1 {offsets = [0, 34], sizes = [4, 1152], strides = [1, 1]} : vector<4x1222xbf16> to vector<4x1152xbf16>
    %cst_14 = arith.constant dense<0.000000e+00> : vector<3x1152xf32>
    %21 = tpu.matmul %19, %20, %cst_14 {dimension_numbers = #tpu.dot_dimension_numbers<[1], [0], [0], [1], [0, 0, 1, 1], [], []>} : vector<3x4xbf16>, vector<4x1152xbf16>, vector<3x1152xf32> -> vector<3x1152xf32>
    %22 = arith.addf %17, %21 : vector<3x1152xf32>
    %c4 = arith.constant 4 : index
    %c0_15 = arith.constant 0 : index
    %c0_16 = arith.constant 0 : index
    %23 = vector.load %arg2[%c4, %c0_15, %c0_16] : memref<9x3x4xbf16, #tpu.memory_space<vmem>>, vector<1x3x4xbf16>
    %24 = vector.shape_cast %23 : vector<1x3x4xbf16> to vector<3x4xbf16>
    %25 = vector.extract_strided_slice %1 {offsets = [0, 35], sizes = [4, 1152], strides = [1, 1]} : vector<4x1222xbf16> to vector<4x1152xbf16>
    %cst_17 = arith.constant dense<0.000000e+00> : vector<3x1152xf32>
    %26 = tpu.matmul %24, %25, %cst_17 {dimension_numbers = #tpu.dot_dimension_numbers<[1], [0], [0], [1], [0, 0, 1, 1], [], []>} : vector<3x4xbf16>, vector<4x1152xbf16>, vector<3x1152xf32> -> vector<3x1152xf32>
    %27 = arith.addf %22, %26 : vector<3x1152xf32>
    %c5 = arith.constant 5 : index
    %c0_18 = arith.constant 0 : index
    %c0_19 = arith.constant 0 : index
    %28 = vector.load %arg2[%c5, %c0_18, %c0_19] : memref<9x3x4xbf16, #tpu.memory_space<vmem>>, vector<1x3x4xbf16>
    %29 = vector.shape_cast %28 : vector<1x3x4xbf16> to vector<3x4xbf16>
    %30 = vector.extract_strided_slice %1 {offsets = [0, 36], sizes = [4, 1152], strides = [1, 1]} : vector<4x1222xbf16> to vector<4x1152xbf16>
    %cst_20 = arith.constant dense<0.000000e+00> : vector<3x1152xf32>
    %31 = tpu.matmul %29, %30, %cst_20 {dimension_numbers = #tpu.dot_dimension_numbers<[1], [0], [0], [1], [0, 0, 1, 1], [], []>} : vector<3x4xbf16>, vector<4x1152xbf16>, vector<3x1152xf32> -> vector<3x1152xf32>
    %32 = arith.addf %27, %31 : vector<3x1152xf32>
    %c6 = arith.constant 6 : index
    %c0_21 = arith.constant 0 : index
    %c0_22 = arith.constant 0 : index
    %33 = vector.load %arg2[%c6, %c0_21, %c0_22] : memref<9x3x4xbf16, #tpu.memory_space<vmem>>, vector<1x3x4xbf16>
    %34 = vector.shape_cast %33 : vector<1x3x4xbf16> to vector<3x4xbf16>
    %35 = vector.extract_strided_slice %1 {offsets = [0, 68], sizes = [4, 1152], strides = [1, 1]} : vector<4x1222xbf16> to vector<4x1152xbf16>
    %cst_23 = arith.constant dense<0.000000e+00> : vector<3x1152xf32>
    %36 = tpu.matmul %34, %35, %cst_23 {dimension_numbers = #tpu.dot_dimension_numbers<[1], [0], [0], [1], [0, 0, 1, 1], [], []>} : vector<3x4xbf16>, vector<4x1152xbf16>, vector<3x1152xf32> -> vector<3x1152xf32>
    %37 = arith.addf %32, %36 : vector<3x1152xf32>
    %c7 = arith.constant 7 : index
    %c0_24 = arith.constant 0 : index
    %c0_25 = arith.constant 0 : index
    %38 = vector.load %arg2[%c7, %c0_24, %c0_25] : memref<9x3x4xbf16, #tpu.memory_space<vmem>>, vector<1x3x4xbf16>
    %39 = vector.shape_cast %38 : vector<1x3x4xbf16> to vector<3x4xbf16>
    %40 = vector.extract_strided_slice %1 {offsets = [0, 69], sizes = [4, 1152], strides = [1, 1]} : vector<4x1222xbf16> to vector<4x1152xbf16>
    %cst_26 = arith.constant dense<0.000000e+00> : vector<3x1152xf32>
    %41 = tpu.matmul %39, %40, %cst_26 {dimension_numbers = #tpu.dot_dimension_numbers<[1], [0], [0], [1], [0, 0, 1, 1], [], []>} : vector<3x4xbf16>, vector<4x1152xbf16>, vector<3x1152xf32> -> vector<3x1152xf32>
    %42 = arith.addf %37, %41 : vector<3x1152xf32>
    %c8 = arith.constant 8 : index
    %c0_27 = arith.constant 0 : index
    %c0_28 = arith.constant 0 : index
    %43 = vector.load %arg2[%c8, %c0_27, %c0_28] : memref<9x3x4xbf16, #tpu.memory_space<vmem>>, vector<1x3x4xbf16>
    %44 = vector.shape_cast %43 : vector<1x3x4xbf16> to vector<3x4xbf16>
    %45 = vector.extract_strided_slice %1 {offsets = [0, 70], sizes = [4, 1152], strides = [1, 1]} : vector<4x1222xbf16> to vector<4x1152xbf16>
    %cst_29 = arith.constant dense<0.000000e+00> : vector<3x1152xf32>
    %46 = tpu.matmul %44, %45, %cst_29 {dimension_numbers = #tpu.dot_dimension_numbers<[1], [0], [0], [1], [0, 0, 1, 1], [], []>} : vector<3x4xbf16>, vector<4x1152xbf16>, vector<3x1152xf32> -> vector<3x1152xf32>
    %47 = arith.addf %42, %46 : vector<3x1152xf32>
    %c0_30 = arith.constant 0 : index
    %c0_31 = arith.constant 0 : index
    %48 = vector.load %arg3[%c0_30, %c0_31] : memref<3x1xf32, #tpu.memory_space<vmem>>, vector<3x1xf32>
    %49 = vector.broadcast %48 : vector<3x1xf32> to vector<3x1152xf32>
    %50 = arith.addf %47, %49 : vector<3x1152xf32>
    %51 = math.tanh %50 : vector<3x1152xf32>
    %c0_32 = arith.constant 0 : index
    %c0_33 = arith.constant 0 : index
    %c0_34 = arith.constant 0 : index
    %52 = vector.load %arg4[%c0_32, %c0_33, %c0_34] : memref<1x3x1152xf32, #tpu.memory_space<vmem>>, vector<1x3x1152xf32>
    %53 = vector.shape_cast %52 : vector<1x3x1152xf32> to vector<3x1152xf32>
    %54 = vector.shape_cast %51 : vector<3x1152xf32> to vector<1x3x1152xf32>
    tpu.vector_store %arg4[%c0_32, %c0_33, %c0_34], %54 {strides = array<i32>} : memref<1x3x1152xf32, #tpu.memory_space<vmem>>, vector<1x3x1152xf32>,
    return
  }
  func.func @transform_0(%arg0: i32) -> (i32, i32, i32) {
    %c0_i32 = arith.constant 0 : i32
    %c0_i32_0 = arith.constant 0 : i32
    %c0_i32_1 = arith.constant 0 : i32
    return %arg0, %c0_i32, %c0_i32_0 : i32, i32, i32
  }
  func.func @transform_1(%arg0: i32) -> (i32, i32, i32) {
    %c0_i32 = arith.constant 0 : i32
    %c0_i32_0 = arith.constant 0 : i32
    %c0_i32_1 = arith.constant 0 : i32
    %c0_i32_2 = arith.constant 0 : i32
    return %c0_i32, %c0_i32_0, %c0_i32_1 : i32, i32, i32
  }
  func.func @transform_2(%arg0: i32) -> (i32, i32) {
    %c0_i32 = arith.constant 0 : i32
    %c0_i32_0 = arith.constant 0 : i32
    %c0_i32_1 = arith.constant 0 : i32
    return %c0_i32, %c0_i32_0 : i32, i32
  }
  func.func @transform_3(%arg0: i32) -> (i32, i32, i32) {
    %c0_i32 = arith.constant 0 : i32
    %c0_i32_0 = arith.constant 0 : i32
    %c0_i32_1 = arith.constant 0 : i32
    return %arg0, %c0_i32, %c0_i32_0 : i32, i32, i32
  }
}

</mosaic_0001>

<bundles_post_ra>
// kernel: conv_autoencoder_forward.7
= control target key start
LH: loop header
LB: loop body
LE: loop exit
PB: predicated region body
PF: predicated region fallthrough
CT: control target
= control target key end

     0   :  { %s3002_s12 = smov 0   ;;  %s3470_s0 = inlined_call_operand.vmem [shape: bf16[2,3,1222], index: 0, kind: input, shape index: {}]   ;;  %s3471_s1 = inlined_call_operand.vmem [shape: bf16[9,4,3], index: 1, kind: input, shape index: {}]   ;;  %s3472_s2 = inlined_call_operand.vmem [shape: f32[4,1], index: 2, kind: input, shape index: {}]   ;;  %s3473_s3 = inlined_call_operand.vmem [shape: bf16[2,4,1152], index: 3, kind: output, shape index: {}]  }
   0x1 LB: > { %s2795_s13 = sadd.s32 4294967295, %s2967_s12   ;;  %p2799_p0 = scmp.ge.s32.totalorder %s2967_s12, 1  ;;  %s2967_s12 = sphi %s3002_s12, %s13_s12  }
   0x2   : > { %p137_p1 = scmp.lt.s32.totalorder %s2967_s12, 3 }
   0x4   : > { %p138_p2 = pnand %p2799_p0, %p137_p1 }
   0x5   : > { %p161_p3 = scmp.lt.s32.totalorder (!%p138_p2), %s2795_s13, 1  ;;  %v185_v0 = vlaneseq (!%p138_p2)  ;;  %v2969_v1 = vmov (!%p138_p2), 1983009808   ;;  %s2970_s18 = smov (!%p138_p2), 127   ;;  %v2971_v14 = vmov (!%p138_p2), 0   ;;  %vm257_vm0 = vcmask (!%p138_p2), 1040384  }
   0x6   : > { %141 = sbr.rel (%p138_p2) target bundleno = 546 (0x222), region = 32  ;;  %v183_v2 = vunpack.c.l.s4 (!%p138_p2), %v2969_v1  ;;  %320 = vmatprep.mubr.bf16.mxu0 (!%p138_p2), %v2971_v14  ;;  %361 = vmatprep.mubr.bf16.mxu1 (!%p138_p2), %v2971_v14  ;;  %s2972_s19 = smov (!%p138_p2), 126   ;;  %vm243_vm1 = vcmask (!%p138_p2), 1039360   ;;  %vm258_vm2 = vcmask (!%p138_p2), 1041408   ;;  %v2977_v23 = vmov (!%p138_p2), 65535  }
   0x7   : > { %v186_v3 = vshrl.u32 (!%p138_p2), %v185_v0, 7  ;;  %2958 = vset.pattern.permute.xlu0 (!%p138_p2), %v2971_v14  ;;  %s2973_s20 = smov (!%p138_p2), 94   ;;  %s2974_s21 = smov (!%p138_p2), 93   ;;  %v259_v24 = vsel (!%p138_p2), %vm257_vm0, 4294967295, %v2977_v23  ;;  %v2802_v35 = vld [vmem:[%s3471_s1 + $0x2] sm:$0x3] (!%p138_p2) }
   0x8   : > { %v184_v4 = vunpack.c.0.s8 (!%p138_p2), %v183_v2  ;;  %s2975_s22 = smov (!%p138_p2), 92   ;;  %s2976_s23 = smov (!%p138_p2), 60   ;;  %v3116_v28 = vsel (!%p138_p2), %vm258_vm2, %v259_v24, 0  ;;  %vm253_vm3 = vcmask (!%p138_p2), 23552   ;;  %v2979_v52 = vmov (!%p138_p2), 0.0  }
   0x9   : > { %s2978_s24 = smov (!%p138_p2), 59   ;;  %vm2980_vm4 = vmmov (!%p138_p2), 0   ;;  %s2981_s27 = smov (!%p138_p2), 58   ;;  %vm748_vm5 = vcmask (!%p138_p2), 1031168   ;;  %v175_v2 = vld [vmem:[%s3471_s1] sm:$0x3] (!%p138_p2) }
   0xa   : > { %v3013_v5 = vsub.s32 (!%p138_p2), %v184_v4, %v186_v3  ;;  %vm1023_vm6 = vcmask (!%p138_p2), 769024   ;;  %vm1298_vm7 = vcmask (!%p138_p2), 760832   ;;  %vm1573_vm8 = vcmask (!%p138_p2), 752640  }
   0xb   : > { %vm1848_vm9 = vcmask (!%p138_p2), 490496   ;;  %vm2123_vm10 = vcmask (!%p138_p2), 482304   ;;  %vm2398_vm11 = vcmask (!%p138_p2), 474112  }
   0xd   : > { %s3475_s13 = smov (!%p161_p3, %s2795_s13), 1 }
   0xe   : > { %s2935_s14 = smul.u32 20, %s3475_s13 }
  0x10   : > { %s165_s17 = scalar_lea.vmem %s3470_s0, %s2935_s14 }
  0x11   : > { %v172_v6 = vld [vmem:[%s165_s17] sm:$0xff]  ;;  %v173_v7 = vld [vmem:[%s165_s17 + $0x8] sm:$0xff]  ;;  %v3054_v19 = vld.sshfl [vmem:[%s165_s17 + $0x10] sm:$0x33 pattern:$0x76325410] }
  0x12   : > { %v3019_v8 = vrot.slane %v172_v6, %v3013_v5  ;;  %v181_v9 = vcombine.high %v172_v6, %v172_v6  ;;  %v3030_v12 = vrot.slane %v173_v7, %v3013_v5  ;;  %v198_v13 = vcombine.high %v173_v7, %v173_v7 }
  0x13   : > { %v3060_v20 = vcombine.high %v3054_v19, %v3054_v19 }
  0x14   : > { %223 = vrot.lane.b32.xlu1 %v3019_v8, %s2970_s18  ;;  %v3024_v10 = vcombine.high %v3019_v8, %v3019_v8  ;;  %v3027_v11 = vrot.slane %v181_v9, %v3013_v5  ;;  %v3043_v16 = vcombine.high %v3030_v12, %v3030_v12  ;;  %v3046_v17 = vrot.slane %v198_v13, %v3013_v5 }
  0x15   : > { %v496_v58 = vand.u32 %v3116_v28, %v3019_v8  ;;  %v508_v3 = vand.u32 %v3116_v28, %v3030_v12 }
  0x16   : > { %225 = vrot.lane.b32.xlu0 %v3024_v10, %s2970_s18  ;;  %v3037_v15 = vcombine.high %v3027_v11, %v3027_v11  ;;  %v3052_v18 = vcombine.high %v3046_v17, %v3046_v17  ;;  %v499_v53 = vand.u32 %v3116_v28, %v3024_v10  ;;  %v511_v59 = vand.u32 %v3116_v28, %v3043_v16 }
  0x17   : > { %v502_v62 = vand.u32 %v3116_v28, %v3027_v11  ;;  %v514_v9 = vand.u32 %v3116_v28, %v3046_v17 }
  0x18   : > { %229 = vrot.lane.b32.xlu1 %v3037_v15, %s2970_s18  ;;  %v505_v56 = vand.u32 %v3116_v28, %v3037_v15  ;;  %v517_v63 = vand.u32 %v3116_v28, %v3052_v18 }
  0x1a   : > { %227 = vrot.lane.b32.xlu0 %v3027_v11, %s2970_s18 }
  0x1c   : > { %233 = vrot.lane.b32.xlu1 %v3043_v16, %s2970_s18 }
  0x1e   : > { %231 = vrot.lane.b32.xlu0 %v3030_v12, %s2970_s18 }
  0x20   : > { %237 = vrot.lane.b32.xlu1 %v3052_v18, %s2970_s18 }
  0x22   : > { %235 = vrot.lane.b32.xlu0 %v3046_v17, %s2970_s18 }
  0x24   : > { %241 = vrot.lane.b32.xlu1 %v3060_v20, %s2970_s18 }
  0x26   : > { %239 = vrot.lane.b32.xlu0 %v3054_v19, %s2970_s18 }
  0x28   : > { %732 = vrot.lane.b32.xlu1 %v3027_v11, %s2972_s19 }
  0x2a   : > { %730 = vrot.lane.b32.xlu0 %v3024_v10, %s2972_s19 }
  0x2c   : > { %734 = vrot.lane.b32.xlu1 %v3037_v15, %s2972_s19 }
  0x2e   : > { %728 = vrot.lane.b32.xlu0 %v3019_v8, %s2972_s19 }
  0x30   : > { %738 = vrot.lane.b32.xlu1 %v3043_v16, %s2972_s19 }
  0x32   : > { %736 = vrot.lane.b32.xlu0 %v3030_v12, %s2972_s19 }
  0x34   : > { %742 = vrot.lane.b32.xlu1 %v3052_v18, %s2972_s19 }
  0x36   : > { %740 = vrot.lane.b32.xlu0 %v3046_v17, %s2972_s19 }
  0x38   : > { %746 = vrot.lane.b32.xlu1 %v3060_v20, %s2972_s19 }
  0x3a   : > { %744 = vrot.lane.b32.xlu0 %v3054_v19, %s2972_s19 }
  0x3c   : > { %1007 = vrot.lane.b32.xlu1 %v3027_v11, %s2973_s20 }
  0x3e   : > { %1005 = vrot.lane.b32.xlu0 %v3024_v10, %s2973_s20 }
  0x40   : > { %1009 = vrot.lane.b32.xlu1 %v3037_v15, %s2973_s20 }
  0x42   : > { %1003 = vrot.lane.b32.xlu0 %v3019_v8, %s2973_s20 }
  0x44   : > { %1013 = vrot.lane.b32.xlu1 %v3043_v16, %s2973_s20 }
  0x46   : > { %1011 = vrot.lane.b32.xlu0 %v3030_v12, %s2973_s20 }
  0x48   : > { %1017 = vrot.lane.b32.xlu1 %v3052_v18, %s2973_s20 }
  0x4a   : > { %1015 = vrot.lane.b32.xlu0 %v3046_v17, %s2973_s20 }
  0x4c   : > { %1021 = vrot.lane.b32.xlu1 %v3060_v20, %s2973_s20 }
  0x4e   : > { %1019 = vrot.lane.b32.xlu0 %v3054_v19, %s2973_s20 }
  0x50   : > { %1282 = vrot.lane.b32.xlu1 %v3027_v11, %s2974_s21 }
  0x52   : > { %1280 = vrot.lane.b32.xlu0 %v3024_v10, %s2974_s21 }
  0x54   : > { %1284 = vrot.lane.b32.xlu1 %v3037_v15, %s2974_s21 }
  0x56   : > { %1278 = vrot.lane.b32.xlu0 %v3019_v8, %s2974_s21 }
  0x58   : > { %1288 = vrot.lane.b32.xlu1 %v3043_v16, %s2974_s21 }
  0x5a   : > { %1286 = vrot.lane.b32.xlu0 %v3030_v12, %s2974_s21 }
  0x5c   : > { %1292 = vrot.lane.b32.xlu1 %v3052_v18, %s2974_s21 }
  0x5e   : > { %1290 = vrot.lane.b32.xlu0 %v3046_v17, %s2974_s21 }
  0x60   : > { %1296 = vrot.lane.b32.xlu1 %v3060_v20, %s2974_s21 }
  0x62   : > { %1294 = vrot.lane.b32.xlu0 %v3054_v19, %s2974_s21  ;;  %s2936_s21 = smul.u32 18, %s3475_s13 }
  0x64   : > { %1557 = vrot.lane.b32.xlu1 %v3027_v11, %s2975_s22 }
  0x66   : > { %1555 = vrot.lane.b32.xlu0 %v3024_v10, %s2975_s22 }
  0x68   : > { %1559 = vrot.lane.b32.xlu1 %v3037_v15, %s2975_s22 }
  0x6a   : > { %1553 = vrot.lane.b32.xlu0 %v3019_v8, %s2975_s22 }
  0x6c   : > { %1563 = vrot.lane.b32.xlu1 %v3043_v16, %s2975_s22 }
  0x6e   : > { %1561 = vrot.lane.b32.xlu0 %v3030_v12, %s2975_s22 }
  0x70   : > { %1567 = vrot.lane.b32.xlu1 %v3052_v18, %s2975_s22 }
  0x72   : > { %1565 = vrot.lane.b32.xlu0 %v3046_v17, %s2975_s22 }
  0x74   : > { %1571 = vrot.lane.b32.xlu1 %v3060_v20, %s2975_s22 }
  0x76   : > { %1569 = vrot.lane.b32.xlu0 %v3054_v19, %s2975_s22 }
  0x78   : > { %1832 = vrot.lane.b32.xlu1 %v3027_v11, %s2976_s23 }
  0x7a   : > { %1830 = vrot.lane.b32.xlu0 %v3024_v10, %s2976_s23 }
  0x7c   : > { %1834 = vrot.lane.b32.xlu1 %v3037_v15, %s2976_s23 }
  0x7e   : > { %1828 = vrot.lane.b32.xlu0 %v3019_v8, %s2976_s23 }
  0x80   : > { %1838 = vrot.lane.b32.xlu1 %v3043_v16, %s2976_s23 }
  0x82   : > { %1836 = vrot.lane.b32.xlu0 %v3030_v12, %s2976_s23 }
  0x84   : > { %1842 = vrot.lane.b32.xlu1 %v3052_v18, %s2976_s23 }
  0x86   : > { %v224_v21 = vpop.permute.xlu1 %223  ;;  %1840 = vrot.lane.b32.xlu0 %v3046_v17, %s2976_s23 }
  0x88   : > { %v226_v22 = vpop.permute.xlu0 %225  ;;  %1846 = vrot.lane.b32.xlu1 %v3060_v20, %s2976_s23 }
  0x89   : > { %v244_v26 = vsel %vm243_vm1, %v224_v21, %v226_v22 }
  0x8a   : > { %v230_v25 = vpop.permute.xlu1 %229  ;;  %1844 = vrot.lane.b32.xlu0 %v3054_v19, %s2976_s23  ;;  %v262_v32 = vand.u32 %v3116_v28, %v244_v26 }
  0x8c   : > { %v228_v27 = vpop.permute.xlu0 %227  ;;  %2107 = vrot.lane.b32.xlu1 %v3027_v11, %s2978_s24 }
  0x8d   : > { %v245_v29 = vsel %vm243_vm1, %v226_v22, %v228_v27  ;;  %v246_v33 = vsel %vm243_vm1, %v228_v27, %v230_v25 }
  0x8e   : > { %v265_v30 = vand.u32 %v3116_v28, %v245_v29  ;;  %v234_v31 = vpop.permute.xlu1 %233  ;;  %2105 = vrot.lane.b32.xlu0 %v3024_v10, %s2978_s24  ;;  %v268_v39 = vand.u32 %v3116_v28, %v246_v33 }
  0x90   : > { %288 = vmatprep.subr.bf16.mxu0 %v265_v30  ;;  %v232_v34 = vpop.permute.xlu0 %231  ;;  %2109 = vrot.lane.b32.xlu1 %v3037_v15, %s2978_s24 }
  0x91   : > { %289 = vmatpush1.bf16.msra.mxu0 %v262_v32  ;;  %v247_v36 = vsel %vm243_vm1, %v230_v25, %v232_v34  ;;  %v248_v40 = vsel %vm243_vm1, %v232_v34, %v234_v31 }
  0x92   : > { %v271_v37 = vand.u32 %v3116_v28, %v247_v36  ;;  %v238_v38 = vpop.permute.xlu1 %237  ;;  %2103 = vrot.lane.b32.xlu0 %v3019_v8, %s2978_s24  ;;  %v274_v45 = vand.u32 %v3116_v28, %v248_v40 }
  0x94   : > { %2804 = vmatmul.mubr.msk.bf16.vlgmr.msra.gmra.mrb[0].mxu0 %vm253_vm3, %v2802_v35  ;;  %v236_v41 = vpop.permute.xlu0 %235  ;;  %329 = vmatprep.subr.bf16.mxu1 %v271_v37 }
  0x95   : > { %v249_v42 = vsel %vm243_vm1, %v234_v31, %v236_v41  ;;  %330 = vmatpush1.bf16.msra.mxu1 %v268_v39  ;;  %402 = vmatprep.mubr.bf16.mxu0 %v2971_v14  ;;  %v250_v46 = vsel %vm243_vm1, %v236_v41, %v238_v38 }
  0x96   : > { %v277_v43 = vand.u32 %v3116_v28, %v249_v42  ;;  %v242_v44 = vpop.permute.xlu1 %241  ;;  %2111 = vrot.lane.b32.xlu0 %v3030_v12, %s2978_s24  ;;  %2113 = vrot.lane.b32.xlu1 %v3043_v16, %s2978_s24  ;;  %v280_v55 = vand.u32 %v3116_v28, %v250_v46 }
  0x98   : > { %v240_v47 = vpop.permute.xlu0 %239  ;;  %2805 = vmatmul.mubr.msk.bf16.vlgmr.msra.gmra.mrb[0].mxu1 %vm253_vm3, %v2802_v35  ;;  %370 = vmatprep.subr.bf16.mxu0 %v277_v43 }
  0x99   : > { %v251_v48 = vsel %vm243_vm1, %v238_v38, %v240_v47  ;;  %v252_v49 = vsel %vm243_vm1, %v240_v47, %v242_v44  ;;  %371 = vmatpush1.bf16.msra.mxu0 %v274_v45  ;;  %443 = vmatprep.mubr.bf16.mxu1 %v2971_v14 }
  0x9a   : > { %v283_v50 = vand.u32 %v3116_v28, %v251_v48  ;;  %v286_v51 = vand.u32 %v3116_v28, %v252_v49  ;;  %2881 = vmatprep.subr.bf16.mxu0 %v2979_v52  ;;  %2115 = vrot.lane.b32.xlu0 %v3046_v17, %s2978_s24  ;;  %v3158_v54 = vpop.permute.xlu1 %732 }
  0x9b   : > { %2117 = vrot.lane.b32.xlu1 %v3052_v18, %s2978_s24 }
  0x9c   : > { %2806 = vmatmul.mubr.msk.bf16.vlgmr.msra.gmra.mrb[4].mxu0 %vm253_vm3, %v2802_v35  ;;  %411 = vmatprep.subr.bf16.mxu1 %v283_v50  ;;  %v731_v57 = vpop.permute.xlu0 %730 }
  0x9d   : > { %412 = vmatpush1.bf16.msra.mxu1 %v280_v55  ;;  %2882 = vmatpush3.bf16.msra.mxu0 %v286_v51  ;;  %v750_v6 = vsel %vm748_vm5, %v731_v57, %v3158_v54 }
  0x9e   : > { %2883 = vmatprep.mubr.msk.bf16.mxu0 %vm2980_vm4, %v2979_v52  ;;  %522 = vmatprep.subr.bf16.mxu1 %v499_v53  ;;  %v735_v60 = vpop.permute.xlu1 %734 }
  0x9f   : > { %563 = vmatprep.subr.bf16.mxu0 %v505_v56  ;;  %2119 = vrot.lane.b32.xlu0 %v3054_v19, %s2978_s24  ;;  %v751_v25 = vsel %vm748_vm5, %v3158_v54, %v735_v60 }
  0xa0   : > { %2807 = vmatmul.mubr.msk.bf16.vlgmr.msra.gmra.mrb[4].mxu1 %vm253_vm3, %v2802_v35  ;;  %v729_v61 = vpop.permute.xlu0 %728  ;;  %2121 = vrot.lane.b32.xlu1 %v3060_v20, %s2978_s24  ;;  %v768_v29 = vand.u32 %v751_v25, %v3116_v28  ;;  %s170_s24 = scalar_lea.vmem %s3473_s3, %s2936_s21 }
  0xa1   : > { %523 = vmatpush1.bf16.msra.mxu1 %v496_v58  ;;  %554 = vmatprep.mubr.bf16.mxu1 %v2971_v14  ;;  %v749_v21 = vsel %vm748_vm5, %v729_v61, %v731_v57 }
  0xa2   : > { %604 = vmatprep.subr.bf16.mxu1 %v511_v59  ;;  %v739_v0 = vpop.permute.xlu1 %738  ;;  %v762_v24 = vand.u32 %v749_v21, %v3116_v28 }
  0xa3   : > { %2380 = vrot.lane.b32.xlu0 %v3024_v10, %s2981_s27  ;;  %v765_v10 = vand.u32 %v750_v6, %v3116_v28 }
  0xa4   : > { %2884 = vmatmul.mubr.msk.bf16.vlgmr.msra.gmra.mrb[8].mxu0 %vm253_vm3, %v2802_v35  ;;  %v737_v1 = vpop.permute.xlu0 %736  ;;  %2382 = vrot.lane.b32.xlu1 %v3027_v11, %s2981_s27 }
  0xa5   : > { %564 = vmatpush1.bf16.msra.mxu0 %v502_v62  ;;  %595 = vmatprep.mubr.bf16.mxu0 %v2971_v14  ;;  %v752_v13 = vsel %vm748_vm5, %v735_v60, %v737_v1  ;;  %v753_v30 = vsel %vm748_vm5, %v737_v1, %v739_v0 }
  0xa6   : > { %645 = vmatprep.subr.bf16.mxu0 %v517_v63  ;;  %v743_v4 = vpop.permute.xlu1 %742  ;;  %v771_v22 = vand.u32 %v752_v13, %v3116_v28  ;;  %v774_v33 = vand.u32 %v753_v30, %v3116_v28  ;;  %v2820_v63 = vld [vmem:[%s3471_s1 + $0x6] sm:$0x3] }
  0xa7   : > { %2378 = vrot.lane.b32.xlu0 %v3019_v8, %s2981_s27 }
  0xa8   : > { %2809 = vmatmul.mubr.msk.bf16.vlgmr.msra.gmra.mrb[8].mxu1 %vm253_vm3, %v175_v2  ;;  %v741_v7 = vpop.permute.xlu0 %740  ;;  %2384 = vrot.lane.b32.xlu1 %v3037_v15, %s2981_s27  ;;  %v520_v15 = vand.u32 %v3054_v19, %v3116_v28 }
  0xa9   : > { %605 = vmatpush1.bf16.msra.mxu1 %v508_v3  ;;  %636 = vmatprep.mubr.bf16.mxu1 %v2971_v14  ;;  %v755_v34 = vsel %vm748_vm5, %v741_v7, %v743_v4 }
  0xaa   : > { %2887 = vmatprep.subr.bf16.mxu1 %v2979_v52  ;;  %v747_v11 = vpop.permute.xlu1 %746  ;;  %v780_v38 = vand.u32 %v755_v34, %v3116_v28 }
  0xab   : > { %2386 = vrot.lane.b32.xlu0 %v3030_v12, %s2981_s27  ;;  %v754_v12 = vsel %vm748_vm5, %v739_v0, %v741_v7 }
  0xac   : > { %2810 = vmatmul.mubr.msk.bf16.vlgmr.msra.gmra.mrb[12].mxu0 %vm253_vm3, %v175_v2  ;;  %v745_v8 = vpop.permute.xlu0 %744  ;;  %2388 = vrot.lane.b32.xlu1 %v3043_v16, %s2981_s27  ;;  %v777_v26 = vand.u32 %v754_v12, %v3116_v28 }
  0xad   : > { %646 = vmatpush1.bf16.msra.mxu0 %v514_v9  ;;  %677 = vmatprep.mubr.bf16.mxu0 %v2971_v14  ;;  %v757_v39 = vsel %vm748_vm5, %v745_v8, %v747_v11 }
  0xae   : > { %788 = vmatprep.subr.bf16.mxu0 %v765_v10  ;;  %v1008_v23 = vpop.permute.xlu1 %1007  ;;  %v786_v44 = vand.u32 %v757_v39, %v3116_v28 }
  0xaf   : > { %2390 = vrot.lane.b32.xlu0 %v3046_v17, %s2981_s27  ;;  %v756_v17 = vsel %vm748_vm5, %v743_v4, %v745_v8 }
  0xb0   : > { %2811 = vmatmul.mubr.msk.bf16.vlgmr.msra.gmra.mrb[12].mxu1 %vm253_vm3, %v175_v2  ;;  %v1006_v16 = vpop.permute.xlu0 %1005  ;;  %2392 = vrot.lane.b32.xlu1 %v3052_v18, %s2981_s27  ;;  %v783_v31 = vand.u32 %v756_v17, %v3116_v28 }
  0xb1   : > { %2888 = vmatpush3.bf16.msra.mxu1 %v520_v15  ;;  %2889 = vmatprep.mubr.msk.bf16.mxu1 %vm2980_vm4, %v2979_v52  ;;  %v1025_v36 = vsel %vm1023_vm6, %v1006_v16, %v1008_v23 }
  0xb2   : > { %829 = vmatprep.subr.bf16.mxu1 %v771_v22  ;;  %v1010_v27 = vpop.permute.xlu1 %1009  ;;  %v1040_v40 = vand.u32 %v1025_v36, %v3116_v28 }
  0xb3   : > { %2394 = vrot.lane.b32.xlu0 %v3054_v19, %s2981_s27  ;;  %v1026_v51 = vsel %vm1023_vm6, %v1008_v23, %v1010_v27 }
  0xb4   : > { %2812 = vmatmul.mubr.msk.bf16.vlgmr.msra.gmra.mrb[16].mxu0 %vm253_vm3, %v175_v2  ;;  %v1004_v18 = vpop.permute.xlu0 %1003  ;;  %2396 = vrot.lane.b32.xlu1 %v3060_v20, %s2981_s27  ;;  %v2814_v20 = vld [vmem:[%s3471_s1 + $0x4] sm:$0x3]  ;;  %v1043_v57 = vand.u32 %v1026_v51, %v3116_v28 }
  0xb5   : > { %789 = vmatpush1.bf16.msra.mxu0 %v762_v24  ;;  %820 = vmatprep.mubr.bf16.mxu0 %v2971_v14  ;;  %v1024_v45 = vsel %vm1023_vm6, %v1004_v18, %v1006_v16 }
  0xb6   : > { %870 = vmatprep.subr.bf16.mxu0 %v777_v26  ;;  %v1014_v32 = vpop.permute.xlu1 %1013  ;;  %v1037_v50 = vand.u32 %v1024_v45, %v3116_v28 }
  0xb8   : > { %2890 = vmatmul.mubr.msk.bf16.vlgmr.msra.gmra.mrb[16].mxu1 %vm253_vm3, %v175_v2  ;;  %v1012_v19 = vpop.permute.xlu0 %1011 }
  0xb9   : > { %830 = vmatpush1.bf16.msra.mxu1 %v768_v29  ;;  %861 = vmatprep.mubr.bf16.mxu1 %v2971_v14  ;;  %v1027_v42 = vsel %vm1023_vm6, %v1010_v27, %v1012_v19  ;;  %v1028_v58 = vsel %vm1023_vm6, %v1012_v19, %v1014_v32  ;;  %v2826_v19 = vld [vmem:[%s3471_s1 + $0x8] sm:$0x3] }
  0xba   : > { %911 = vmatprep.subr.bf16.mxu1 %v783_v31  ;;  %v1018_v35 = vpop.permute.xlu1 %1017  ;;  %v1046_v46 = vand.u32 %v1027_v42, %v3116_v28  ;;  %v1049_v62 = vand.u32 %v1028_v58, %v3116_v28 }
  0xbc   : > { %2815 = vmatmul.mubr.msk.bf16.vlgmr.msra.gmra.mrb[20].mxu0 %vm253_vm3, %v2814_v20  ;;  %v1016_v37 = vpop.permute.xlu0 %1015 }
  0xbd   : > { %871 = vmatpush1.bf16.msra.mxu0 %v774_v33  ;;  %902 = vmatprep.mubr.bf16.mxu0 %v2971_v14  ;;  %v1029_v48 = vsel %vm1023_vm6, %v1014_v32, %v1016_v37  ;;  %v1030_v0 = vsel %vm1023_vm6, %v1016_v37, %v1018_v35 }
  0xbe   : > { %2893 = vmatprep.subr.bf16.mxu0 %v2979_v52  ;;  %v1022_v41 = vpop.permute.xlu1 %1021  ;;  %v1052_v53 = vand.u32 %v1029_v48, %v3116_v28  ;;  %v1055_v4 = vand.u32 %v1030_v0, %v3116_v28 }
  0xc0   : > { %2816 = vmatmul.mubr.msk.bf16.vlgmr.msra.gmra.mrb[20].mxu1 %vm253_vm3, %v2814_v20  ;;  %v1020_v43 = vpop.permute.xlu0 %1019 }
  0xc1   : > { %912 = vmatpush1.bf16.msra.mxu1 %v780_v38  ;;  %943 = vmatprep.mubr.bf16.mxu1 %v2971_v14  ;;  %v1031_v55 = vsel %vm1023_vm6, %v1018_v35, %v1020_v43  ;;  %v1032_v6 = vsel %vm1023_vm6, %v1020_v43, %v1022_v41 }
  0xc2   : > { %1063 = vmatprep.subr.bf16.mxu1 %v1040_v40  ;;  %v1283_v47 = vpop.permute.xlu1 %1282  ;;  %v1058_v59 = vand.u32 %v1031_v55, %v3116_v28  ;;  %v1061_v13 = vand.u32 %v1032_v6, %v3116_v28 }
  0xc4   : > { %2817 = vmatmul.mubr.msk.bf16.vlgmr.msra.gmra.mrb[24].mxu0 %vm253_vm3, %v2814_v20  ;;  %v1281_v49 = vpop.permute.xlu0 %1280 }
  0xc5   : > { %2894 = vmatpush3.bf16.msra.mxu0 %v786_v44  ;;  %2895 = vmatprep.mubr.msk.bf16.mxu0 %vm2980_vm4, %v2979_v52  ;;  %v1300_v2 = vsel %vm1298_vm7, %v1281_v49, %v1283_v47 }
  0xc6   : > { %1104 = vmatprep.subr.bf16.mxu0 %v1046_v46  ;;  %v1285_v54 = vpop.permute.xlu1 %1284  ;;  %v1315_v7 = vand.u32 %v1300_v2, %v3116_v28 }
  0xc7   : > { %v1301_v16 = vsel %vm1298_vm7, %v1283_v47, %v1285_v54 }
  0xc8   : > { %2818 = vmatmul.mubr.msk.bf16.vlgmr.msra.gmra.mrb[24].mxu1 %vm253_vm3, %v2814_v20  ;;  %v1279_v56 = vpop.permute.xlu0 %1278  ;;  %v1318_v17 = vand.u32 %v1301_v16, %v3116_v28 }
  0xc9   : > { %1064 = vmatpush1.bf16.msra.mxu1 %v1037_v50  ;;  %1095 = vmatprep.mubr.bf16.mxu1 %v2971_v14  ;;  %v1299_v8 = vsel %vm1298_vm7, %v1279_v56, %v1281_v49 }
  0xca   : > { %1145 = vmatprep.subr.bf16.mxu1 %v1052_v53  ;;  %v1289_v60 = vpop.permute.xlu1 %1288  ;;  %v1312_v12 = vand.u32 %v1299_v8, %v3116_v28 }
  0xcc   : > { %2896 = vmatmul.mubr.msk.bf16.vlgmr.msra.gmra.mrb[28].mxu0 %vm253_vm3, %v2814_v20  ;;  %v1287_v61 = vpop.permute.xlu0 %1286 }
  0xcd   : > { %1105 = vmatpush1.bf16.msra.mxu0 %v1043_v57  ;;  %1136 = vmatprep.mubr.bf16.mxu0 %v2971_v14  ;;  %v1302_v10 = vsel %vm1298_vm7, %v1285_v54, %v1287_v61  ;;  %v1303_v18 = vsel %vm1298_vm7, %v1287_v61, %v1289_v60  ;;  %v2832_v61 = vld [vmem:[%s3471_s1 + $0xa] sm:$0x3] }
  0xce   : > { %1186 = vmatprep.subr.bf16.mxu0 %v1058_v59  ;;  %v1293_v1 = vpop.permute.xlu1 %1292  ;;  %v1321_v15 = vand.u32 %v1302_v10, %v3116_v28  ;;  %v1324_v32 = vand.u32 %v1303_v18, %v3116_v28 }
  0xd0   : > { %2821 = vmatmul.mubr.msk.bf16.vlgmr.msra.gmra.mrb[28].mxu1 %vm253_vm3, %v2820_v63  ;;  %v1291_v3 = vpop.permute.xlu0 %1290 }
  0xd1   : > { %1146 = vmatpush1.bf16.msra.mxu1 %v1049_v62  ;;  %1177 = vmatprep.mubr.bf16.mxu1 %v2971_v14  ;;  %v1304_v22 = vsel %vm1298_vm7, %v1289_v60, %v1291_v3  ;;  %v1305_v33 = vsel %vm1298_vm7, %v1291_v3, %v1293_v1 }
  0xd2   : > { %2899 = vmatprep.subr.bf16.mxu1 %v2979_v52  ;;  %v1297_v9 = vpop.permute.xlu1 %1296  ;;  %v1327_v24 = vand.u32 %v1304_v22, %v3116_v28  ;;  %v1330_v36 = vand.u32 %v1305_v33, %v3116_v28 }
  0xd4   : > { %2822 = vmatmul.mubr.msk.bf16.vlgmr.msra.gmra.mrb[32].mxu0 %vm253_vm3, %v2820_v63  ;;  %v1295_v11 = vpop.permute.xlu0 %1294 }
  0xd5   : > { %1187 = vmatpush1.bf16.msra.mxu0 %v1055_v4  ;;  %1218 = vmatprep.mubr.bf16.mxu0 %v2971_v14  ;;  %v1306_v26 = vsel %vm1298_vm7, %v1293_v1, %v1295_v11  ;;  %v1307_v37 = vsel %vm1298_vm7, %v1295_v11, %v1297_v9 }
  0xd6   : > { %1338 = vmatprep.subr.bf16.mxu0 %v1315_v7  ;;  %v1558_v21 = vpop.permute.xlu1 %1557  ;;  %v1333_v29 = vand.u32 %v1306_v26, %v3116_v28  ;;  %v1336_v42 = vand.u32 %v1307_v37, %v3116_v28 }
  0xd8   : > { %2823 = vmatmul.mubr.msk.bf16.vlgmr.msra.gmra.mrb[32].mxu1 %vm253_vm3, %v2820_v63  ;;  %v1556_v23 = vpop.permute.xlu0 %1555 }
  0xd9   : > { %2900 = vmatpush3.bf16.msra.mxu1 %v1061_v13  ;;  %2901 = vmatprep.mubr.msk.bf16.mxu1 %vm2980_vm4, %v2979_v52  ;;  %v1575_v34 = vsel %vm1573_vm8, %v1556_v23, %v1558_v21 }
  0xda   : > { %1379 = vmatprep.subr.bf16.mxu1 %v1321_v15  ;;  %v1560_v25 = vpop.permute.xlu1 %1559  ;;  %v1590_v38 = vand.u32 %v1575_v34, %v3116_v28 }
  0xdb   : > { %v1576_v49 = vsel %vm1573_vm8, %v1558_v21, %v1560_v25 }
  0xdc   : > { %2824 = vmatmul.mubr.msk.bf16.vlgmr.msra.gmra.mrb[36].mxu0 %vm253_vm3, %v2820_v63  ;;  %v1554_v27 = vpop.permute.xlu0 %1553  ;;  %v1593_v55 = vand.u32 %v1576_v49, %v3116_v28 }
  0xdd   : > { %1339 = vmatpush1.bf16.msra.mxu0 %v1312_v12  ;;  %1370 = vmatprep.mubr.bf16.mxu0 %v2971_v14  ;;  %v1574_v43 = vsel %vm1573_vm8, %v1554_v27, %v1556_v23 }
  0xde   : > { %1420 = vmatprep.subr.bf16.mxu0 %v1327_v24  ;;  %v1564_v30 = vpop.permute.xlu1 %1563  ;;  %v1587_v48 = vand.u32 %v1574_v43, %v3116_v28 }
  0xe0   : > { %2902 = vmatmul.mubr.msk.bf16.vlgmr.msra.gmra.mrb[36].mxu1 %vm253_vm3, %v2820_v63  ;;  %v1562_v31 = vpop.permute.xlu0 %1561 }
  0xe1   : > { %1380 = vmatpush1.bf16.msra.mxu1 %v1318_v17  ;;  %1411 = vmatprep.mubr.bf16.mxu1 %v2971_v14  ;;  %v1577_v40 = vsel %vm1573_vm8, %v1560_v25, %v1562_v31  ;;  %v1578_v56 = vsel %vm1573_vm8, %v1562_v31, %v1564_v30  ;;  %v2838_v31 = vld [vmem:[%s3471_s1 + $0xc] sm:$0x3] }
  0xe2   : > { %1461 = vmatprep.subr.bf16.mxu1 %v1333_v29  ;;  %v1568_v20 = vpop.permute.xlu1 %1567  ;;  %v1596_v44 = vand.u32 %v1577_v40, %v3116_v28  ;;  %v1599_v60 = vand.u32 %v1578_v56, %v3116_v28 }
  0xe4   : > { %2827 = vmatmul.mubr.msk.bf16.vlgmr.msra.gmra.mrb[40].mxu0 %vm253_vm3, %v2826_v19  ;;  %v1566_v35 = vpop.permute.xlu0 %1565 }
  0xe5   : > { %1421 = vmatpush1.bf16.msra.mxu0 %v1324_v32  ;;  %1452 = vmatprep.mubr.bf16.mxu0 %v2971_v14  ;;  %v1579_v46 = vsel %vm1573_vm8, %v1564_v30, %v1566_v35  ;;  %v1580_v62 = vsel %vm1573_vm8, %v1566_v35, %v1568_v20  ;;  %v2651_v32 = vld [vmem:[%s3472_s2] sm:$0xf] }
  0xe6   : > { %2905 = vmatprep.subr.bf16.mxu0 %v2979_v52  ;;  %v1572_v39 = vpop.permute.xlu1 %1571  ;;  %v1602_v50 = vand.u32 %v1579_v46, %v3116_v28  ;;  %v1605_v2 = vand.u32 %v1580_v62, %v3116_v28  ;;  %2654 = vperm.xlu0 %2958, %v2651_v32  }
  0xe8   : > { %2828 = vmatmul.mubr.msk.bf16.vlgmr.msra.gmra.mrb[40].mxu1 %vm253_vm3, %v2826_v19  ;;  %v1570_v41 = vpop.permute.xlu0 %1569 }
  0xe9   : > { %1462 = vmatpush1.bf16.msra.mxu1 %v1330_v36  ;;  %1493 = vmatprep.mubr.bf16.mxu1 %v2971_v14  ;;  %v1581_v53 = vsel %vm1573_vm8, %v1568_v20, %v1570_v41  ;;  %v1582_v3 = vsel %vm1573_vm8, %v1570_v41, %v1572_v39 }
  0xea   : > { %1613 = vmatprep.subr.bf16.mxu1 %v1590_v38  ;;  %v1833_v45 = vpop.permute.xlu1 %1832  ;;  %v1608_v57 = vand.u32 %v1581_v53, %v3116_v28  ;;  %v1611_v10 = vand.u32 %v1582_v3, %v3116_v28 }
  0xec   : > { %2829 = vmatmul.mubr.msk.bf16.vlgmr.msra.gmra.mrb[44].mxu0 %vm253_vm3, %v2826_v19  ;;  %v1831_v47 = vpop.permute.xlu0 %1830 }
  0xed   : > { %2906 = vmatpush3.bf16.msra.mxu0 %v1336_v42  ;;  %2907 = vmatprep.mubr.msk.bf16.mxu0 %vm2980_vm4, %v2979_v52  ;;  %v1850_v0 = vsel %vm1848_vm9, %v1831_v47, %v1833_v45 }
  0xee   : > { %1654 = vmatprep.subr.bf16.mxu0 %v1596_v44  ;;  %v1835_v51 = vpop.permute.xlu1 %1834  ;;  %v1865_v4 = vand.u32 %v1850_v0, %v3116_v28 }
  0xef   : > { %v1851_v23 = vsel %vm1848_vm9, %v1833_v45, %v1835_v51 }
  0xf0   : > { %2830 = vmatmul.mubr.msk.bf16.vlgmr.msra.gmra.mrb[44].mxu1 %vm253_vm3, %v2826_v19  ;;  %v1829_v54 = vpop.permute.xlu0 %1828  ;;  %v1868_v26 = vand.u32 %v1851_v23, %v3116_v28 }
  0xf1   : > { %1614 = vmatpush1.bf16.msra.mxu1 %v1587_v48  ;;  %1645 = vmatprep.mubr.bf16.mxu1 %v2971_v14  ;;  %v1849_v11 = vsel %vm1848_vm9, %v1829_v54, %v1831_v47 }
  0xf2   : > { %1695 = vmatprep.subr.bf16.mxu1 %v1602_v50  ;;  %v1839_v58 = vpop.permute.xlu1 %1838  ;;  %v1862_v22 = vand.u32 %v1849_v11, %v3116_v28 }
  0xf4   : > { %2908 = vmatmul.mubr.msk.bf16.vlgmr.msra.gmra.mrb[48].mxu0 %vm253_vm3, %v2826_v19  ;;  %v1837_v59 = vpop.permute.xlu0 %1836 }
  0xf5   : > { %1655 = vmatpush1.bf16.msra.mxu0 %v1593_v55  ;;  %1686 = vmatprep.mubr.bf16.mxu0 %v2971_v14  ;;  %v1852_v7 = vsel %vm1848_vm9, %v1835_v51, %v1837_v59  ;;  %v1853_v27 = vsel %vm1848_vm9, %v1837_v59, %v1839_v58 }
  0xf6   : > { %1736 = vmatprep.subr.bf16.mxu0 %v1608_v57  ;;  %v1843_v63 = vpop.permute.xlu1 %1842  ;;  %v1871_v13 = vand.u32 %v1852_v7, %v3116_v28  ;;  %v1874_v30 = vand.u32 %v1853_v27, %v3116_v28 }
  0xf8   : > { %2833 = vmatmul.mubr.msk.bf16.vlgmr.msra.gmra.mrb[48].mxu1 %vm253_vm3, %v2832_v61  ;;  %v1841_v1 = vpop.permute.xlu0 %1840 }
  0xf9   : > { %1696 = vmatpush1.bf16.msra.mxu1 %v1599_v60  ;;  %1727 = vmatprep.mubr.bf16.mxu1 %v2971_v14  ;;  %v1854_v15 = vsel %vm1848_vm9, %v1839_v58, %v1841_v1  ;;  %v1855_v19 = vsel %vm1848_vm9, %v1841_v1, %v1843_v63  ;;  %v2844_v58 = vld [vmem:[%s3471_s1 + $0xe] sm:$0x3] }
  0xfa   : > { %2911 = vmatprep.subr.bf16.mxu1 %v2979_v52  ;;  %v1847_v6 = vpop.permute.xlu1 %1846  ;;  %v1877_v12 = vand.u32 %v1854_v15, %v3116_v28  ;;  %v1880_v34 = vand.u32 %v1855_v19, %v3116_v28 }
  0xfc   : > { %2834 = vmatmul.mubr.msk.bf16.vlgmr.msra.gmra.mrb[52].mxu0 %vm253_vm3, %v2832_v61  ;;  %v1845_v9 = vpop.permute.xlu0 %1844 }
  0xfd   : > { %1737 = vmatpush1.bf16.msra.mxu0 %v1605_v2  ;;  %1768 = vmatprep.mubr.bf16.mxu0 %v2971_v14  ;;  %v1856_v24 = vsel %vm1848_vm9, %v1843_v63, %v1845_v9  ;;  %v1857_v36 = vsel %vm1848_vm9, %v1845_v9, %v1847_v6 }
  0xfe   : > { %1888 = vmatprep.subr.bf16.mxu0 %v1865_v4  ;;  %v2108_v8 = vpop.permute.xlu1 %2107  ;;  %v1883_v17 = vand.u32 %v1856_v24, %v3116_v28  ;;  %v1886_v39 = vand.u32 %v1857_v36, %v3116_v28  ;;  %v2850_v24 = vld [vmem:[%s3471_s1 + $0x10] sm:$0x3] }
 0x100   : > { %2835 = vmatmul.mubr.msk.bf16.vlgmr.msra.gmra.mrb[52].mxu1 %vm253_vm3, %v2832_v61  ;;  %v2106_v21 = vpop.permute.xlu0 %2105 }
 0x101   : > { %2912 = vmatpush3.bf16.msra.mxu1 %v1611_v10  ;;  %2913 = vmatprep.mubr.msk.bf16.mxu1 %vm2980_vm4, %v2979_v52  ;;  %v2125_v33 = vsel %vm2123_vm10, %v2106_v21, %v2108_v8 }
 0x102   : > { %1929 = vmatprep.subr.bf16.mxu1 %v1871_v13  ;;  %v2110_v16 = vpop.permute.xlu1 %2109  ;;  %v2140_v37 = vand.u32 %v2125_v33, %v3116_v28 }
 0x103   : > { %v2126_v47 = vsel %vm2123_vm10, %v2108_v8, %v2110_v16 }
 0x104   : > { %2836 = vmatmul.mubr.msk.bf16.vlgmr.msra.gmra.mrb[56].mxu0 %vm253_vm3, %v2832_v61  ;;  %v2104_v25 = vpop.permute.xlu0 %2103  ;;  %v2143_v51 = vand.u32 %v2126_v47, %v3116_v28 }
 0x105   : > { %1889 = vmatpush1.bf16.msra.mxu0 %v1862_v22  ;;  %1920 = vmatprep.mubr.bf16.mxu0 %v2971_v14  ;;  %v2124_v41 = vsel %vm2123_vm10, %v2104_v25, %v2106_v21 }
 0x106   : > { %1970 = vmatprep.subr.bf16.mxu0 %v1877_v12  ;;  %v2137_v45 = vand.u32 %v2124_v41, %v3116_v28 }
 0x108   : > { %2914 = vmatmul.mubr.msk.bf16.vlgmr.msra.gmra.mrb[56].mxu1 %vm253_vm3, %v2832_v61  ;;  %v2112_v18 = vpop.permute.xlu0 %2111  ;;  %v2114_v29 = vpop.permute.xlu1 %2113 }
 0x109   : > { %1930 = vmatpush1.bf16.msra.mxu1 %v1868_v26  ;;  %1961 = vmatprep.mubr.bf16.mxu1 %v2971_v14  ;;  %v2127_v38 = vsel %vm2123_vm10, %v2110_v16, %v2112_v18  ;;  %v2128_v54 = vsel %vm2123_vm10, %v2112_v18, %v2114_v29 }
 0x10a   : > { %2011 = vmatprep.subr.bf16.mxu1 %v1883_v17  ;;  %v2146_v42 = vand.u32 %v2127_v38, %v3116_v28  ;;  %v2149_v57 = vand.u32 %v2128_v54, %v3116_v28 }
 0x10c   : > { %2839 = vmatmul.mubr.msk.bf16.vlgmr.msra.gmra.mrb[60].mxu0 %vm253_vm3, %v2838_v31  ;;  %v2116_v20 = vpop.permute.xlu0 %2115 }
 0x10d   : > { %1971 = vmatpush1.bf16.msra.mxu0 %v1874_v30  ;;  %2002 = vmatprep.mubr.bf16.mxu0 %v2971_v14  ;;  %v2118_v35 = vpop.permute.xlu1 %2117  ;;  %v2129_v44 = vsel %vm2123_vm10, %v2114_v29, %v2116_v20 }
 0x10e   : > { %2917 = vmatprep.subr.bf16.mxu0 %v2979_v52  ;;  %v2152_v48 = vand.u32 %v2129_v44, %v3116_v28  ;;  %v2130_v60 = vsel %vm2123_vm10, %v2116_v20, %v2118_v35 }
 0x10f   : > { %v2155_v62 = vand.u32 %v2130_v60, %v3116_v28 }
 0x110   : > { %2840 = vmatmul.mubr.msk.bf16.vlgmr.msra.gmra.mrb[60].mxu1 %vm253_vm3, %v2838_v31 }
 0x111   : > { %2012 = vmatpush1.bf16.msra.mxu1 %v1880_v34  ;;  %2043 = vmatprep.mubr.bf16.mxu1 %v2971_v14  ;;  %v2120_v40 = vpop.permute.xlu0 %2119 }
 0x112   : > { %2163 = vmatprep.subr.bf16.mxu1 %v2140_v37  ;;  %v2122_v43 = vpop.permute.xlu1 %2121  ;;  %v2131_v50 = vsel %vm2123_vm10, %v2118_v35, %v2120_v40 }
 0x113   : > { %v2158_v55 = vand.u32 %v2131_v50, %v3116_v28  ;;  %v2132_v63 = vsel %vm2123_vm10, %v2120_v40, %v2122_v43 }
 0x114   : > { %2841 = vmatmul.mubr.msk.bf16.vlgmr.msra.gmra.mrb[64].mxu0 %vm253_vm3, %v2838_v31  ;;  %v2161_v4 = vand.u32 %v2132_v63, %v3116_v28 }
 0x115   : > { %2918 = vmatpush3.bf16.msra.mxu0 %v1886_v39  ;;  %2919 = vmatprep.mubr.msk.bf16.mxu0 %vm2980_vm4, %v2979_v52  ;;  %v2381_v46 = vpop.permute.xlu0 %2380 }
 0x116   : > { %2204 = vmatprep.subr.bf16.mxu0 %v2146_v42  ;;  %v2383_v49 = vpop.permute.xlu1 %2382 }
 0x117   : > { %v2400_v61 = vsel %vm2398_vm11, %v2381_v46, %v2383_v49 }
 0x118   : > { %2842 = vmatmul.mubr.msk.bf16.vlgmr.msra.gmra.mrb[64].mxu1 %vm253_vm3, %v2838_v31  ;;  %v2415_v0 = vand.u32 %v2400_v61, %v3116_v28 }
 0x119   : > { %2164 = vmatpush1.bf16.msra.mxu1 %v2137_v45  ;;  %2195 = vmatprep.mubr.bf16.mxu1 %v2971_v14  ;;  %v2379_v53 = vpop.permute.xlu0 %2378 }
 0x11a   : > { %2245 = vmatprep.subr.bf16.mxu1 %v2152_v48  ;;  %v2385_v56 = vpop.permute.xlu1 %2384  ;;  %v2399_v6 = vsel %vm2398_vm11, %v2379_v53, %v2381_v46 }
 0x11b   : > { %v2412_v13 = vand.u32 %v2399_v6, %v3116_v28  ;;  %v2401_v8 = vsel %vm2398_vm11, %v2383_v49, %v2385_v56 }
 0x11c   : > { %2920 = vmatmul.mubr.msk.bf16.vlgmr.msra.gmra.mrb[68].mxu0 %vm253_vm3, %v2838_v31  ;;  %v2418_v22 = vand.u32 %v2401_v8, %v3116_v28 }
 0x11d   : > { %2205 = vmatpush1.bf16.msra.mxu0 %v2143_v51  ;;  %2236 = vmatprep.mubr.bf16.mxu0 %v2971_v14  ;;  %v2387_v59 = vpop.permute.xlu0 %2386 }
 0x11e   : > { %2286 = vmatprep.subr.bf16.mxu0 %v2158_v55  ;;  %v2389_v2 = vpop.permute.xlu1 %2388  ;;  %v2402_v3 = vsel %vm2398_vm11, %v2385_v56, %v2387_v59 }
 0x11f   : > { %v2421_v7 = vand.u32 %v2402_v3, %v3116_v28  ;;  %v2403_v23 = vsel %vm2398_vm11, %v2387_v59, %v2389_v2 }
 0x120   : > { %2845 = vmatmul.mubr.msk.bf16.vlgmr.msra.gmra.mrb[68].mxu1 %vm253_vm3, %v2844_v58  ;;  %v2424_v16 = vand.u32 %v2403_v23, %v3116_v28 }
 0x121   : > { %2246 = vmatpush1.bf16.msra.mxu1 %v2149_v57  ;;  %2277 = vmatprep.mubr.bf16.mxu1 %v2971_v14  ;;  %v2391_v1 = vpop.permute.xlu0 %2390 }
 0x122   : > { %2923 = vmatprep.subr.bf16.mxu1 %v2979_v52  ;;  %v2404_v9 = vsel %vm2398_vm11, %v2389_v2, %v2391_v1  ;;  %v2393_v11 = vpop.permute.xlu1 %2392 }
 0x123   : > { %v2427_v15 = vand.u32 %v2404_v9, %v3116_v28  ;;  %v2405_v25 = vsel %vm2398_vm11, %v2391_v1, %v2393_v11 }
 0x124   : > { %2846 = vmatmul.mubr.msk.bf16.vlgmr.msra.gmra.mrb[72].mxu0 %vm253_vm3, %v2844_v58  ;;  %v2430_v27 = vand.u32 %v2405_v25, %v3116_v28 }
 0x125   : > { %2287 = vmatpush1.bf16.msra.mxu0 %v2155_v62  ;;  %2318 = vmatprep.mubr.bf16.mxu0 %v2971_v14  ;;  %v2395_v10 = vpop.permute.xlu0 %2394 }
 0x126   : > { %2438 = vmatprep.subr.bf16.mxu0 %v2415_v0  ;;  %v2406_v21 = vsel %vm2398_vm11, %v2393_v11, %v2395_v10  ;;  %v2397_v26 = vpop.permute.xlu1 %2396 }
 0x127   : > { %v2433_v12 = vand.u32 %v2406_v21, %v3116_v28  ;;  %v2407_v17 = vsel %vm2398_vm11, %v2395_v10, %v2397_v26 }
 0x128   : > { %2847 = vmatmul.mubr.msk.bf16.vlgmr.msra.gmra.mrb[72].mxu1 %vm253_vm3, %v2844_v58  ;;  %v2436_v18 = vand.u32 %v2407_v17, %v3116_v28 }
 0x129   : > { %2924 = vmatpush3.bf16.msra.mxu1 %v2161_v4  ;;  %2925 = vmatprep.mubr.msk.bf16.mxu1 %vm2980_vm4, %v2979_v52 }
 0x12a   : > { %2479 = vmatprep.subr.bf16.mxu1 %v2421_v7 }
 0x12c   : > { %2848 = vmatmul.mubr.msk.bf16.vlgmr.msra.gmra.mrb[76].mxu0 %vm253_vm3, %v2844_v58 }
 0x12d   : > { %2439 = vmatpush1.bf16.msra.mxu0 %v2412_v13  ;;  %2470 = vmatprep.mubr.bf16.mxu0 %v2971_v14 }
 0x12e   : > { %2520 = vmatprep.subr.bf16.mxu0 %v2427_v15 }
 0x130   : > { %2926 = vmatmul.mubr.msk.bf16.vlgmr.msra.gmra.mrb[76].mxu1 %vm253_vm3, %v2844_v58 }
 0x131   : > { %2480 = vmatpush1.bf16.msra.mxu1 %v2418_v22  ;;  %2511 = vmatprep.mubr.bf16.mxu1 %v2971_v14 }
 0x132   : > { %2561 = vmatprep.subr.bf16.mxu1 %v2433_v12 }
 0x134   : > { %2851 = vmatmul.mubr.msk.bf16.vlgmr.msra.gmra.mrb[80].mxu0 %vm253_vm3, %v2850_v24 }
 0x135   : > { %2521 = vmatpush1.bf16.msra.mxu0 %v2424_v16  ;;  %2552 = vmatprep.mubr.bf16.mxu0 %v2971_v14 }
 0x136   : > { %2929 = vmatprep.subr.bf16.mxu0 %v2979_v52 }
 0x138   : > { %2852 = vmatmul.mubr.msk.bf16.vlgmr.msra.gmra.mrb[80].mxu1 %vm253_vm3, %v2850_v24 }
 0x139   : > { %2562 = vmatpush1.bf16.msra.mxu1 %v2430_v27  ;;  %2593 = vmatprep.mubr.bf16.mxu1 %v2971_v14 }
 0x13c   : > { %2853 = vmatmul.mubr.msk.bf16.vlgmr.msra.gmra.mrb[84].mxu0 %vm253_vm3, %v2850_v24 }
 0x13d   : > { %2930 = vmatpush3.bf16.msra.mxu0 %v2436_v18  ;;  %2931 = vmatprep.mubr.msk.bf16.mxu0 %vm2980_vm4, %v2979_v52 }
 0x140   : > { %2854 = vmatmul.mubr.msk.bf16.vlgmr.msra.gmra.mrb[84].mxu1 %vm253_vm3, %v2850_v24 }
 0x144   : > { %2932 = vmatmul.mubr.msk.bf16.vlgmr.msra.gmra.mrb[88].mxu0 %vm253_vm3, %v2850_v24 }
 0x167   : > { %v322_v29 = vpop.f32.mrb[0].mxu0 }
 0x168   : > { %v324_v30 = vpop.f32.mrb[1].mxu0 }
 0x169   : > { %v326_v31 = vpop.f32.mrb[2].mxu0 }
 0x16a   : > { %v327_v32 = vpop.f32.mrb[3].mxu0 }
 0x16b   : > { %v363_v19 = vpop.f32.mrb[0].mxu1 }
 0x16c   : > { %v365_v33 = vpop.f32.mrb[1].mxu1 }
 0x16d   : > { %v367_v20 = vpop.f32.mrb[2].mxu1 }
 0x16e   : > { %v368_v28 = vpop.f32.mrb[3].mxu1 }
 0x16f   : > { %v404_v34 = vpop.f32.mrb[4].mxu0 }
 0x170   : > { %v406_v14 = vpop.f32.mrb[5].mxu0 }
 0x171   : > { %v408_v35 = vpop.f32.mrb[6].mxu0 }
 0x172   : > { %v409_v36 = vpop.f32.mrb[7].mxu0 }
 0x173   : > { %v445_v37 = vpop.f32.mrb[4].mxu1 }
 0x174   : > { %v447_v38 = vpop.f32.mrb[5].mxu1 }
 0x175   : > { %v449_v39 = vpop.f32.mrb[6].mxu1 }
 0x176   : > { %v450_v52 = vpop.f32.mrb[7].mxu1 }
 0x177   : > { %v486_v40 = vpop.f32.mrb[8].mxu0 }
 0x178   : > { %v2885_v41 = vpop.f32.mrb[9].mxu0 }
 0x179   : > { %v489_v42 = vpop.f32.mrb[10].mxu0 }
 0x17a   : > { %v2886_v43 = vpop.f32.mrb[11].mxu0 }
 0x17b   : > { %v556_v44 = vpop.f32.mrb[8].mxu1 }
 0x17c   : > { %v557_v45 = vadd.f32 %v556_v44, %v322_v29  ;;  %v558_v46 = vpop.f32.mrb[9].mxu1 }
 0x17d   : > { %v559_v47 = vadd.f32 %v558_v46, %v324_v30  ;;  %v560_v48 = vpop.f32.mrb[10].mxu1 }
 0x17e   : > { %v561_v49 = vpop.f32.mrb[11].mxu1 }
 0x17f   : > { %v597_v50 = vpop.f32.mrb[12].mxu0 }
 0x180   : > { %v598_v51 = vadd.f32 %v597_v50, %v363_v19  ;;  %v599_v53 = vpop.f32.mrb[13].mxu0 }
 0x181   : > { %v600_v54 = vadd.f32 %v599_v53, %v365_v33  ;;  %v601_v55 = vpop.f32.mrb[14].mxu0 }
 0x182   : > { %v602_v56 = vpop.f32.mrb[15].mxu0 }
 0x183   : > { %v638_v57 = vpop.f32.mrb[12].mxu1 }
 0x184   : > { %v639_v58 = vadd.f32 %v638_v57, %v404_v34  ;;  %v640_v59 = vpop.f32.mrb[13].mxu1 }
 0x185   : > { %v641_v60 = vadd.f32 %v640_v59, %v406_v14  ;;  %v642_v61 = vpop.f32.mrb[14].mxu1 }
 0x186   : > { %v643_v62 = vpop.f32.mrb[15].mxu1 }
 0x187   : > { %v679_v63 = vpop.f32.mrb[16].mxu0 }
 0x188   : > { %v680_v0 = vadd.f32 %v679_v63, %v445_v37  ;;  %v681_v1 = vpop.f32.mrb[17].mxu0 }
 0x189   : > { %v682_v2 = vadd.f32 %v681_v1, %v447_v38  ;;  %v683_v3 = vpop.f32.mrb[18].mxu0 }
 0x18a   : > { %v684_v4 = vpop.f32.mrb[19].mxu0 }
 0x18b   : > { %v720_v6 = vpop.f32.mrb[16].mxu1 }
 0x18c   : > { %v721_v7 = vadd.f32 %v720_v6, %v486_v40  ;;  %v2891_v9 = vpop.f32.mrb[17].mxu1 }
 0x18d   : > { %v723_v10 = vpop.f32.mrb[18].mxu1 }
 0x18e   : > { %v2892_v11 = vpop.f32.mrb[19].mxu1 }
 0x18f   : > { %v822_v13 = vpop.f32.mrb[20].mxu0 }
 0x190   : > { %v992_v8 = vadd.f32 %v822_v13, %v557_v45  ;;  %v824_v15 = vpop.f32.mrb[21].mxu0 }
 0x191   : > { %v993_v21 = vadd.f32 %v824_v15, %v559_v47  ;;  %v826_v22 = vpop.f32.mrb[22].mxu0 }
 0x192   : > { %v827_v23 = vpop.f32.mrb[23].mxu0 }
 0x193   : > { %v863_v12 = vpop.f32.mrb[20].mxu1 }
 0x194   : > { %v994_v16 = vadd.f32 %v863_v12, %v598_v51  ;;  %v865_v24 = vpop.f32.mrb[21].mxu1 }
 0x195   : > { %v995_v25 = vadd.f32 %v865_v24, %v600_v54  ;;  %v867_v26 = vpop.f32.mrb[22].mxu1 }
 0x196   : > { %v868_v27 = vpop.f32.mrb[23].mxu1 }
 0x197   : > { %v904_v17 = vpop.f32.mrb[24].mxu0 }
 0x198   : > { %v996_v18 = vadd.f32 %v904_v17, %v639_v58  ;;  %v906_v29 = vpop.f32.mrb[25].mxu0 }
 0x199   : > { %v997_v30 = vadd.f32 %v906_v29, %v641_v60  ;;  %v908_v31 = vpop.f32.mrb[26].mxu0 }
 0x19a   : > { %v909_v32 = vpop.f32.mrb[27].mxu0 }
 0x19b   : > { %v945_v19 = vpop.f32.mrb[24].mxu1 }
 0x19c   : > { %v998_v33 = vadd.f32 %v945_v19, %v680_v0  ;;  %v947_v20 = vpop.f32.mrb[25].mxu1 }
 0x19d   : > { %v999_v28 = vadd.f32 %v947_v20, %v682_v2  ;;  %v949_v34 = vpop.f32.mrb[26].mxu1 }
 0x19e   : > { %v950_v14 = vpop.f32.mrb[27].mxu1 }
 0x19f   : > { %v986_v35 = vpop.f32.mrb[28].mxu0 }
 0x1a0   : > { %v1000_v36 = vadd.f32 %v986_v35, %v721_v7  ;;  %v2897_v37 = vpop.f32.mrb[29].mxu0 }
 0x1a1   : > { %v989_v38 = vpop.f32.mrb[30].mxu0 }
 0x1a2   : > { %v2898_v39 = vpop.f32.mrb[31].mxu0 }
 0x1a3   : > { %v1097_v52 = vpop.f32.mrb[28].mxu1 }
 0x1a4   : > { %v1267_v40 = vadd.f32 %v1097_v52, %v992_v8  ;;  %v1099_v41 = vpop.f32.mrb[29].mxu1 }
 0x1a5   : > { %v1268_v42 = vadd.f32 %v1099_v41, %v993_v21  ;;  %v1101_v43 = vpop.f32.mrb[30].mxu1 }
 0x1a6   : > { %v1102_v44 = vpop.f32.mrb[31].mxu1 }
 0x1a7   : > { %v1138_v45 = vpop.f32.mrb[32].mxu0 }
 0x1a8   : > { %v1269_v46 = vadd.f32 %v1138_v45, %v994_v16  ;;  %v1140_v47 = vpop.f32.mrb[33].mxu0 }
 0x1a9   : > { %v1270_v48 = vadd.f32 %v1140_v47, %v995_v25  ;;  %v1142_v49 = vpop.f32.mrb[34].mxu0 }
 0x1aa   : > { %v1143_v50 = vpop.f32.mrb[35].mxu0 }
 0x1ab   : > { %v1179_v51 = vpop.f32.mrb[32].mxu1 }
 0x1ac   : > { %v1271_v53 = vadd.f32 %v1179_v51, %v996_v18  ;;  %v1181_v54 = vpop.f32.mrb[33].mxu1 }
 0x1ad   : > { %v1272_v55 = vadd.f32 %v1181_v54, %v997_v30  ;;  %v1183_v56 = vpop.f32.mrb[34].mxu1 }
 0x1ae   : > { %v1184_v57 = vpop.f32.mrb[35].mxu1 }
 0x1af   : > { %v1220_v58 = vpop.f32.mrb[36].mxu0 }
 0x1b0   : > { %v1273_v59 = vadd.f32 %v1220_v58, %v998_v33  ;;  %v1222_v60 = vpop.f32.mrb[37].mxu0 }
 0x1b1   : > { %v1274_v61 = vadd.f32 %v1222_v60, %v999_v28  ;;  %v1224_v62 = vpop.f32.mrb[38].mxu0 }
 0x1b2   : > { %v1225_v63 = vpop.f32.mrb[39].mxu0 }
 0x1b3   : > { %v1261_v0 = vpop.f32.mrb[36].mxu1 }
 0x1b4   : > { %v1275_v1 = vadd.f32 %v1261_v0, %v1000_v36  ;;  %v2903_v2 = vpop.f32.mrb[37].mxu1 }
 0x1b5   : > { %v1264_v3 = vpop.f32.mrb[38].mxu1 }
 0x1b6   : > { %v2904_v4 = vpop.f32.mrb[39].mxu1 }
 0x1b7   : > { %v1372_v6 = vpop.f32.mrb[40].mxu0 }
 0x1b8   : > { %v1542_v7 = vadd.f32 %v1372_v6, %v1267_v40  ;;  %v1374_v9 = vpop.f32.mrb[41].mxu0 }
 0x1b9   : > { %v1543_v10 = vadd.f32 %v1374_v9, %v1268_v42  ;;  %v1376_v11 = vpop.f32.mrb[42].mxu0 }
 0x1ba   : > { %v1377_v13 = vpop.f32.mrb[43].mxu0 }
 0x1bb   : > { %v1413_v8 = vpop.f32.mrb[40].mxu1 }
 0x1bc   : > { %v1544_v15 = vadd.f32 %v1413_v8, %v1269_v46  ;;  %v1415_v21 = vpop.f32.mrb[41].mxu1 }
 0x1bd   : > { %v1545_v22 = vadd.f32 %v1415_v21, %v1270_v48  ;;  %v1417_v23 = vpop.f32.mrb[42].mxu1 }
 0x1be   : > { %v1418_v12 = vpop.f32.mrb[43].mxu1 }
 0x1bf   : > { %v1454_v16 = vpop.f32.mrb[44].mxu0 }
 0x1c0   : > { %v1546_v24 = vadd.f32 %v1454_v16, %v1271_v53  ;;  %v1456_v25 = vpop.f32.mrb[45].mxu0 }
 0x1c1   : > { %v1547_v26 = vadd.f32 %v1456_v25, %v1272_v55  ;;  %v1458_v27 = vpop.f32.mrb[46].mxu0 }
 0x1c2   : > { %v1459_v17 = vpop.f32.mrb[47].mxu0 }
 0x1c3   : > { %v1495_v18 = vpop.f32.mrb[44].mxu1 }
 0x1c4   : > { %v1548_v29 = vadd.f32 %v1495_v18, %v1273_v59  ;;  %v1497_v30 = vpop.f32.mrb[45].mxu1 }
 0x1c5   : > { %v1549_v31 = vadd.f32 %v1497_v30, %v1274_v61  ;;  %v1499_v32 = vpop.f32.mrb[46].mxu1 }
 0x1c6   : > { %v1500_v19 = vpop.f32.mrb[47].mxu1 }
 0x1c7   : > { %v1536_v33 = vpop.f32.mrb[48].mxu0 }
 0x1c8   : > { %v1550_v20 = vadd.f32 %v1536_v33, %v1275_v1  ;;  %v2909_v28 = vpop.f32.mrb[49].mxu0 }
 0x1c9   : > { %v1539_v34 = vpop.f32.mrb[50].mxu0 }
 0x1ca   : > { %v2910_v14 = vpop.f32.mrb[51].mxu0 }
 0x1cb   : > { %v1647_v35 = vpop.f32.mrb[48].mxu1 }
 0x1cc   : > { %v1817_v36 = vadd.f32 %v1647_v35, %v1542_v7  ;;  %v1649_v37 = vpop.f32.mrb[49].mxu1 }
 0x1cd   : > { %v1818_v38 = vadd.f32 %v1649_v37, %v1543_v10  ;;  %v1651_v39 = vpop.f32.mrb[50].mxu1 }
 0x1ce   : > { %v1652_v52 = vpop.f32.mrb[51].mxu1 }
 0x1cf   : > { %v1688_v40 = vpop.f32.mrb[52].mxu0 }
 0x1d0   : > { %v1819_v41 = vadd.f32 %v1688_v40, %v1544_v15  ;;  %v1690_v42 = vpop.f32.mrb[53].mxu0 }
 0x1d1   : > { %v1820_v43 = vadd.f32 %v1690_v42, %v1545_v22  ;;  %v1692_v44 = vpop.f32.mrb[54].mxu0 }
 0x1d2   : > { %v1693_v45 = vpop.f32.mrb[55].mxu0 }
 0x1d3   : > { %v1729_v46 = vpop.f32.mrb[52].mxu1 }
 0x1d4   : > { %v1821_v47 = vadd.f32 %v1729_v46, %v1546_v24  ;;  %v1731_v48 = vpop.f32.mrb[53].mxu1 }
 0x1d5   : > { %v1822_v49 = vadd.f32 %v1731_v48, %v1547_v26  ;;  %v1733_v50 = vpop.f32.mrb[54].mxu1 }
 0x1d6   : > { %v1734_v51 = vpop.f32.mrb[55].mxu1 }
 0x1d7   : > { %v1770_v53 = vpop.f32.mrb[56].mxu0 }
 0x1d8   : > { %v1823_v54 = vadd.f32 %v1770_v53, %v1548_v29  ;;  %v1772_v55 = vpop.f32.mrb[57].mxu0 }
 0x1d9   : > { %v1824_v56 = vadd.f32 %v1772_v55, %v1549_v31  ;;  %v1774_v57 = vpop.f32.mrb[58].mxu0 }
 0x1da   : > { %v1775_v58 = vpop.f32.mrb[59].mxu0 }
 0x1db   : > { %v1811_v59 = vpop.f32.mrb[56].mxu1 }
 0x1dc   : > { %v1825_v60 = vadd.f32 %v1811_v59, %v1550_v20  ;;  %v2915_v61 = vpop.f32.mrb[57].mxu1 }
 0x1dd   : > { %v1814_v62 = vpop.f32.mrb[58].mxu1 }
 0x1de   : > { %v2916_v63 = vpop.f32.mrb[59].mxu1 }
 0x1df   : > { %v1922_v0 = vpop.f32.mrb[60].mxu0 }
 0x1e0   : > { %v2092_v1 = vadd.f32 %v1922_v0, %v1817_v36  ;;  %v1924_v2 = vpop.f32.mrb[61].mxu0 }
 0x1e1   : > { %v2093_v3 = vadd.f32 %v1924_v2, %v1818_v38  ;;  %v1926_v4 = vpop.f32.mrb[62].mxu0 }
 0x1e2   : > { %v1927_v6 = vpop.f32.mrb[63].mxu0 }
 0x1e3   : > { %v1963_v7 = vpop.f32.mrb[60].mxu1 }
 0x1e4   : > { %v2094_v9 = vadd.f32 %v1963_v7, %v1819_v41  ;;  %v1965_v10 = vpop.f32.mrb[61].mxu1 }
 0x1e5   : > { %v2095_v11 = vadd.f32 %v1965_v10, %v1820_v43  ;;  %v1967_v13 = vpop.f32.mrb[62].mxu1 }
 0x1e6   : > { %v1968_v8 = vpop.f32.mrb[63].mxu1 }
 0x1e7   : > { %v2004_v15 = vpop.f32.mrb[64].mxu0 }
 0x1e8   : > { %v2096_v21 = vadd.f32 %v2004_v15, %v1821_v47  ;;  %v2006_v22 = vpop.f32.mrb[65].mxu0 }
 0x1e9   : > { %v2097_v23 = vadd.f32 %v2006_v22, %v1822_v49  ;;  %v2008_v12 = vpop.f32.mrb[66].mxu0 }
 0x1ea   : > { %v2009_v16 = vpop.f32.mrb[67].mxu0 }
 0x1eb   : > { %v2045_v24 = vpop.f32.mrb[64].mxu1 }
 0x1ec   : > { %v2098_v25 = vadd.f32 %v2045_v24, %v1823_v54  ;;  %v2047_v26 = vpop.f32.mrb[65].mxu1 }
 0x1ed   : > { %v2099_v27 = vadd.f32 %v2047_v26, %v1824_v56  ;;  %v2049_v17 = vpop.f32.mrb[66].mxu1 }
 0x1ee   : > { %v2050_v18 = vpop.f32.mrb[67].mxu1 }
 0x1ef   : > { %v2086_v29 = vpop.f32.mrb[68].mxu0 }
 0x1f0   : > { %v2100_v30 = vadd.f32 %v2086_v29, %v1825_v60  ;;  %v2921_v31 = vpop.f32.mrb[69].mxu0  ;;  %v2655_v60 = vpop.permute.xlu0 %2654 }
 0x1f1   : > { %v2089_v32 = vpop.f32.mrb[70].mxu0 }
 0x1f2   : > { %v2922_v19 = vpop.f32.mrb[71].mxu0 }
 0x1f3   : > { %v2197_v33 = vpop.f32.mrb[68].mxu1 }
 0x1f4   : > { %v2367_v20 = vadd.f32 %v2197_v33, %v2092_v1  ;;  %v2199_v28 = vpop.f32.mrb[69].mxu1 }
 0x1f5   : > { %v2368_v34 = vadd.f32 %v2199_v28, %v2093_v3  ;;  %v2201_v14 = vpop.f32.mrb[70].mxu1 }
 0x1f6   : > { %v2202_v35 = vpop.f32.mrb[71].mxu1 }
 0x1f7   : > { %v2238_v36 = vpop.f32.mrb[72].mxu0 }
 0x1f8   : > { %v2369_v37 = vadd.f32 %v2238_v36, %v2094_v9  ;;  %v2240_v38 = vpop.f32.mrb[73].mxu0 }
 0x1f9   : > { %v2370_v39 = vadd.f32 %v2240_v38, %v2095_v11  ;;  %v2242_v52 = vpop.f32.mrb[74].mxu0 }
 0x1fa   : > { %v2243_v40 = vpop.f32.mrb[75].mxu0 }
 0x1fb   : > { %v2279_v41 = vpop.f32.mrb[72].mxu1 }
 0x1fc   : > { %v2371_v42 = vadd.f32 %v2279_v41, %v2096_v21  ;;  %v2281_v43 = vpop.f32.mrb[73].mxu1 }
 0x1fd   : > { %v2372_v44 = vadd.f32 %v2281_v43, %v2097_v23  ;;  %v2283_v45 = vpop.f32.mrb[74].mxu1 }
 0x1fe   : > { %v2284_v46 = vpop.f32.mrb[75].mxu1 }
 0x1ff   : > { %v2320_v47 = vpop.f32.mrb[76].mxu0 }
 0x200   : > { %v2373_v48 = vadd.f32 %v2320_v47, %v2098_v25  ;;  %v2322_v49 = vpop.f32.mrb[77].mxu0 }
 0x201   : > { %v2374_v50 = vadd.f32 %v2322_v49, %v2099_v27  ;;  %v2324_v51 = vpop.f32.mrb[78].mxu0 }
 0x202   : > { %v2325_v53 = vpop.f32.mrb[79].mxu0 }
 0x203   : > { %v2361_v54 = vpop.f32.mrb[76].mxu1 }
 0x204   : > { %v2375_v55 = vadd.f32 %v2361_v54, %v2100_v30  ;;  %v2927_v56 = vpop.f32.mrb[77].mxu1 }
 0x205   : > { %v2364_v57 = vpop.f32.mrb[78].mxu1 }
 0x206   : > { %v2928_v58 = vpop.f32.mrb[79].mxu1 }
 0x207   : > { %v2472_v59 = vpop.f32.mrb[80].mxu0 }
 0x208   : > { %v2642_v61 = vadd.f32 %v2472_v59, %v2367_v20  ;;  %v2474_v62 = vpop.f32.mrb[81].mxu0 }
 0x209   : > { %v2643_v63 = vadd.f32 %v2474_v62, %v2368_v34  ;;  %v2476_v0 = vpop.f32.mrb[82].mxu0 }
 0x20a   : > { %v2657_v1 = vadd.f32 %v2655_v60, %v2642_v61  ;;  %v2477_v2 = vpop.f32.mrb[83].mxu0 }
 0x20b   : > { %v2513_v3 = vpop.f32.mrb[80].mxu1  ;;  %v2658_v4 = vadd.f32 %v2655_v60, %v2643_v63 }
 0x20c   : > { %v2644_v6 = vadd.f32 %v2513_v3, %v2369_v37  ;;  %v2515_v7 = vpop.f32.mrb[81].mxu1  ;;  %v2666_v9 = vmax.f32 %v2657_v1, 0.0 }
 0x20d   : > { %v2645_v10 = vadd.f32 %v2515_v7, %v2370_v39  ;;  %v2667_v11 = vmax.f32 %v2658_v4, 0.0  ;;  %v2517_v13 = vpop.f32.mrb[82].mxu1 }
 0x20e   : > { %v2659_v8 = vadd.f32 %v2655_v60, %v2644_v6  ;;  %v2518_v15 = vpop.f32.mrb[83].mxu1 }
 0x20f   : > { %v2660_v21 = vadd.f32 %v2655_v60, %v2645_v10  ;;  %v2856_v22 = vpack.c.bf16 %v2667_v11, %v2666_v9  ;;  %v2554_v23 = vpop.f32.mrb[84].mxu0 }
 0x210   : > { %v2668_v12 = vmax.f32 %v2659_v8, 0.0  ;;  %v2646_v16 = vadd.f32 %v2554_v23, %v2371_v42  ;;  %v2556_v24 = vpop.f32.mrb[85].mxu0 }
 0x211   : > { %v2669_v25 = vmax.f32 %v2660_v21, 0.0  ;;  %v2647_v26 = vadd.f32 %v2556_v24, %v2372_v44  ;;  %v2558_v27 = vpop.f32.mrb[86].mxu0  ;;  %v2701_v20 = vrot.slane %v2856_v22, %v3013_v5 }
 0x212   : > { %v2661_v17 = vadd.f32 %v2655_v60, %v2646_v16  ;;  %v2559_v18 = vpop.f32.mrb[87].mxu0 }
 0x213   : > { %v2857_v29 = vpack.c.bf16 %v2669_v25, %v2668_v12  ;;  %v2662_v30 = vadd.f32 %v2655_v60, %v2647_v26  ;;  %v2595_v31 = vpop.f32.mrb[84].mxu1 }
 0x214   : > { %v2670_v32 = vmax.f32 %v2661_v17, 0.0  ;;  %v2648_v19 = vadd.f32 %v2595_v31, %v2373_v48  ;;  %v2597_v33 = vpop.f32.mrb[85].mxu1 }
 0x215   : > { %v2708_v28 = vrot.slane %v2857_v29, %v3013_v5  ;;  %v2671_v34 = vmax.f32 %v2662_v30, 0.0  ;;  %v2649_v14 = vadd.f32 %v2597_v33, %v2374_v50  ;;  %v2599_v35 = vpop.f32.mrb[86].mxu1 }
 0x216   : > { %v2663_v36 = vadd.f32 %v2655_v60, %v2648_v19  ;;  %v2600_v37 = vpop.f32.mrb[87].mxu1 }
 0x217   : > { %v2709_v38 = vcombine.low %v2701_v20, %v2708_v28  ;;  %v2858_v39 = vpack.c.bf16 %v2671_v34, %v2670_v32  ;;  %v2664_v52 = vadd.f32 %v2655_v60, %v2649_v14  ;;  %v2636_v40 = vpop.f32.mrb[88].mxu0 }
 0x218   : > { %v2672_v41 = vmax.f32 %v2663_v36, 0.0  ;;  %v2650_v42 = vadd.f32 %v2636_v40, %v2375_v55  ;;  %v2933_v43 = vpop.f32.mrb[89].mxu0 }
 0x219   : > { %v2673_v44 = vmax.f32 %v2664_v52, 0.0  ;;  %2737 = vst [vmem:[%s170_s24] sm:$0xff] %v2709_v38  ;;  %v2639_v45 = vpop.f32.mrb[90].mxu0  ;;  %v2718_v50 = vrot.slane %v2858_v39, %v3013_v5 }
 0x21a   : > { %v2665_v46 = vadd.f32 %v2655_v60, %v2650_v42  ;;  %v2934_v47 = vpop.f32.mrb[91].mxu0 }
 0x21b   : > { %v2859_v48 = vpack.c.bf16 %v2673_v44, %v2672_v41 }
 0x21c   : > { %v2674_v49 = vmax.f32 %v2665_v46, 0.0 }
 0x21d   : > { %v2725_v51 = vrot.slane %v2859_v48, %v3013_v5 }
 0x21e   : > { %v2683_v53 = vpack.c.bf16 %v2674_v49, %v2674_v49 }
 0x21f   : > { %v2726_v54 = vcombine.low %v2718_v50, %v2725_v51 }
 0x220   : > { %2860 = vst.sshfl [vmem:[%s170_s24 + $0x10] sm:$0x3 pattern:$0x76325410] %v2683_v53 }
 0x221   : > { %2738 = vst [vmem:[%s170_s24 + $0x8] sm:$0xff] %v2726_v54 }
 0x222 PF: > { %s13_s12 = sadd.s32 1, %s2967_s12  }
 0x223   : > { %p10_p4 = scmp.ge.s32.totalorder %s13_s12, 4  }
 0x225   :  { %12 = sbr.rel (!%p10_p4) target bundleno = 1 (0x1), region = 70 }

// kernel: conv_autoencoder_forward.8
= control target key start
LH: loop header
LB: loop body
LE: loop exit
PB: predicated region body
PF: predicated region fallthrough
CT: control target
= control target key end

     0   :  { %s1431_s12 = smov 0   ;;  %s1590_s0 = inlined_call_operand.vmem [shape: bf16[2,4,422], index: 0, kind: input, shape index: {}]   ;;  %s1591_s1 = inlined_call_operand.vmem [shape: bf16[9,8,4], index: 1, kind: input, shape index: {}]   ;;  %s1592_s2 = inlined_call_operand.vmem [shape: f32[8,1], index: 2, kind: input, shape index: {}]   ;;  %s1593_s3 = inlined_call_operand.vmem [shape: bf16[2,8,384], index: 3, kind: output, shape index: {}]  }
   0x1 LB: > { %s1246_s13 = sadd.s32 4294967295, %s1397_s12   ;;  %p1250_p0 = scmp.ge.s32.totalorder %s1397_s12, 1  ;;  %s1397_s12 = sphi %s1431_s12, %s13_s12  }
   0x2   : > { %p137_p1 = scmp.lt.s32.totalorder %s1397_s12, 3 }
   0x4   : > { %p138_p2 = pnand %p1250_p0, %p137_p1 }
   0x5   : > { %p161_p3 = scmp.lt.s32.totalorder (!%p138_p2), %s1246_s13, 1  ;;  %v181_v0 = vlaneseq (!%p138_p2)  ;;  %v1399_v1 = vmov (!%p138_p2), 1983009808   ;;  %v1400_v5 = vmov (!%p138_p2), 0.0   ;;  %v1401_v6 = vmov (!%p138_p2), 0   ;;  %s1403_s18 = smov (!%p138_p2), 127  }
   0x6   : > { %141 = sbr.rel (%p138_p2) target bundleno = 430 (0x1ae), region = 32  ;;  %v179_v2 = vunpack.c.l.s4 (!%p138_p2), %v1399_v1  ;;  %1314 = vmatprep.subr.bf16.mxu1 (!%p138_p2), %v1400_v5  ;;  %252 = vmatprep.mubr.bf16.mxu0 (!%p138_p2), %v1401_v6  ;;  %vm1402_vm0 = vmmov (!%p138_p2), 0   ;;  %s1404_s19 = smov (!%p138_p2), 126   ;;  %v1164_v14 = vld [vmem:[%s1592_s2] sm:$0xff] (!%p138_p2)  ;;  %vm202_vm1 = vcmask (!%p138_p2), 1039360   ;;  %vm210_vm2 = vcmask (!%p138_p2), 1041408  }
   0x7   : > { %v182_v3 = vshrl.u32 (!%p138_p2), %v181_v0, 7  ;;  %1389 = vset.pattern.permute.xlu0 (!%p138_p2), %v1401_v6  ;;  %1316 = vmatprep.mubr.msk.bf16.mxu1 (!%p138_p2), %vm1402_vm0, %v1400_v5  ;;  %s1405_s20 = smov (!%p138_p2), 110   ;;  %s1406_s21 = smov (!%p138_p2), 109   ;;  %v1254_v23 = vld [vmem:[%s1591_s1 + $0x4] sm:$0xf] (!%p138_p2)  ;;  %vm206_vm3 = vcmask (!%p138_p2), 31744  }
   0x8   : > { %v180_v4 = vunpack.c.0.s8 (!%p138_p2), %v179_v2  ;;  %s1407_s22 = smov (!%p138_p2), 108   ;;  %s1408_s23 = smov (!%p138_p2), 92   ;;  %vm404_vm4 = vcmask (!%p138_p2), 1031168   ;;  %v173_v34 = vld [vmem:[%s1591_s1] sm:$0xf] (!%p138_p2)  ;;  %vm514_vm5 = vcmask (!%p138_p2), 900096  }
   0x9   : > { %s1409_s24 = smov (!%p138_p2), 91   ;;  %s1410_s25 = smov (!%p138_p2), 90   ;;  %v1261_v44 = vld [vmem:[%s1591_s1 + $0x8] sm:$0xf] (!%p138_p2)  ;;  %vm624_vm6 = vcmask (!%p138_p2), 891904   ;;  %vm734_vm7 = vcmask (!%p138_p2), 883712  }
   0xa   : > { %v183_v7 = vsub.s32 (!%p138_p2), %v180_v4, %v182_v3  ;;  %v1265_v54 = vld [vmem:[%s1591_s1 + $0xc] sm:$0xf] (!%p138_p2)  ;;  %v1269_v0 = vld [vmem:[%s1591_s1 + $0x10] sm:$0xf] (!%p138_p2)  ;;  %vm844_vm8 = vcmask (!%p138_p2), 752640   ;;  %vm954_vm9 = vcmask (!%p138_p2), 744448  }
   0xb   : > { %vm1064_vm10 = vcmask (!%p138_p2), 736256  }
   0xd   : > { %s1595_s13 = smov (!%p161_p3, %s1246_s13), 1 }
   0xe   : > { %s1293_s14 = sshll.u32 %s1595_s13, 3 }
   0xf   : > { %s165_s17 = scalar_lea.vmem %s1590_s0, %s1293_s14 }
  0x10   : > { %v172_v8 = vld [vmem:[%s165_s17] sm:$0xff] }
  0x11   : > { %v1450_v9 = vrot.slane %v172_v8, %v183_v7  ;;  %v177_v10 = vcombine.high %v172_v8, %v172_v8 }
  0x13   : > { %194 = vrot.lane.b32.xlu0 %v1450_v9, %s1403_s18  ;;  %v1453_v11 = vrot.slane %v177_v10, %v183_v7  ;;  %v192_v12 = vcombine.high %v1450_v9, %v1450_v9  ;;  %v305_v26 = vsel %vm210_vm2, %v1450_v9, 0 }
  0x15   : > { %198 = vrot.lane.b32.xlu1 %v1453_v11, %s1403_s18  ;;  %v193_v13 = vcombine.high %v1453_v11, %v1453_v11  ;;  %v311_v27 = vsel %vm210_vm2, %v1453_v11, 0 }
  0x17   : > { %196 = vrot.lane.b32.xlu0 %v192_v12, %s1403_s18 }
  0x19   : > { %200 = vrot.lane.b32.xlu1 %v193_v13, %s1403_s18 }
  0x1b   : > { %396 = vrot.lane.b32.xlu0 %v1450_v9, %s1404_s19 }
  0x1d   : > { %398 = vrot.lane.b32.xlu1 %v192_v12, %s1404_s19 }
  0x1f   : > { %400 = vrot.lane.b32.xlu0 %v1453_v11, %s1404_s19 }
  0x21   : > { %402 = vrot.lane.b32.xlu1 %v193_v13, %s1404_s19 }
  0x23   : > { %506 = vrot.lane.b32.xlu0 %v1450_v9, %s1405_s20 }
  0x25   : > { %508 = vrot.lane.b32.xlu1 %v192_v12, %s1405_s20 }
  0x27   : > { %510 = vrot.lane.b32.xlu0 %v1453_v11, %s1405_s20 }
  0x29   : > { %512 = vrot.lane.b32.xlu1 %v193_v13, %s1405_s20 }
  0x2b   : > { %616 = vrot.lane.b32.xlu0 %v1450_v9, %s1406_s21 }
  0x2d   : > { %618 = vrot.lane.b32.xlu1 %v192_v12, %s1406_s21 }
  0x2f   : > { %620 = vrot.lane.b32.xlu0 %v1453_v11, %s1406_s21 }
  0x31   : > { %622 = vrot.lane.b32.xlu1 %v193_v13, %s1406_s21  ;;  %s1368_s21 = smul.u32 12, %s1595_s13 }
  0x33   : > { %726 = vrot.lane.b32.xlu0 %v1450_v9, %s1407_s22 }
  0x35   : > { %728 = vrot.lane.b32.xlu1 %v192_v12, %s1407_s22 }
  0x37   : > { %730 = vrot.lane.b32.xlu0 %v1453_v11, %s1407_s22 }
  0x39   : > { %732 = vrot.lane.b32.xlu1 %v193_v13, %s1407_s22 }
  0x3b   : > { %836 = vrot.lane.b32.xlu0 %v1450_v9, %s1408_s23 }
  0x3d   : > { %838 = vrot.lane.b32.xlu1 %v192_v12, %s1408_s23 }
  0x3f   : > { %840 = vrot.lane.b32.xlu0 %v1453_v11, %s1408_s23 }
  0x41   : > { %842 = vrot.lane.b32.xlu1 %v193_v13, %s1408_s23 }
  0x43   : > { %946 = vrot.lane.b32.xlu0 %v1450_v9, %s1409_s24 }
  0x45   : > { %948 = vrot.lane.b32.xlu1 %v192_v12, %s1409_s24 }
  0x47   : > { %950 = vrot.lane.b32.xlu0 %v1453_v11, %s1409_s24 }
  0x49   : > { %952 = vrot.lane.b32.xlu1 %v193_v13, %s1409_s24  ;;  %s170_s24 = scalar_lea.vmem %s1593_s3, %s1368_s21 }
  0x4b   : > { %1056 = vrot.lane.b32.xlu0 %v1450_v9, %s1410_s25 }
  0x4d   : > { %1058 = vrot.lane.b32.xlu1 %v192_v12, %s1410_s25 }
  0x4f   : > { %1060 = vrot.lane.b32.xlu0 %v1453_v11, %s1410_s25 }
  0x51   : > { %1062 = vrot.lane.b32.xlu1 %v193_v13, %s1410_s25 }
  0x53   : > { %1167 = vperm.xlu0 %1389, %v1164_v14  }
  0x85   : > { %v195_v15 = vpop.permute.xlu0 %194 }
  0x87   : > { %v199_v16 = vpop.permute.xlu1 %198 }
  0x89   : > { %v197_v17 = vpop.permute.xlu0 %196 }
  0x8a   : > { %v204_v18 = vsel %vm202_vm1, %v197_v17, %v199_v16  ;;  %v203_v19 = vsel %vm202_vm1, %v195_v15, %v197_v17 }
  0x8b   : > { %1255 = vmatprep.subr.msk.bf16.mxu0 %vm210_vm2, %v204_v18  ;;  %v201_v20 = vpop.permute.xlu1 %200  ;;  %v212_v21 = vsel %vm210_vm2, %v203_v19, 0 }
  0x8c   : > { %221 = vmatpush1.bf16.msra.mxu0 %v212_v21  ;;  %v205_v22 = vsel %vm202_vm1, %v199_v16, %v201_v20 }
  0x8d   : > { %v218_v24 = vsel %vm210_vm2, %v205_v22, 0  ;;  %v397_v25 = vpop.permute.xlu0 %396  ;;  %1258 = vmatprep.subr.msk.bf16.mxu0 %vm210_vm2, %v192_v12  ;;  %v1273_v12 = vld [vmem:[%s1591_s1 + $0x14] sm:$0xf]  ;;  %v1277_v22 = vld [vmem:[%s1591_s1 + $0x18] sm:$0xf] }
  0x8e   : > { %1315 = vmatpush3.bf16.msra.mxu1 %v218_v24 }
  0x8f   : > { %1256 = vmatmul.mubr.msk.bf16.vlgmr.msra.gmra.mrb[0].mxu0 %vm206_vm3, %v1254_v23  ;;  %1320 = vmatprep.subr.bf16.mxu1 %v1400_v5  ;;  %v399_v28 = vpop.permute.xlu1 %398 }
  0x90   : > { %314 = vmatpush1.bf16.msra.mxu0 %v305_v26  ;;  %345 = vmatprep.mubr.bf16.mxu0 %v1401_v6  ;;  %v405_v30 = vsel %vm404_vm4, %v397_v25, %v399_v28 }
  0x91   : > { %1317 = vmatmul.mubr.msk.bf16.vlgmr.msra.gmra.mrb[0].mxu1 %vm206_vm3, %v1254_v23  ;;  %v401_v29 = vpop.permute.xlu0 %400  ;;  %v412_v35 = vsel %vm210_vm2, %v405_v30, 0 }
  0x92   : > { %1321 = vmatpush3.bf16.msra.mxu1 %v311_v27  ;;  %v406_v31 = vsel %vm404_vm4, %v399_v28, %v401_v29  ;;  %1322 = vmatprep.mubr.msk.bf16.mxu1 %vm1402_vm0, %v1400_v5 }
  0x93   : > { %1262 = vmatprep.subr.msk.bf16.mxu0 %vm210_vm2, %v406_v31  ;;  %v403_v32 = vpop.permute.xlu1 %402  ;;  %1326 = vmatprep.subr.bf16.mxu1 %v1400_v5 }
  0x94   : > { %v407_v33 = vsel %vm404_vm4, %v401_v29, %v403_v32  ;;  %v1281_v32 = vld [vmem:[%s1591_s1 + $0x1c] sm:$0xf] }
  0x95   : > { %v507_v36 = vpop.permute.xlu0 %506  ;;  %v418_v37 = vsel %vm210_vm2, %v407_v33, 0 }
  0x97   : > { %1259 = vmatmul.mubr.msk.bf16.vlgmr.msra.gmra.mrb[4].mxu0 %vm206_vm3, %v173_v34  ;;  %v509_v38 = vpop.permute.xlu1 %508 }
  0x98   : > { %421 = vmatpush1.bf16.msra.mxu0 %v412_v35  ;;  %452 = vmatprep.mubr.bf16.mxu0 %v1401_v6  ;;  %v515_v40 = vsel %vm514_vm5, %v507_v36, %v509_v38  ;;  %v1285_v35 = vld [vmem:[%s1591_s1 + $0x20] sm:$0xf] }
  0x99   : > { %1323 = vmatmul.mubr.msk.bf16.vlgmr.msra.gmra.mrb[4].mxu1 %vm206_vm3, %v173_v34  ;;  %v511_v39 = vpop.permute.xlu0 %510  ;;  %v522_v45 = vsel %vm210_vm2, %v515_v40, 0 }
  0x9a   : > { %1327 = vmatpush3.bf16.msra.mxu1 %v418_v37  ;;  %v516_v41 = vsel %vm514_vm5, %v509_v38, %v511_v39  ;;  %1328 = vmatprep.mubr.msk.bf16.mxu1 %vm1402_vm0, %v1400_v5 }
  0x9b   : > { %1266 = vmatprep.subr.msk.bf16.mxu0 %vm210_vm2, %v516_v41  ;;  %v513_v42 = vpop.permute.xlu1 %512  ;;  %1332 = vmatprep.subr.bf16.mxu1 %v1400_v5 }
  0x9c   : > { %v517_v43 = vsel %vm514_vm5, %v511_v39, %v513_v42 }
  0x9d   : > { %v617_v46 = vpop.permute.xlu0 %616  ;;  %v528_v47 = vsel %vm210_vm2, %v517_v43, 0 }
  0x9f   : > { %1263 = vmatmul.mubr.msk.bf16.vlgmr.msra.gmra.mrb[8].mxu0 %vm206_vm3, %v1261_v44  ;;  %v619_v48 = vpop.permute.xlu1 %618 }
  0xa0   : > { %531 = vmatpush1.bf16.msra.mxu0 %v522_v45  ;;  %562 = vmatprep.mubr.bf16.mxu0 %v1401_v6  ;;  %v625_v50 = vsel %vm624_vm6, %v617_v46, %v619_v48 }
  0xa1   : > { %1329 = vmatmul.mubr.msk.bf16.vlgmr.msra.gmra.mrb[8].mxu1 %vm206_vm3, %v1261_v44  ;;  %v621_v49 = vpop.permute.xlu0 %620  ;;  %v632_v55 = vsel %vm210_vm2, %v625_v50, 0 }
  0xa2   : > { %1333 = vmatpush3.bf16.msra.mxu1 %v528_v47  ;;  %v626_v51 = vsel %vm624_vm6, %v619_v48, %v621_v49  ;;  %1334 = vmatprep.mubr.msk.bf16.mxu1 %vm1402_vm0, %v1400_v5 }
  0xa3   : > { %1270 = vmatprep.subr.msk.bf16.mxu0 %vm210_vm2, %v626_v51  ;;  %v623_v52 = vpop.permute.xlu1 %622  ;;  %1338 = vmatprep.subr.bf16.mxu1 %v1400_v5 }
  0xa4   : > { %v627_v53 = vsel %vm624_vm6, %v621_v49, %v623_v52 }
  0xa5   : > { %v727_v56 = vpop.permute.xlu0 %726  ;;  %v638_v57 = vsel %vm210_vm2, %v627_v53, 0 }
  0xa7   : > { %1267 = vmatmul.mubr.msk.bf16.vlgmr.msra.gmra.mrb[12].mxu0 %vm206_vm3, %v1265_v54  ;;  %v729_v58 = vpop.permute.xlu1 %728 }
  0xa8   : > { %641 = vmatpush1.bf16.msra.mxu0 %v632_v55  ;;  %672 = vmatprep.mubr.bf16.mxu0 %v1401_v6  ;;  %v735_v60 = vsel %vm734_vm7, %v727_v56, %v729_v58 }
  0xa9   : > { %1335 = vmatmul.mubr.msk.bf16.vlgmr.msra.gmra.mrb[12].mxu1 %vm206_vm3, %v1265_v54  ;;  %v731_v59 = vpop.permute.xlu0 %730  ;;  %v742_v1 = vsel %vm210_vm2, %v735_v60, 0 }
  0xaa   : > { %1339 = vmatpush3.bf16.msra.mxu1 %v638_v57  ;;  %v736_v61 = vsel %vm734_vm7, %v729_v58, %v731_v59  ;;  %1340 = vmatprep.mubr.msk.bf16.mxu1 %vm1402_vm0, %v1400_v5 }
  0xab   : > { %1274 = vmatprep.subr.msk.bf16.mxu0 %vm210_vm2, %v736_v61  ;;  %v733_v62 = vpop.permute.xlu1 %732  ;;  %1344 = vmatprep.subr.bf16.mxu1 %v1400_v5 }
  0xac   : > { %v737_v63 = vsel %vm734_vm7, %v731_v59, %v733_v62 }
  0xad   : > { %v837_v2 = vpop.permute.xlu0 %836  ;;  %v748_v3 = vsel %vm210_vm2, %v737_v63, 0 }
  0xaf   : > { %1271 = vmatmul.mubr.msk.bf16.vlgmr.msra.gmra.mrb[16].mxu0 %vm206_vm3, %v1269_v0  ;;  %v839_v4 = vpop.permute.xlu1 %838 }
  0xb0   : > { %751 = vmatpush1.bf16.msra.mxu0 %v742_v1  ;;  %782 = vmatprep.mubr.bf16.mxu0 %v1401_v6  ;;  %v845_v8 = vsel %vm844_vm8, %v837_v2, %v839_v4 }
  0xb1   : > { %1341 = vmatmul.mubr.msk.bf16.vlgmr.msra.gmra.mrb[16].mxu1 %vm206_vm3, %v1269_v0  ;;  %v841_v7 = vpop.permute.xlu0 %840  ;;  %v852_v13 = vsel %vm210_vm2, %v845_v8, 0 }
  0xb2   : > { %1345 = vmatpush3.bf16.msra.mxu1 %v748_v3  ;;  %v846_v9 = vsel %vm844_vm8, %v839_v4, %v841_v7  ;;  %1346 = vmatprep.mubr.msk.bf16.mxu1 %vm1402_vm0, %v1400_v5 }
  0xb3   : > { %1278 = vmatprep.subr.msk.bf16.mxu0 %vm210_vm2, %v846_v9  ;;  %v843_v10 = vpop.permute.xlu1 %842  ;;  %1350 = vmatprep.subr.bf16.mxu1 %v1400_v5 }
  0xb4   : > { %v847_v11 = vsel %vm844_vm8, %v841_v7, %v843_v10 }
  0xb5   : > { %v947_v14 = vpop.permute.xlu0 %946  ;;  %v858_v15 = vsel %vm210_vm2, %v847_v11, 0 }
  0xb7   : > { %1275 = vmatmul.mubr.msk.bf16.vlgmr.msra.gmra.mrb[20].mxu0 %vm206_vm3, %v1273_v12  ;;  %v949_v16 = vpop.permute.xlu1 %948 }
  0xb8   : > { %861 = vmatpush1.bf16.msra.mxu0 %v852_v13  ;;  %892 = vmatprep.mubr.bf16.mxu0 %v1401_v6  ;;  %v955_v18 = vsel %vm954_vm9, %v947_v14, %v949_v16 }
  0xb9   : > { %1347 = vmatmul.mubr.msk.bf16.vlgmr.msra.gmra.mrb[20].mxu1 %vm206_vm3, %v1273_v12  ;;  %v951_v17 = vpop.permute.xlu0 %950  ;;  %v962_v23 = vsel %vm210_vm2, %v955_v18, 0 }
  0xba   : > { %1351 = vmatpush3.bf16.msra.mxu1 %v858_v15  ;;  %v956_v19 = vsel %vm954_vm9, %v949_v16, %v951_v17  ;;  %1352 = vmatprep.mubr.msk.bf16.mxu1 %vm1402_vm0, %v1400_v5 }
  0xbb   : > { %1282 = vmatprep.subr.msk.bf16.mxu0 %vm210_vm2, %v956_v19  ;;  %v953_v20 = vpop.permute.xlu1 %952  ;;  %1356 = vmatprep.subr.bf16.mxu1 %v1400_v5 }
  0xbc   : > { %v957_v21 = vsel %vm954_vm9, %v951_v17, %v953_v20 }
  0xbd   : > { %v1057_v24 = vpop.permute.xlu0 %1056  ;;  %v968_v25 = vsel %vm210_vm2, %v957_v21, 0 }
  0xbf   : > { %1279 = vmatmul.mubr.msk.bf16.vlgmr.msra.gmra.mrb[24].mxu0 %vm206_vm3, %v1277_v22  ;;  %v1059_v26 = vpop.permute.xlu1 %1058 }
  0xc0   : > { %971 = vmatpush1.bf16.msra.mxu0 %v962_v23  ;;  %1002 = vmatprep.mubr.bf16.mxu0 %v1401_v6  ;;  %v1065_v28 = vsel %vm1064_vm10, %v1057_v24, %v1059_v26 }
  0xc1   : > { %1353 = vmatmul.mubr.msk.bf16.vlgmr.msra.gmra.mrb[24].mxu1 %vm206_vm3, %v1277_v22  ;;  %v1061_v27 = vpop.permute.xlu0 %1060  ;;  %v1072_v33 = vsel %vm210_vm2, %v1065_v28, 0 }
  0xc2   : > { %1357 = vmatpush3.bf16.msra.mxu1 %v968_v25  ;;  %v1066_v29 = vsel %vm1064_vm10, %v1059_v26, %v1061_v27  ;;  %1358 = vmatprep.mubr.msk.bf16.mxu1 %vm1402_vm0, %v1400_v5 }
  0xc3   : > { %1286 = vmatprep.subr.msk.bf16.mxu0 %vm210_vm2, %v1066_v29  ;;  %v1063_v30 = vpop.permute.xlu1 %1062  ;;  %1362 = vmatprep.subr.bf16.mxu1 %v1400_v5 }
  0xc4   : > { %v1067_v31 = vsel %vm1064_vm10, %v1061_v27, %v1063_v30 }
  0xc5   : > { %v1078_v34 = vsel %vm210_vm2, %v1067_v31, 0 }
  0xc7   : > { %1283 = vmatmul.mubr.msk.bf16.vlgmr.msra.gmra.mrb[28].mxu0 %vm206_vm3, %v1281_v32 }
  0xc8   : > { %1081 = vmatpush1.bf16.msra.mxu0 %v1072_v33  ;;  %1112 = vmatprep.mubr.bf16.mxu0 %v1401_v6 }
  0xc9   : > { %1359 = vmatmul.mubr.msk.bf16.vlgmr.msra.gmra.mrb[28].mxu1 %vm206_vm3, %v1281_v32 }
  0xca   : > { %1363 = vmatpush3.bf16.msra.mxu1 %v1078_v34  ;;  %1364 = vmatprep.mubr.msk.bf16.mxu1 %vm1402_vm0, %v1400_v5 }
  0xcf   : > { %1287 = vmatmul.mubr.msk.bf16.vlgmr.msra.gmra.mrb[32].mxu0 %vm206_vm3, %v1285_v35 }
  0xd1   : > { %1365 = vmatmul.mubr.msk.bf16.vlgmr.msra.gmra.mrb[32].mxu1 %vm206_vm3, %v1285_v35 }
 0x162   : > { %v254_v36 = vpop.f32.mrb[0].mxu0 }
 0x163   : > { %v256_v37 = vpop.f32.mrb[1].mxu0 }
 0x164   : > { %v258_v38 = vpop.f32.mrb[2].mxu0  ;;  %v295_v39 = vpop.f32.mrb[0].mxu1 }
 0x165   : > { %v259_v40 = vpop.f32.mrb[3].mxu0  ;;  %v1318_v6 = vpop.f32.mrb[1].mxu1 }
 0x166   : > { %v298_v41 = vpop.f32.mrb[2].mxu1 }
 0x167   : > { %v1319_v42 = vpop.f32.mrb[3].mxu1 }
 0x16a   : > { %v347_v43 = vpop.f32.mrb[4].mxu0 }
 0x16b   : > { %v348_v44 = vadd.f32 %v347_v43, %v254_v36  ;;  %v349_v45 = vpop.f32.mrb[5].mxu0 }
 0x16c   : > { %v350_v5 = vadd.f32 %v349_v45, %v256_v37  ;;  %v351_v46 = vpop.f32.mrb[6].mxu0  ;;  %v388_v47 = vpop.f32.mrb[4].mxu1 }
 0x16d   : > { %v389_v48 = vadd.f32 %v388_v47, %v295_v39  ;;  %v352_v49 = vpop.f32.mrb[7].mxu0  ;;  %v1324_v50 = vpop.f32.mrb[5].mxu1 }
 0x16e   : > { %v391_v51 = vpop.f32.mrb[6].mxu1 }
 0x16f   : > { %v1325_v52 = vpop.f32.mrb[7].mxu1 }
 0x172   : > { %v454_v53 = vpop.f32.mrb[8].mxu0 }
 0x173   : > { %v501_v54 = vadd.f32 %v454_v53, %v348_v44  ;;  %v456_v55 = vpop.f32.mrb[9].mxu0 }
 0x174   : > { %v502_v56 = vadd.f32 %v456_v55, %v350_v5  ;;  %v458_v57 = vpop.f32.mrb[10].mxu0  ;;  %v495_v58 = vpop.f32.mrb[8].mxu1 }
 0x175   : > { %v503_v59 = vadd.f32 %v495_v58, %v389_v48  ;;  %v459_v60 = vpop.f32.mrb[11].mxu0  ;;  %v1330_v61 = vpop.f32.mrb[9].mxu1 }
 0x176   : > { %v498_v62 = vpop.f32.mrb[10].mxu1 }
 0x177   : > { %v1331_v63 = vpop.f32.mrb[11].mxu1 }
 0x17a   : > { %v564_v0 = vpop.f32.mrb[12].mxu0 }
 0x17b   : > { %v611_v1 = vadd.f32 %v564_v0, %v501_v54  ;;  %v566_v2 = vpop.f32.mrb[13].mxu0 }
 0x17c   : > { %v612_v3 = vadd.f32 %v566_v2, %v502_v56  ;;  %v568_v4 = vpop.f32.mrb[14].mxu0  ;;  %v605_v7 = vpop.f32.mrb[12].mxu1 }
 0x17d   : > { %v613_v8 = vadd.f32 %v605_v7, %v503_v59  ;;  %v569_v9 = vpop.f32.mrb[15].mxu0  ;;  %v1336_v10 = vpop.f32.mrb[13].mxu1 }
 0x17e   : > { %v608_v11 = vpop.f32.mrb[14].mxu1  ;;  %v1168_v56 = vpop.permute.xlu0 %1167 }
 0x17f   : > { %v1337_v12 = vpop.f32.mrb[15].mxu1 }
 0x182   : > { %v674_v13 = vpop.f32.mrb[16].mxu0 }
 0x183   : > { %v721_v14 = vadd.f32 %v674_v13, %v611_v1  ;;  %v676_v15 = vpop.f32.mrb[17].mxu0 }
 0x184   : > { %v722_v16 = vadd.f32 %v676_v15, %v612_v3  ;;  %v678_v17 = vpop.f32.mrb[18].mxu0  ;;  %v715_v18 = vpop.f32.mrb[16].mxu1 }
 0x185   : > { %v723_v19 = vadd.f32 %v715_v18, %v613_v8  ;;  %v679_v20 = vpop.f32.mrb[19].mxu0  ;;  %v1342_v21 = vpop.f32.mrb[17].mxu1 }
 0x186   : > { %v718_v22 = vpop.f32.mrb[18].mxu1 }
 0x187   : > { %v1343_v23 = vpop.f32.mrb[19].mxu1 }
 0x18a   : > { %v784_v24 = vpop.f32.mrb[20].mxu0 }
 0x18b   : > { %v831_v25 = vadd.f32 %v784_v24, %v721_v14  ;;  %v786_v26 = vpop.f32.mrb[21].mxu0 }
 0x18c   : > { %v832_v27 = vadd.f32 %v786_v26, %v722_v16  ;;  %v788_v28 = vpop.f32.mrb[22].mxu0  ;;  %v825_v29 = vpop.f32.mrb[20].mxu1 }
 0x18d   : > { %v833_v30 = vadd.f32 %v825_v29, %v723_v19  ;;  %v789_v31 = vpop.f32.mrb[23].mxu0  ;;  %v1348_v32 = vpop.f32.mrb[21].mxu1 }
 0x18e   : > { %v828_v33 = vpop.f32.mrb[22].mxu1 }
 0x18f   : > { %v1349_v34 = vpop.f32.mrb[23].mxu1 }
 0x192   : > { %v894_v35 = vpop.f32.mrb[24].mxu0 }
 0x193   : > { %v941_v36 = vadd.f32 %v894_v35, %v831_v25  ;;  %v896_v37 = vpop.f32.mrb[25].mxu0 }
 0x194   : > { %v942_v38 = vadd.f32 %v896_v37, %v832_v27  ;;  %v898_v39 = vpop.f32.mrb[26].mxu0  ;;  %v935_v40 = vpop.f32.mrb[24].mxu1 }
 0x195   : > { %v943_v6 = vadd.f32 %v935_v40, %v833_v30  ;;  %v899_v41 = vpop.f32.mrb[27].mxu0  ;;  %v1354_v42 = vpop.f32.mrb[25].mxu1 }
 0x196   : > { %v938_v43 = vpop.f32.mrb[26].mxu1 }
 0x197   : > { %v1355_v44 = vpop.f32.mrb[27].mxu1 }
 0x19a   : > { %v1004_v45 = vpop.f32.mrb[28].mxu0 }
 0x19b   : > { %v1051_v5 = vadd.f32 %v1004_v45, %v941_v36  ;;  %v1006_v46 = vpop.f32.mrb[29].mxu0 }
 0x19c   : > { %v1052_v47 = vadd.f32 %v1006_v46, %v942_v38  ;;  %v1008_v48 = vpop.f32.mrb[30].mxu0  ;;  %v1045_v49 = vpop.f32.mrb[28].mxu1 }
 0x19d   : > { %v1053_v50 = vadd.f32 %v1045_v49, %v943_v6  ;;  %v1009_v51 = vpop.f32.mrb[31].mxu0  ;;  %v1360_v52 = vpop.f32.mrb[29].mxu1 }
 0x19e   : > { %v1048_v53 = vpop.f32.mrb[30].mxu1 }
 0x19f   : > { %v1361_v54 = vpop.f32.mrb[31].mxu1 }
 0x1a2   : > { %v1114_v55 = vpop.f32.mrb[32].mxu0 }
 0x1a3   : > { %v1161_v57 = vadd.f32 %v1114_v55, %v1051_v5  ;;  %v1116_v58 = vpop.f32.mrb[33].mxu0 }
 0x1a4   : > { %v1162_v59 = vadd.f32 %v1116_v58, %v1052_v47  ;;  %v1118_v60 = vpop.f32.mrb[34].mxu0  ;;  %v1155_v61 = vpop.f32.mrb[32].mxu1 }
 0x1a5   : > { %v1170_v62 = vadd.f32 %v1168_v56, %v1161_v57  ;;  %v1163_v63 = vadd.f32 %v1155_v61, %v1053_v50  ;;  %v1119_v0 = vpop.f32.mrb[35].mxu0  ;;  %v1366_v1 = vpop.f32.mrb[33].mxu1 }
 0x1a6   : > { %v1171_v2 = vadd.f32 %v1168_v56, %v1162_v59  ;;  %v1158_v3 = vpop.f32.mrb[34].mxu1 }
 0x1a7   : > { %v1173_v4 = vmax.f32 %v1170_v62, 0.0  ;;  %v1172_v7 = vadd.f32 %v1168_v56, %v1163_v63  ;;  %v1367_v8 = vpop.f32.mrb[35].mxu1 }
 0x1a8   : > { %v1174_v9 = vmax.f32 %v1171_v2, 0.0 }
 0x1a9   : > { %v1175_v10 = vmax.f32 %v1172_v7, 0.0 }
 0x1aa   : > { %v1294_v11 = vpack.c.bf16 %v1174_v9, %v1173_v4 }
 0x1ab   : > { %v1295_v12 = vpack.c.bf16 %v1175_v10, %v1175_v10 }
 0x1ac   : > { %1189 = vst [vmem:[%s170_s24] sm:$0xff] %v1294_v11 }
 0x1ad   : > { %1190 = vst [vmem:[%s170_s24 + $0x8] sm:$0xf] %v1295_v12 }
 0x1ae PF: > { %s13_s12 = sadd.s32 1, %s1397_s12  }
 0x1af   : > { %p10_p4 = scmp.ge.s32.totalorder %s13_s12, 4  }
 0x1b1   :  { %12 = sbr.rel (!%p10_p4) target bundleno = 1 (0x1), region = 70 }

// kernel: conv_autoencoder_forward.10
= control target key start
LH: loop header
LB: loop body
LE: loop exit
PB: predicated region body
PF: predicated region fallthrough
CT: control target
= control target key end

     0   :  { %s367_s9 = smov 0   ;;  %s408_s0 = inlined_call_operand.vmem [shape: bf16[2,8,64], index: 0, kind: input, shape index: {}]   ;;  %s409_s1 = inlined_call_operand.vmem [shape: bf16[64,256], index: 1, kind: input, shape index: {}]   ;;  %s410_s2 = inlined_call_operand.vmem [shape: bf16[2,8,256], index: 2, kind: output, shape index: {}]  }
   0x1 LB: > { %s300_s10 = sadd.s32 4294967295, %s349_s9   ;;  %p304_p0 = scmp.ge.s32.totalorder %s349_s9, 1  ;;  %s349_s9 = sphi %s367_s9, %s12_s9  }
   0x2   : > { %p111_p1 = scmp.lt.s32.totalorder %s349_s9, 3 }
   0x4   : > { %p112_p2 = pnand %p304_p0, %p111_p1 }
   0x5   : > { %v331_v0 = vld [vmem:[%s409_s1 + $0x4] ss:$8 sps:$4 sm:$0xff] (!%p112_p2)   ;;  %v333_v1 = vld [vmem:[%s409_s1] ss:$8 sps:$4 sm:$0xff] (!%p112_p2)   ;;  %v351_v2 = vmov (!%p112_p2), 0   ;;  %p132_p3 = scmp.lt.s32.totalorder (!%p112_p2), %s300_s10, 1 }
   0x6   : > { %115 = sbr.rel (%p112_p2) target bundleno = 238 (0xee), region = 28  ;;  %227 = vmatprep.mubr.bf16.mxu0 (!%p112_p2), %v351_v2  ;;  %195 = vmatprep.subr.bf16.mxu0 (!%p112_p2), %v331_v0  ;;  %v334_v3 = vld [vmem:[%s409_s1 + $0x14] ss:$8 sps:$4 sm:$0xff] (!%p112_p2)   ;;  %v336_v4 = vld [vmem:[%s409_s1 + $0x10] ss:$8 sps:$4 sm:$0xff] (!%p112_p2)   ;;  %vm191_vm0 = vcmask (!%p112_p2), 523264  }
   0x7   : > { %196 = vmatpush1.bf16.msra.mxu0 (!%p112_p2), %v333_v1  ;;  %v337_v5 = vld [vmem:[%s409_s1 + $0x24] ss:$8 sps:$4 sm:$0xff] (!%p112_p2)   ;;  %v339_v6 = vld [vmem:[%s409_s1 + $0x20] ss:$8 sps:$4 sm:$0xff] (!%p112_p2)   ;;  %v340_v7 = vld [vmem:[%s409_s1 + $0x34] ss:$8 sps:$4 sm:$0xff] (!%p112_p2)  }
   0x8   : > { %197 = vmatprep.subr.bf16.mxu0 (!%p112_p2), %v334_v3  ;;  %v342_v8 = vld [vmem:[%s409_s1 + $0x30] ss:$8 sps:$4 sm:$0xff] (!%p112_p2)  }
   0xb   : > { %198 = vmatpush1.bf16.msra.mxu0 (!%p112_p2), %v336_v4 }
   0xc   : > { %199 = vmatprep.subr.bf16.mxu0 (!%p112_p2), %v337_v5 }
   0xd   : > { %s412_s10 = smov (!%p132_p3, %s300_s10), 1 }
   0xe   : > { %s305_s25 = sshll.u32 %s412_s10, 2  ;;  %s320_s3 = sshll.u32 %s412_s10, 3 }
   0xf   : > { %200 = vmatpush1.bf16.msra.mxu0 %v339_v6  ;;  %s135_s30 = scalar_lea.vmem %s408_s0, %s305_s25  ;;  %s140_s6 = scalar_lea.vmem %s410_s2, %s320_s3 }
  0x10   : > { %201 = vmatprep.subr.bf16.mxu0 %v340_v7  ;;  %v142_v9 = vld [vmem:[%s135_s30] sm:$0xf] }
  0x13   : > { %202 = vmatpush1.bf16.msra.mxu0 %v342_v8 }
  0x16   : > { %316 = vmatmul.mubr.msk.bf16.vlgmr.msra.gmra.mrb[0].mxu0 %vm191_vm0, %v142_v9 }
  0xe9   : > { %v229_v10 = vpop.f32.mrb[0].mxu0 }
  0xea   : > { %v231_v11 = vpop.f32.mrb[1].mxu0 }
  0xeb   : > { %v321_v12 = vpack.c.bf16 %v231_v11, %v229_v10  ;;  %v233_v13 = vpop.f32.mrb[2].mxu0 }
  0xec   : > { %v234_v14 = vpop.f32.mrb[3].mxu0 }
  0xed   : > { %244 = vst [vmem:[%s140_s6] sm:$0xff] %v321_v12 }
  0xee PF: > { %s12_s9 = sadd.s32 1, %s349_s9  }
  0xef   : > { %p9_p4 = scmp.ge.s32.totalorder %s12_s9, 4  }
  0xf1   :  { %11 = sbr.rel (!%p9_p4) target bundleno = 1 (0x1), region = 58 }

// kernel: conv_autoencoder_forward.9
= control target key start
LH: loop header
LB: loop body
LE: loop exit
PB: predicated region body
PF: predicated region fallthrough
CT: control target
= control target key end

     0   :  { %v727_v22 = vmov 1966171168   ;;  %v105_v24 = vlaneseq  ;;  %v728_v52 = vmov 0   ;;  %vm466_vm0 = vcmask 261120   ;;  %s904_s1 = inlined_call_operand.vmem [shape: bf16[512,32], index: 1, kind: input, shape index: {}]   ;;  %s905_s0 = inlined_call_operand.vmem [shape: bf16[2,512], index: 0, kind: input, shape index: {}]   ;;  %s906_s3 = inlined_call_operand.vmem [shape: bf16[32,512], index: 3, kind: input, shape index: {}]   ;;  %s907_s2 = inlined_call_operand.vmem [shape: f32[1,32], index: 2, kind: input, shape index: {}]   ;;  %s908_s4 = inlined_call_operand.vmem [shape: f32[1,512], index: 4, kind: input, shape index: {}]   ;;  %s909_s5 = inlined_call_operand.vmem [shape: bf16[2,512], index: 5, kind: output, shape index: {}]  }
   0x1   :  { %v683_v0 = vld [vmem:[%s904_s1 + $0x40] sm:$0xff]   ;;  %v687_v4 = vld [vmem:[%s904_s1 + $0x48] sm:$0xff]   ;;  %v691_v8 = vld [vmem:[%s904_s1 + $0x50] sm:$0xff]   ;;  %v103_v23 = vunpack.c.l.s4 %v727_v22 }
   0x2   :  { %v684_v1 = vld [vmem:[%s904_s1 + $0xc0] sm:$0xff]   ;;  %637 = vmatprep.subr.bf16.mxu0 %v683_v0  ;;  %v688_v5 = vld [vmem:[%s904_s1 + $0xc8] sm:$0xff]   ;;  %v692_v9 = vld [vmem:[%s904_s1 + $0xd0] sm:$0xff]   ;;  %v837_v30 = vshrl.u32 %v105_v24, 7 }
   0x3   :  { %v685_v2 = vld [vmem:[%s904_s1] sm:$0xff]   ;;  %659 = vmatprep.subr.bf16.mxu1 %v684_v1  ;;  %v689_v6 = vld [vmem:[%s904_s1 + $0x8] sm:$0xff]   ;;  %v693_v10 = vld [vmem:[%s904_s1 + $0x10] sm:$0xff]   ;;  %v104_v29 = vunpack.c.0.s8 %v103_v23 }
   0x4   :  { %v686_v3 = vld [vmem:[%s904_s1 + $0x80] sm:$0xff]   ;;  %638 = vmatpush3.bf16.msra.mxu0 %v685_v2  ;;  %v690_v7 = vld [vmem:[%s904_s1 + $0x88] sm:$0xff]   ;;  %v694_v11 = vld [vmem:[%s904_s1 + $0x90] sm:$0xff]  }
   0x5   :  { %660 = vmatpush3.bf16.msra.mxu1 %v686_v3  ;;  %639 = vmatprep.subr.bf16.mxu0 %v687_v4  ;;  %v695_v12 = vld [vmem:[%s904_s1 + $0x58] sm:$0xff]   ;;  %v699_v16 = vld [vmem:[%s904_s1 + $0x60] sm:$0xff]   ;;  %v703_v20 = vld [vmem:[%s904_s1 + $0x68] sm:$0xff]   ;;  %v852_v35 = vsub.s32 %v104_v29, %v837_v30  ;;  %v408_v4 = vsub.s32 0, %v837_v30 }
   0x6   :  { %661 = vmatprep.subr.bf16.mxu1 %v688_v5  ;;  %v696_v13 = vld [vmem:[%s904_s1 + $0xd8] sm:$0xff]   ;;  %v700_v17 = vld [vmem:[%s904_s1 + $0xe0] sm:$0xff]   ;;  %v704_v21 = vld [vmem:[%s904_s1 + $0xe8] sm:$0xff]   ;;  %v416_v5 = vsub.s32 2, %v837_v30 }
   0x7   :  { %v697_v14 = vld [vmem:[%s904_s1 + $0x18] sm:$0xff]   ;;  %v701_v18 = vld [vmem:[%s904_s1 + $0x20] sm:$0xff]   ;;  %v705_v25 = vld [vmem:[%s904_s1 + $0x28] sm:$0xff]  }
   0x8   :  { %640 = vmatpush3.bf16.msra.mxu0 %v689_v6  ;;  %v698_v15 = vld [vmem:[%s904_s1 + $0x98] sm:$0xff]   ;;  %v702_v19 = vld [vmem:[%s904_s1 + $0xa0] sm:$0xff]   ;;  %v706_v26 = vld [vmem:[%s904_s1 + $0xa8] sm:$0xff]  }
   0x9   :  { %662 = vmatpush3.bf16.msra.mxu1 %v690_v7  ;;  %641 = vmatprep.subr.bf16.mxu0 %v691_v8  ;;  %v707_v27 = vld [vmem:[%s904_s1 + $0x70] sm:$0xff]   ;;  %v711_v33 = vld [vmem:[%s904_s1 + $0x78] sm:$0xff]   ;;  %v591_v38 = vld.sshfl [vmem:[%s905_s0] sm:$0x33 pattern:$0x75316420] }
   0xa   :  { %663 = vmatprep.subr.bf16.mxu1 %v692_v9  ;;  %v708_v28 = vld [vmem:[%s904_s1 + $0xf0] sm:$0xff]   ;;  %v712_v34 = vld [vmem:[%s904_s1 + $0xf8] sm:$0xff]   ;;  %v101_v39 = vcombine.high %v591_v38, %v591_v38  ;;  %v108_v40 = vrot.slane %v591_v38, %v852_v35  ;;  %v590_v54 = vld [vmem:[%s907_s2] ss:$0 sm:$0xff]  ;;  %v412_v7 = vsub.s32 1, %v837_v30  ;;  %v420_v8 = vsub.s32 3, %v837_v30 }
   0xb   :  { %v709_v31 = vld [vmem:[%s904_s1 + $0x30] sm:$0xff]   ;;  %v713_v36 = vld [vmem:[%s904_s1 + $0x38] sm:$0xff]   ;;  %v404_v6 = vld [vmem:[%s908_s4] sm:$0xf] }
   0xc   :  { %642 = vmatpush3.bf16.msra.mxu0 %v693_v10  ;;  %v710_v32 = vld [vmem:[%s904_s1 + $0xb0] sm:$0xff]   ;;  %v714_v37 = vld [vmem:[%s904_s1 + $0xb8] sm:$0xff]   ;;  %v115_v41 = vrot.slane %v101_v39, %v852_v35  ;;  %v116_v42 = vcombine.high %v108_v40, %v108_v40  ;;  %v409_v9 = vrot.slane %v404_v6, %v408_v4  ;;  %v417_v10 = vrot.slane %v404_v6, %v416_v5 }
   0xd   :  { %664 = vmatpush3.bf16.msra.mxu1 %v694_v11  ;;  %643 = vmatprep.subr.bf16.mxu0 %v695_v12  ;;  %v717_v44 = vld [vmem:[%s906_s3 + $0x4] ss:$16 sps:$4 sm:$0xff]   ;;  %v715_v45 = vld [vmem:[%s906_s3] ss:$16 sps:$4 sm:$0xff]   ;;  %v718_v46 = vld [vmem:[%s906_s3 + $0x8] ss:$16 sps:$4 sm:$0xff]   ;;  %v413_v11 = vrot.slane %v404_v6, %v412_v7  ;;  %v421_v12 = vrot.slane %v404_v6, %v420_v8 }
   0xe   :  { %665 = vmatprep.subr.bf16.mxu1 %v696_v13  ;;  %346 = vmatprep.mubr.bf16.mxu0 %v115_v41  ;;  %v117_v43 = vcombine.high %v115_v41, %v115_v41  ;;  %v720_v47 = vld [vmem:[%s906_s3 + $0xc] ss:$16 sps:$4 sm:$0xff]   ;;  %v723_v48 = vld [vmem:[%s906_s3 + $0x24] ss:$16 sps:$4 sm:$0xff]   ;;  %v721_v50 = vld [vmem:[%s906_s3 + $0x20] ss:$16 sps:$4 sm:$0xff]  }
   0xf   :  { %v726_v49 = vld [vmem:[%s906_s3 + $0x2c] ss:$16 sps:$4 sm:$0xff]   ;;  %v724_v51 = vld [vmem:[%s906_s3 + $0x28] ss:$16 sps:$4 sm:$0xff]  }
  0x10   :  { %644 = vmatpush3.bf16.msra.mxu0 %v697_v14  ;;  %386 = vmatprep.mubr.bf16.mxu1 %v117_v43 }
  0x11   :  { %666 = vmatpush3.bf16.msra.mxu1 %v698_v15  ;;  %645 = vmatprep.subr.bf16.mxu0 %v699_v16 }
  0x12   :  { %667 = vmatprep.subr.bf16.mxu1 %v700_v17 }
  0x14   :  { %646 = vmatpush3.bf16.msra.mxu0 %v701_v18 }
  0x15   :  { %668 = vmatpush3.bf16.msra.mxu1 %v702_v19  ;;  %647 = vmatprep.subr.bf16.mxu0 %v703_v20 }
  0x16   :  { %669 = vmatprep.subr.bf16.mxu1 %v704_v21 }
  0x18   :  { %648 = vmatpush3.bf16.msra.mxu0 %v705_v25 }
  0x19   :  { %670 = vmatpush3.bf16.msra.mxu1 %v706_v26  ;;  %649 = vmatprep.subr.bf16.mxu0 %v707_v27 }
  0x1a   :  { %671 = vmatprep.subr.bf16.mxu1 %v708_v28 }
  0x1c   :  { %650 = vmatpush3.bf16.msra.mxu0 %v709_v31 }
  0x1d   :  { %672 = vmatpush3.bf16.msra.mxu1 %v710_v32  ;;  %651 = vmatprep.subr.bf16.mxu0 %v711_v33 }
  0x1e   :  { %673 = vmatprep.subr.bf16.mxu1 %v712_v34 }
  0x20   :  { %652 = vmatpush3.bf16.msra.mxu0 %v713_v36 }
  0x21   :  { %674 = vmatpush3.bf16.msra.mxu1 %v714_v37  ;;  %470 = vmatprep.subr.bf16.mxu0 %v717_v44 }
  0x22   :  { %511 = vmatprep.subr.bf16.mxu1 %v720_v47 }
  0x23   :  { %347 = vmatmul.mubr.bf16.vlgmr.msra.gmra.mrb[0].mxu0 %v108_v40 }
  0x24   :  { %387 = vmatmul.mubr.bf16.vlgmr.msra.gmra.mrb[0].mxu1 %v116_v42  ;;  %471 = vmatpush1.bf16.msra.mxu0 %v715_v45 }
  0x25   :  { %512 = vmatpush1.bf16.msra.mxu1 %v718_v46  ;;  %472 = vmatprep.subr.bf16.mxu0 %v723_v48 }
  0x26   :  { %513 = vmatprep.subr.bf16.mxu1 %v726_v49  ;;  %502 = vmatprep.mubr.bf16.mxu0 %v728_v52 }
  0x27   :  { %543 = vmatprep.mubr.bf16.mxu1 %v728_v52 }
  0x28   :  { %473 = vmatpush1.bf16.msra.mxu0 %v721_v50 }
  0x29   :  { %514 = vmatpush1.bf16.msra.mxu1 %v724_v51 }
  0xf6   :  { %v653_v53 = vpop.f32.mrb[0].mxu0 }
  0xf7   :  { %v654_v55 = vpop.f32.mrb[1].mxu0  ;;  %v675_v56 = vpop.f32.mrb[0].mxu1 }
  0xf8   :  { %v655_v57 = vadd.f32 %v654_v55, %v653_v53  ;;  %v656_v58 = vpop.f32.mrb[2].mxu0  ;;  %v676_v59 = vpop.f32.mrb[1].mxu1 }
  0xf9   :  { %v657_v60 = vpop.f32.mrb[3].mxu0  ;;  %v677_v62 = vadd.f32 %v676_v59, %v675_v56  ;;  %v678_v63 = vpop.f32.mrb[2].mxu1 }
  0xfa   :  { %v349_v61 = vadd.f32 %v655_v57, %v590_v54  ;;  %v679_v0 = vpop.f32.mrb[3].mxu1 }
  0xfc   :  { %v389_v1 = vadd.f32 %v677_v62, %v349_v61 }
  0xfe   :  { %v394_v2 = vmax.f32 %v389_v1, 0.0 }
 0x100   :  { %v395_v3 = vpack.c.bf16 %v394_v2, %v394_v2 }
 0x102   :  { %632 = vmatmul.mubr.msk.bf16.vlgmr.msra.gmra.mrb[4].mxu0 %vm466_vm0, %v395_v3  ;;  %633 = vmatmul.mubr.msk.bf16.vlgmr.msra.gmra.mrb[4].mxu1 %vm466_vm0, %v395_v3 }
 0x1d5   :  { %v504_v13 = vpop.f32.mrb[4].mxu0  ;;  %v545_v14 = vpop.f32.mrb[4].mxu1 }
 0x1d6   :  { %v505_v15 = vadd.f32 %v504_v13, %v409_v9  ;;  %v546_v16 = vadd.f32 %v545_v14, %v417_v10  ;;  %v506_v17 = vpop.f32.mrb[5].mxu0  ;;  %v547_v18 = vpop.f32.mrb[5].mxu1 }
 0x1d7   :  { %v507_v19 = vadd.f32 %v506_v17, %v413_v11  ;;  %v548_v20 = vadd.f32 %v547_v18, %v421_v12  ;;  %v508_v21 = vpop.f32.mrb[6].mxu0  ;;  %v549_v22 = vpop.f32.mrb[6].mxu1 }
 0x1d8   :  { %v509_v23 = vpop.f32.mrb[7].mxu0  ;;  %v550_v24 = vpop.f32.mrb[7].mxu1 }
 0x1d9   :  { %v634_v25 = vpack.c.bf16 %v507_v19, %v505_v15  ;;  %v635_v26 = vpack.c.bf16 %v548_v20, %v546_v16 }
 0x1db   :  { %v568_v27 = vrot.slane %v634_v25, %v852_v35  ;;  %v575_v28 = vrot.slane %v635_v26, %v852_v35 }
 0x1dd   :  { %v576_v29 = vcombine.low %v568_v27, %v575_v28 }
 0x1df   :  { %636 = vst.sshfl [vmem:[%s909_s5] sm:$0x55 pattern:$0x73625140] %v576_v29 }

// kernel: conv_autoencoder_forward.11
= control target key start
LH: loop header
LB: loop body
LE: loop exit
PB: predicated region body
PF: predicated region fallthrough
CT: control target
= control target key end

     0   :  { %s1437_s12 = smov 0   ;;  %s1592_s0 = inlined_call_operand.vmem [shape: bf16[2,8,422], index: 0, kind: input, shape index: {}]   ;;  %s1593_s1 = inlined_call_operand.vmem [shape: bf16[9,4,8], index: 1, kind: input, shape index: {}]   ;;  %s1594_s2 = inlined_call_operand.vmem [shape: f32[4,1], index: 2, kind: input, shape index: {}]   ;;  %s1595_s3 = inlined_call_operand.vmem [shape: bf16[2,4,384], index: 3, kind: output, shape index: {}]  }
   0x1 LB: > { %s1248_s13 = sadd.s32 4294967295, %s1403_s12   ;;  %p1252_p0 = scmp.ge.s32.totalorder %s1403_s12, 1  ;;  %s1403_s12 = sphi %s1437_s12, %s13_s12  }
   0x2   : > { %p137_p1 = scmp.lt.s32.totalorder %s1403_s12, 3 }
   0x4   : > { %p138_p2 = pnand %p1252_p0, %p137_p1 }
   0x5   : > { %p161_p3 = scmp.lt.s32.totalorder (!%p138_p2), %s1248_s13, 1  ;;  %v1405_v0 = vmov (!%p138_p2), 0.0   ;;  %v1406_v1 = vmov (!%p138_p2), 0   ;;  %vm1407_vm0 = vmmov (!%p138_p2), 0   ;;  %s1408_s18 = smov (!%p138_p2), 127   ;;  %vm195_vm1 = vcmask (!%p138_p2), 1039360  }
   0x6   : > { %141 = sbr.rel (%p138_p2) target bundleno = 433 (0x1b1), region = 32  ;;  %1317 = vmatprep.subr.bf16.mxu1 (!%p138_p2), %v1405_v0  ;;  %245 = vmatprep.mubr.bf16.mxu0 (!%p138_p2), %v1406_v1  ;;  %s1409_s19 = smov (!%p138_p2), 126   ;;  %v1157_v8 = vld [vmem:[%s1594_s2] sm:$0xf] (!%p138_p2)  ;;  %vm203_vm2 = vcmask (!%p138_p2), 1043456   ;;  %vm199_vm3 = vcmask (!%p138_p2), 64512  }
   0x7   : > { %1319 = vmatprep.mubr.msk.bf16.mxu1 (!%p138_p2), %vm1407_vm0, %v1405_v0  ;;  %1392 = vset.pattern.permute.xlu0 (!%p138_p2), %v1406_v1  ;;  %s1410_s20 = smov (!%p138_p2), 110   ;;  %s1411_s21 = smov (!%p138_p2), 109   ;;  %v1256_v18 = vld [vmem:[%s1593_s1 + $0x2] sm:$0x3] (!%p138_p2)  ;;  %vm397_vm4 = vcmask (!%p138_p2), 1031168   ;;  %vm507_vm5 = vcmask (!%p138_p2), 900096  }
   0x8   : > { %s1412_s22 = smov (!%p138_p2), 108   ;;  %s1413_s23 = smov (!%p138_p2), 92   ;;  %v174_v28 = vld [vmem:[%s1593_s1] sm:$0x3] (!%p138_p2)  ;;  %v1267_v38 = vld [vmem:[%s1593_s1 + $0x4] sm:$0x3] (!%p138_p2) }
   0x9   : > { %s1414_s24 = smov (!%p138_p2), 91   ;;  %s1415_s25 = smov (!%p138_p2), 90   ;;  %vm617_vm6 = vcmask (!%p138_p2), 891904   ;;  %v1271_v48 = vld [vmem:[%s1593_s1 + $0x6] sm:$0x3] (!%p138_p2)  ;;  %vm727_vm7 = vcmask (!%p138_p2), 883712  }
   0xa   : > { %v1275_v58 = vld [vmem:[%s1593_s1 + $0x8] sm:$0x3] (!%p138_p2)  ;;  %vm837_vm8 = vcmask (!%p138_p2), 752640   ;;  %vm947_vm9 = vcmask (!%p138_p2), 744448   ;;  %vm1057_vm10 = vcmask (!%p138_p2), 736256  }
   0xd   : > { %s1597_s13 = smov (!%p161_p3, %s1248_s13), 1 }
   0xe   : > { %s1298_s14 = sshll.u32 %s1597_s13, 4 }
   0xf   : > { %s165_s17 = scalar_lea.vmem %s1592_s0, %s1298_s14 }
  0x10   : > { %v173_v2 = vld [vmem:[%s165_s17 + $0x8] sm:$0xff]  ;;  %v172_v3 = vld [vmem:[%s165_s17] sm:$0xff] }
  0x11   : > { %v1456_v4 = vcombine.low %v173_v2, %v173_v2  ;;  %v1458_v5 = vcombine.low %v172_v3, %v172_v3  ;;  %v1260_v6 = vcombine.high %v173_v2, %v173_v2  ;;  %v1258_v7 = vcombine.high %v172_v3, %v172_v3 }
  0x13   : > { %191 = vrot.lane.b32.xlu1 %v1456_v4, %s1408_s18  ;;  %187 = vrot.lane.b32.xlu0 %v1458_v5, %s1408_s18  ;;  %v298_v20 = vsel %vm203_vm2, %v1458_v5, 0  ;;  %v304_v21 = vsel %vm203_vm2, %v1456_v4, 0 }
  0x17   : > { %193 = vrot.lane.b32.xlu1 %v1260_v6, %s1408_s18  ;;  %189 = vrot.lane.b32.xlu0 %v1258_v7, %s1408_s18 }
  0x1b   : > { %389 = vrot.lane.b32.xlu0 %v1458_v5, %s1409_s19  ;;  %391 = vrot.lane.b32.xlu1 %v1258_v7, %s1409_s19 }
  0x1f   : > { %393 = vrot.lane.b32.xlu0 %v1456_v4, %s1409_s19  ;;  %395 = vrot.lane.b32.xlu1 %v1260_v6, %s1409_s19 }
  0x23   : > { %499 = vrot.lane.b32.xlu0 %v1458_v5, %s1410_s20  ;;  %501 = vrot.lane.b32.xlu1 %v1258_v7, %s1410_s20 }
  0x27   : > { %503 = vrot.lane.b32.xlu0 %v1456_v4, %s1410_s20  ;;  %505 = vrot.lane.b32.xlu1 %v1260_v6, %s1410_s20 }
  0x2b   : > { %609 = vrot.lane.b32.xlu0 %v1458_v5, %s1411_s21  ;;  %611 = vrot.lane.b32.xlu1 %v1258_v7, %s1411_s21 }
  0x2f   : > { %613 = vrot.lane.b32.xlu0 %v1456_v4, %s1411_s21  ;;  %615 = vrot.lane.b32.xlu1 %v1260_v6, %s1411_s21  ;;  %s1371_s21 = smul.u32 6, %s1597_s13 }
  0x33   : > { %719 = vrot.lane.b32.xlu0 %v1458_v5, %s1412_s22  ;;  %721 = vrot.lane.b32.xlu1 %v1258_v7, %s1412_s22 }
  0x37   : > { %723 = vrot.lane.b32.xlu0 %v1456_v4, %s1412_s22  ;;  %725 = vrot.lane.b32.xlu1 %v1260_v6, %s1412_s22 }
  0x3b   : > { %829 = vrot.lane.b32.xlu0 %v1458_v5, %s1413_s23  ;;  %831 = vrot.lane.b32.xlu1 %v1258_v7, %s1413_s23 }
  0x3f   : > { %833 = vrot.lane.b32.xlu0 %v1456_v4, %s1413_s23  ;;  %835 = vrot.lane.b32.xlu1 %v1260_v6, %s1413_s23 }
  0x43   : > { %939 = vrot.lane.b32.xlu0 %v1458_v5, %s1414_s24  ;;  %941 = vrot.lane.b32.xlu1 %v1258_v7, %s1414_s24 }
  0x47   : > { %943 = vrot.lane.b32.xlu0 %v1456_v4, %s1414_s24  ;;  %945 = vrot.lane.b32.xlu1 %v1260_v6, %s1414_s24  ;;  %s170_s24 = scalar_lea.vmem %s1595_s3, %s1371_s21 }
  0x4b   : > { %1049 = vrot.lane.b32.xlu0 %v1458_v5, %s1415_s25  ;;  %1051 = vrot.lane.b32.xlu1 %v1258_v7, %s1415_s25 }
  0x4f   : > { %1053 = vrot.lane.b32.xlu0 %v1456_v4, %s1415_s25  ;;  %1055 = vrot.lane.b32.xlu1 %v1260_v6, %s1415_s25  ;;  %v1279_v6 = vld [vmem:[%s1593_s1 + $0xa] sm:$0x3] }
  0x53   : > { %1160 = vperm.xlu0 %1392, %v1157_v8  }
  0x85   : > { %v192_v9 = vpop.permute.xlu1 %191  ;;  %v188_v10 = vpop.permute.xlu0 %187 }
  0x89   : > { %v194_v11 = vpop.permute.xlu1 %193  ;;  %v190_v12 = vpop.permute.xlu0 %189 }
  0x8a   : > { %v197_v13 = vsel %vm195_vm1, %v190_v12, %v192_v9  ;;  %v196_v14 = vsel %vm195_vm1, %v188_v10, %v190_v12  ;;  %v198_v15 = vsel %vm195_vm1, %v192_v9, %v194_v11 }
  0x8b   : > { %1261 = vmatprep.subr.msk.bf16.mxu0 %vm203_vm2, %v197_v13  ;;  %v205_v16 = vsel %vm203_vm2, %v196_v14, 0  ;;  %v211_v17 = vsel %vm203_vm2, %v198_v15, 0 }
  0x8c   : > { %214 = vmatpush1.bf16.msra.mxu0 %v205_v16  ;;  %1318 = vmatpush3.bf16.msra.mxu1 %v211_v17  ;;  %v1283_v16 = vld [vmem:[%s1593_s1 + $0xc] sm:$0x3] }
  0x8d   : > { %v390_v19 = vpop.permute.xlu0 %389  ;;  %1264 = vmatprep.subr.msk.bf16.mxu0 %vm203_vm2, %v1258_v7  ;;  %1323 = vmatprep.subr.bf16.mxu1 %v1405_v0  ;;  %v392_v22 = vpop.permute.xlu1 %391 }
  0x8e   : > { %v398_v25 = vsel %vm397_vm4, %v390_v19, %v392_v22 }
  0x8f   : > { %1262 = vmatmul.mubr.msk.bf16.vlgmr.msra.gmra.mrb[0].mxu0 %vm199_vm3, %v1256_v18  ;;  %1320 = vmatmul.mubr.msk.bf16.vlgmr.msra.gmra.mrb[0].mxu1 %vm199_vm3, %v1256_v18  ;;  %v405_v29 = vsel %vm203_vm2, %v398_v25, 0 }
  0x90   : > { %307 = vmatpush1.bf16.msra.mxu0 %v298_v20  ;;  %1324 = vmatpush3.bf16.msra.mxu1 %v304_v21 }
  0x91   : > { %v394_v23 = vpop.permute.xlu0 %393  ;;  %v396_v24 = vpop.permute.xlu1 %395  ;;  %338 = vmatprep.mubr.bf16.mxu0 %v1406_v1  ;;  %1325 = vmatprep.mubr.msk.bf16.mxu1 %vm1407_vm0, %v1405_v0 }
  0x92   : > { %v399_v26 = vsel %vm397_vm4, %v392_v22, %v394_v23  ;;  %v400_v27 = vsel %vm397_vm4, %v394_v23, %v396_v24  ;;  %1329 = vmatprep.subr.bf16.mxu1 %v1405_v0 }
  0x93   : > { %1268 = vmatprep.subr.msk.bf16.mxu0 %vm203_vm2, %v399_v26  ;;  %v411_v30 = vsel %vm203_vm2, %v400_v27, 0  ;;  %v1287_v26 = vld [vmem:[%s1593_s1 + $0xe] sm:$0x3] }
  0x95   : > { %v500_v31 = vpop.permute.xlu0 %499  ;;  %v502_v32 = vpop.permute.xlu1 %501 }
  0x96   : > { %v508_v35 = vsel %vm507_vm5, %v500_v31, %v502_v32 }
  0x97   : > { %1265 = vmatmul.mubr.msk.bf16.vlgmr.msra.gmra.mrb[4].mxu0 %vm199_vm3, %v174_v28  ;;  %1326 = vmatmul.mubr.msk.bf16.vlgmr.msra.gmra.mrb[4].mxu1 %vm199_vm3, %v174_v28  ;;  %v515_v39 = vsel %vm203_vm2, %v508_v35, 0 }
  0x98   : > { %414 = vmatpush1.bf16.msra.mxu0 %v405_v29  ;;  %1330 = vmatpush3.bf16.msra.mxu1 %v411_v30  ;;  %v1291_v29 = vld [vmem:[%s1593_s1 + $0x10] sm:$0x3] }
  0x99   : > { %v504_v33 = vpop.permute.xlu0 %503  ;;  %v506_v34 = vpop.permute.xlu1 %505  ;;  %1331 = vmatprep.mubr.msk.bf16.mxu1 %vm1407_vm0, %v1405_v0  ;;  %445 = vmatprep.mubr.bf16.mxu0 %v1406_v1 }
  0x9a   : > { %v509_v36 = vsel %vm507_vm5, %v502_v32, %v504_v33  ;;  %v510_v37 = vsel %vm507_vm5, %v504_v33, %v506_v34  ;;  %1335 = vmatprep.subr.bf16.mxu1 %v1405_v0 }
  0x9b   : > { %1272 = vmatprep.subr.msk.bf16.mxu0 %vm203_vm2, %v509_v36  ;;  %v521_v40 = vsel %vm203_vm2, %v510_v37, 0 }
  0x9d   : > { %v610_v41 = vpop.permute.xlu0 %609  ;;  %v612_v42 = vpop.permute.xlu1 %611 }
  0x9e   : > { %v618_v45 = vsel %vm617_vm6, %v610_v41, %v612_v42 }
  0x9f   : > { %1269 = vmatmul.mubr.msk.bf16.vlgmr.msra.gmra.mrb[8].mxu0 %vm199_vm3, %v1267_v38  ;;  %1332 = vmatmul.mubr.msk.bf16.vlgmr.msra.gmra.mrb[8].mxu1 %vm199_vm3, %v1267_v38  ;;  %v625_v49 = vsel %vm203_vm2, %v618_v45, 0 }
  0xa0   : > { %524 = vmatpush1.bf16.msra.mxu0 %v515_v39  ;;  %1336 = vmatpush3.bf16.msra.mxu1 %v521_v40 }
  0xa1   : > { %v614_v43 = vpop.permute.xlu0 %613  ;;  %v616_v44 = vpop.permute.xlu1 %615  ;;  %1337 = vmatprep.mubr.msk.bf16.mxu1 %vm1407_vm0, %v1405_v0  ;;  %555 = vmatprep.mubr.bf16.mxu0 %v1406_v1 }
  0xa2   : > { %v619_v46 = vsel %vm617_vm6, %v612_v42, %v614_v43  ;;  %v620_v47 = vsel %vm617_vm6, %v614_v43, %v616_v44  ;;  %1341 = vmatprep.subr.bf16.mxu1 %v1405_v0 }
  0xa3   : > { %1276 = vmatprep.subr.msk.bf16.mxu0 %vm203_vm2, %v619_v46  ;;  %v631_v50 = vsel %vm203_vm2, %v620_v47, 0 }
  0xa5   : > { %v720_v51 = vpop.permute.xlu0 %719  ;;  %v722_v52 = vpop.permute.xlu1 %721 }
  0xa6   : > { %v728_v55 = vsel %vm727_vm7, %v720_v51, %v722_v52 }
  0xa7   : > { %1273 = vmatmul.mubr.msk.bf16.vlgmr.msra.gmra.mrb[12].mxu0 %vm199_vm3, %v1271_v48  ;;  %1338 = vmatmul.mubr.msk.bf16.vlgmr.msra.gmra.mrb[12].mxu1 %vm199_vm3, %v1271_v48  ;;  %v735_v59 = vsel %vm203_vm2, %v728_v55, 0 }
  0xa8   : > { %634 = vmatpush1.bf16.msra.mxu0 %v625_v49  ;;  %1342 = vmatpush3.bf16.msra.mxu1 %v631_v50 }
  0xa9   : > { %v724_v53 = vpop.permute.xlu0 %723  ;;  %v726_v54 = vpop.permute.xlu1 %725  ;;  %1343 = vmatprep.mubr.msk.bf16.mxu1 %vm1407_vm0, %v1405_v0  ;;  %665 = vmatprep.mubr.bf16.mxu0 %v1406_v1 }
  0xaa   : > { %v729_v56 = vsel %vm727_vm7, %v722_v52, %v724_v53  ;;  %v730_v57 = vsel %vm727_vm7, %v724_v53, %v726_v54  ;;  %1347 = vmatprep.subr.bf16.mxu1 %v1405_v0 }
  0xab   : > { %1280 = vmatprep.subr.msk.bf16.mxu0 %vm203_vm2, %v729_v56  ;;  %v741_v60 = vsel %vm203_vm2, %v730_v57, 0 }
  0xad   : > { %v830_v61 = vpop.permute.xlu0 %829  ;;  %v832_v62 = vpop.permute.xlu1 %831 }
  0xae   : > { %v838_v3 = vsel %vm837_vm8, %v830_v61, %v832_v62 }
  0xaf   : > { %1277 = vmatmul.mubr.msk.bf16.vlgmr.msra.gmra.mrb[16].mxu0 %vm199_vm3, %v1275_v58  ;;  %1344 = vmatmul.mubr.msk.bf16.vlgmr.msra.gmra.mrb[16].mxu1 %vm199_vm3, %v1275_v58  ;;  %v845_v7 = vsel %vm203_vm2, %v838_v3, 0 }
  0xb0   : > { %744 = vmatpush1.bf16.msra.mxu0 %v735_v59  ;;  %1348 = vmatpush3.bf16.msra.mxu1 %v741_v60 }
  0xb1   : > { %v834_v63 = vpop.permute.xlu0 %833  ;;  %v836_v2 = vpop.permute.xlu1 %835  ;;  %1349 = vmatprep.mubr.msk.bf16.mxu1 %vm1407_vm0, %v1405_v0  ;;  %775 = vmatprep.mubr.bf16.mxu0 %v1406_v1 }
  0xb2   : > { %v839_v4 = vsel %vm837_vm8, %v832_v62, %v834_v63  ;;  %v840_v5 = vsel %vm837_vm8, %v834_v63, %v836_v2  ;;  %1353 = vmatprep.subr.bf16.mxu1 %v1405_v0 }
  0xb3   : > { %1284 = vmatprep.subr.msk.bf16.mxu0 %vm203_vm2, %v839_v4  ;;  %v851_v8 = vsel %vm203_vm2, %v840_v5, 0 }
  0xb5   : > { %v940_v9 = vpop.permute.xlu0 %939  ;;  %v942_v10 = vpop.permute.xlu1 %941 }
  0xb6   : > { %v948_v13 = vsel %vm947_vm9, %v940_v9, %v942_v10 }
  0xb7   : > { %1281 = vmatmul.mubr.msk.bf16.vlgmr.msra.gmra.mrb[20].mxu0 %vm199_vm3, %v1279_v6  ;;  %1350 = vmatmul.mubr.msk.bf16.vlgmr.msra.gmra.mrb[20].mxu1 %vm199_vm3, %v1279_v6  ;;  %v955_v17 = vsel %vm203_vm2, %v948_v13, 0 }
  0xb8   : > { %854 = vmatpush1.bf16.msra.mxu0 %v845_v7  ;;  %1354 = vmatpush3.bf16.msra.mxu1 %v851_v8 }
  0xb9   : > { %v944_v11 = vpop.permute.xlu0 %943  ;;  %v946_v12 = vpop.permute.xlu1 %945  ;;  %1355 = vmatprep.mubr.msk.bf16.mxu1 %vm1407_vm0, %v1405_v0  ;;  %885 = vmatprep.mubr.bf16.mxu0 %v1406_v1 }
  0xba   : > { %v949_v14 = vsel %vm947_vm9, %v942_v10, %v944_v11  ;;  %v950_v15 = vsel %vm947_vm9, %v944_v11, %v946_v12  ;;  %1359 = vmatprep.subr.bf16.mxu1 %v1405_v0 }
  0xbb   : > { %1288 = vmatprep.subr.msk.bf16.mxu0 %vm203_vm2, %v949_v14  ;;  %v961_v18 = vsel %vm203_vm2, %v950_v15, 0 }
  0xbd   : > { %v1050_v19 = vpop.permute.xlu0 %1049  ;;  %v1052_v20 = vpop.permute.xlu1 %1051 }
  0xbe   : > { %v1058_v23 = vsel %vm1057_vm10, %v1050_v19, %v1052_v20 }
  0xbf   : > { %1285 = vmatmul.mubr.msk.bf16.vlgmr.msra.gmra.mrb[24].mxu0 %vm199_vm3, %v1283_v16  ;;  %1356 = vmatmul.mubr.msk.bf16.vlgmr.msra.gmra.mrb[24].mxu1 %vm199_vm3, %v1283_v16  ;;  %v1065_v27 = vsel %vm203_vm2, %v1058_v23, 0 }
  0xc0   : > { %964 = vmatpush1.bf16.msra.mxu0 %v955_v17  ;;  %1360 = vmatpush3.bf16.msra.mxu1 %v961_v18 }
  0xc1   : > { %v1054_v21 = vpop.permute.xlu0 %1053  ;;  %v1056_v22 = vpop.permute.xlu1 %1055  ;;  %995 = vmatprep.mubr.bf16.mxu0 %v1406_v1  ;;  %1361 = vmatprep.mubr.msk.bf16.mxu1 %vm1407_vm0, %v1405_v0 }
  0xc2   : > { %v1059_v24 = vsel %vm1057_vm10, %v1052_v20, %v1054_v21  ;;  %v1060_v25 = vsel %vm1057_vm10, %v1054_v21, %v1056_v22  ;;  %1365 = vmatprep.subr.bf16.mxu1 %v1405_v0 }
  0xc3   : > { %1292 = vmatprep.subr.msk.bf16.mxu0 %vm203_vm2, %v1059_v24  ;;  %v1071_v28 = vsel %vm203_vm2, %v1060_v25, 0 }
  0xc7   : > { %1289 = vmatmul.mubr.msk.bf16.vlgmr.msra.gmra.mrb[28].mxu0 %vm199_vm3, %v1287_v26  ;;  %1362 = vmatmul.mubr.msk.bf16.vlgmr.msra.gmra.mrb[28].mxu1 %vm199_vm3, %v1287_v26 }
  0xc8   : > { %1074 = vmatpush1.bf16.msra.mxu0 %v1065_v27  ;;  %1366 = vmatpush3.bf16.msra.mxu1 %v1071_v28 }
  0xc9   : > { %1105 = vmatprep.mubr.bf16.mxu0 %v1406_v1  ;;  %1367 = vmatprep.mubr.msk.bf16.mxu1 %vm1407_vm0, %v1405_v0 }
  0xcf   : > { %1293 = vmatmul.mubr.msk.bf16.vlgmr.msra.gmra.mrb[32].mxu0 %vm199_vm3, %v1291_v29  ;;  %1368 = vmatmul.mubr.msk.bf16.vlgmr.msra.gmra.mrb[32].mxu1 %vm199_vm3, %v1291_v29 }
 0x162   : > { %v247_v30 = vpop.f32.mrb[0].mxu0  ;;  %v288_v31 = vpop.f32.mrb[0].mxu1 }
 0x163   : > { %v249_v32 = vpop.f32.mrb[1].mxu0  ;;  %v1321_v33 = vpop.f32.mrb[1].mxu1 }
 0x164   : > { %v251_v34 = vpop.f32.mrb[2].mxu0  ;;  %v291_v35 = vpop.f32.mrb[2].mxu1 }
 0x165   : > { %v252_v36 = vpop.f32.mrb[3].mxu0  ;;  %v1322_v37 = vpop.f32.mrb[3].mxu1 }
 0x16a   : > { %v340_v1 = vpop.f32.mrb[4].mxu0  ;;  %v381_v38 = vpop.f32.mrb[4].mxu1 }
 0x16b   : > { %v341_v39 = vadd.f32 %v340_v1, %v247_v30  ;;  %v382_v0 = vadd.f32 %v381_v38, %v288_v31  ;;  %v342_v40 = vpop.f32.mrb[5].mxu0  ;;  %v1327_v41 = vpop.f32.mrb[5].mxu1 }
 0x16c   : > { %v343_v42 = vadd.f32 %v342_v40, %v249_v32  ;;  %v344_v43 = vpop.f32.mrb[6].mxu0  ;;  %v384_v44 = vpop.f32.mrb[6].mxu1 }
 0x16d   : > { %v345_v45 = vpop.f32.mrb[7].mxu0  ;;  %v1328_v46 = vpop.f32.mrb[7].mxu1 }
 0x172   : > { %v447_v47 = vpop.f32.mrb[8].mxu0  ;;  %v488_v48 = vpop.f32.mrb[8].mxu1 }
 0x173   : > { %v494_v49 = vadd.f32 %v447_v47, %v341_v39  ;;  %v496_v50 = vadd.f32 %v488_v48, %v382_v0  ;;  %v449_v51 = vpop.f32.mrb[9].mxu0  ;;  %v1333_v52 = vpop.f32.mrb[9].mxu1 }
 0x174   : > { %v495_v53 = vadd.f32 %v449_v51, %v343_v42  ;;  %v451_v54 = vpop.f32.mrb[10].mxu0  ;;  %v491_v55 = vpop.f32.mrb[10].mxu1  ;;  %v1179_v51 = vlaneseq }
 0x175   : > { %v452_v56 = vpop.f32.mrb[11].mxu0  ;;  %v1334_v57 = vpop.f32.mrb[11].mxu1 }
 0x176   : > { %v1161_v52 = vpop.permute.xlu0 %1160 }
 0x17a   : > { %v557_v58 = vpop.f32.mrb[12].mxu0  ;;  %v598_v59 = vpop.f32.mrb[12].mxu1 }
 0x17b   : > { %v604_v60 = vadd.f32 %v557_v58, %v494_v49  ;;  %v606_v61 = vadd.f32 %v598_v59, %v496_v50  ;;  %v559_v62 = vpop.f32.mrb[13].mxu0  ;;  %v1339_v63 = vpop.f32.mrb[13].mxu1  ;;  %v1416_v49 = vmov 1983009808  }
 0x17c   : > { %v605_v2 = vadd.f32 %v559_v62, %v495_v53  ;;  %v561_v3 = vpop.f32.mrb[14].mxu0  ;;  %v601_v4 = vpop.f32.mrb[14].mxu1  ;;  %v1177_v50 = vunpack.c.l.s4 %v1416_v49 }
 0x17d   : > { %v562_v5 = vpop.f32.mrb[15].mxu0  ;;  %v1340_v6 = vpop.f32.mrb[15].mxu1 }
 0x17e   : > { %v1178_v59 = vunpack.c.0.s8 %v1177_v50 }
 0x182   : > { %v667_v7 = vpop.f32.mrb[16].mxu0  ;;  %v708_v8 = vpop.f32.mrb[16].mxu1 }
 0x183   : > { %v714_v9 = vadd.f32 %v667_v7, %v604_v60  ;;  %v716_v10 = vadd.f32 %v708_v8, %v606_v61  ;;  %v669_v11 = vpop.f32.mrb[17].mxu0  ;;  %v1345_v12 = vpop.f32.mrb[17].mxu1  ;;  %v1180_v60 = vshrl.u32 %v1179_v51, 7 }
 0x184   : > { %v715_v13 = vadd.f32 %v669_v11, %v605_v2  ;;  %v671_v14 = vpop.f32.mrb[18].mxu0  ;;  %v711_v15 = vpop.f32.mrb[18].mxu1 }
 0x185   : > { %v672_v16 = vpop.f32.mrb[19].mxu0  ;;  %v1346_v17 = vpop.f32.mrb[19].mxu1  ;;  %v1181_v7 = vsub.s32 %v1178_v59, %v1180_v60 }
 0x18a   : > { %v777_v18 = vpop.f32.mrb[20].mxu0  ;;  %v818_v19 = vpop.f32.mrb[20].mxu1 }
 0x18b   : > { %v824_v20 = vadd.f32 %v777_v18, %v714_v9  ;;  %v826_v21 = vadd.f32 %v818_v19, %v716_v10  ;;  %v779_v22 = vpop.f32.mrb[21].mxu0  ;;  %v1351_v23 = vpop.f32.mrb[21].mxu1 }
 0x18c   : > { %v825_v24 = vadd.f32 %v779_v22, %v715_v13  ;;  %v781_v25 = vpop.f32.mrb[22].mxu0  ;;  %v821_v26 = vpop.f32.mrb[22].mxu1 }
 0x18d   : > { %v782_v27 = vpop.f32.mrb[23].mxu0  ;;  %v1352_v28 = vpop.f32.mrb[23].mxu1 }
 0x192   : > { %v887_v29 = vpop.f32.mrb[24].mxu0  ;;  %v928_v30 = vpop.f32.mrb[24].mxu1 }
 0x193   : > { %v934_v31 = vadd.f32 %v887_v29, %v824_v20  ;;  %v936_v32 = vadd.f32 %v928_v30, %v826_v21  ;;  %v889_v33 = vpop.f32.mrb[25].mxu0  ;;  %v1357_v34 = vpop.f32.mrb[25].mxu1 }
 0x194   : > { %v935_v35 = vadd.f32 %v889_v33, %v825_v24  ;;  %v891_v36 = vpop.f32.mrb[26].mxu0  ;;  %v931_v37 = vpop.f32.mrb[26].mxu1 }
 0x195   : > { %v892_v1 = vpop.f32.mrb[27].mxu0  ;;  %v1358_v38 = vpop.f32.mrb[27].mxu1 }
 0x19a   : > { %v997_v39 = vpop.f32.mrb[28].mxu0  ;;  %v1038_v0 = vpop.f32.mrb[28].mxu1 }
 0x19b   : > { %v1044_v40 = vadd.f32 %v997_v39, %v934_v31  ;;  %v1046_v41 = vadd.f32 %v1038_v0, %v936_v32  ;;  %v999_v42 = vpop.f32.mrb[29].mxu0  ;;  %v1363_v43 = vpop.f32.mrb[29].mxu1 }
 0x19c   : > { %v1045_v44 = vadd.f32 %v999_v42, %v935_v35  ;;  %v1001_v45 = vpop.f32.mrb[30].mxu0  ;;  %v1041_v46 = vpop.f32.mrb[30].mxu1 }
 0x19d   : > { %v1002_v47 = vpop.f32.mrb[31].mxu0  ;;  %v1364_v48 = vpop.f32.mrb[31].mxu1 }
 0x1a2   : > { %v1107_v53 = vpop.f32.mrb[32].mxu0  ;;  %v1148_v54 = vpop.f32.mrb[32].mxu1 }
 0x1a3   : > { %v1154_v55 = vadd.f32 %v1107_v53, %v1044_v40  ;;  %v1156_v56 = vadd.f32 %v1148_v54, %v1046_v41  ;;  %v1109_v57 = vpop.f32.mrb[33].mxu0  ;;  %v1369_v58 = vpop.f32.mrb[33].mxu1 }
 0x1a4   : > { %v1155_v61 = vadd.f32 %v1109_v57, %v1045_v44  ;;  %v1151_v62 = vpop.f32.mrb[34].mxu1  ;;  %v1111_v63 = vpop.f32.mrb[34].mxu0 }
 0x1a5   : > { %v1163_v2 = vadd.f32 %v1161_v52, %v1154_v55  ;;  %v1165_v3 = vadd.f32 %v1161_v52, %v1156_v56  ;;  %v1112_v4 = vpop.f32.mrb[35].mxu0  ;;  %v1370_v5 = vpop.f32.mrb[35].mxu1 }
 0x1a6   : > { %v1164_v6 = vadd.f32 %v1161_v52, %v1155_v61 }
 0x1a7   : > { %v1166_v8 = vmax.f32 %v1163_v2, 0.0  ;;  %v1168_v9 = vmax.f32 %v1165_v3, 0.0 }
 0x1a8   : > { %v1167_v10 = vmax.f32 %v1164_v6, 0.0 }
 0x1a9   : > { %v1171_v11 = vpack.c.bf16 %v1168_v9, %v1168_v9 }
 0x1aa   : > { %v1295_v12 = vpack.c.bf16 %v1167_v10, %v1166_v8 }
 0x1ab   : > { %v1189_v13 = vrot.slane %v1171_v11, %v1181_v7 }
 0x1ac   : > { %v1182_v14 = vrot.slane %v1295_v12, %v1181_v7 }
 0x1ae   : > { %v1190_v15 = vcombine.low %v1182_v14, %v1189_v13 }
 0x1b0   : > { %1192 = vst [vmem:[%s170_s24] sm:$0x3f] %v1190_v15 }
 0x1b1 PF: > { %s13_s12 = sadd.s32 1, %s1403_s12  }
 0x1b2   : > { %p10_p4 = scmp.ge.s32.totalorder %s13_s12, 4  }
 0x1b4   :  { %12 = sbr.rel (!%p10_p4) target bundleno = 1 (0x1), region = 70 }

// kernel: conv_autoencoder_forward.12
= control target key start
LH: loop header
LB: loop body
LE: loop exit
PB: predicated region body
PF: predicated region fallthrough
CT: control target
= control target key end

     0   :  { %s1376_s9 = smov 0   ;;  %s1799_s0 = inlined_call_operand.vmem [shape: bf16[2,4,256], index: 0, kind: input, shape index: {}]   ;;  %s1800_s1 = inlined_call_operand.vmem [shape: bf16[256,1024], index: 1, kind: input, shape index: {}]   ;;  %s1801_s2 = inlined_call_operand.vmem [shape: bf16[2,4,1024], index: 2, kind: output, shape index: {}]  }
   0x1 LB: > { %s1197_s10 = sadd.s32 4294967295, %s1358_s9   ;;  %p1201_p0 = scmp.ge.s32.totalorder %s1358_s9, 1  ;;  %s1358_s9 = sphi %s1376_s9, %s12_s9  }
   0x2   : > { %p112_p1 = scmp.lt.s32.totalorder %s1358_s9, 3 }
   0x4   : > { %p113_p2 = pnand %p1201_p0, %p112_p1 }
   0x5   : > { %v145_v0 = vld [vmem:[%s1800_s1] sm:$0xff] (!%p113_p2)  ;;  %v146_v2 = vld [vmem:[%s1800_s1 + $0x8] sm:$0xff] (!%p113_p2)  ;;  %p134_p3 = scmp.lt.s32.totalorder (!%p113_p2), %s1197_s10, 1 }
   0x6   : > { %116 = sbr.rel (%p113_p2) target bundleno = 357 (0x165), region = 28  ;;  %v149_v1 = vld [vmem:[%s1800_s1 + $0x20] sm:$0xff] (!%p113_p2)  ;;  %v150_v4 = vld [vmem:[%s1800_s1 + $0x28] sm:$0xff] (!%p113_p2) }
   0x7   : > { %v1208_v3 = vcombine.high (!%p113_p2), %v145_v0, %v149_v1  ;;  %v1207_v5 = vcombine.low (!%p113_p2), %v145_v0, %v149_v1  ;;  %v153_v6 = vld [vmem:[%s1800_s1 + $0x40] sm:$0xff] (!%p113_p2)  ;;  %v1210_v8 = vcombine.high (!%p113_p2), %v146_v2, %v150_v4  ;;  %v1209_v9 = vcombine.low (!%p113_p2), %v146_v2, %v150_v4  ;;  %v154_v11 = vld [vmem:[%s1800_s1 + $0x48] sm:$0xff] (!%p113_p2) }
   0x8   : > { %v157_v7 = vld [vmem:[%s1800_s1 + $0x60] sm:$0xff] (!%p113_p2)  ;;  %v158_v12 = vld [vmem:[%s1800_s1 + $0x68] sm:$0xff] (!%p113_p2) }
   0x9   : > { %v1216_v10 = vcombine.high (!%p113_p2), %v153_v6, %v157_v7  ;;  %v161_v13 = vld [vmem:[%s1800_s1 + $0x80] sm:$0xff] (!%p113_p2)  ;;  %924 = vmatprep.subr.bf16.mxu0 (!%p113_p2), %v1208_v3  ;;  %v1218_v14 = vcombine.high (!%p113_p2), %v154_v11, %v158_v12  ;;  %v162_v16 = vld [vmem:[%s1800_s1 + $0x88] sm:$0xff] (!%p113_p2)  ;;  %965 = vmatprep.subr.bf16.mxu1 (!%p113_p2), %v1210_v8  ;;  %v1215_v18 = vcombine.low (!%p113_p2), %v153_v6, %v157_v7 }
   0xa   : > { %v165_v15 = vld [vmem:[%s1800_s1 + $0xa0] sm:$0xff] (!%p113_p2)  ;;  %v166_v17 = vld [vmem:[%s1800_s1 + $0xa8] sm:$0xff] (!%p113_p2)  ;;  %925 = vmatpush1.bf16.msra.mxu0 (!%p113_p2), %v1207_v5  ;;  %966 = vmatpush1.bf16.msra.mxu1 (!%p113_p2), %v1209_v9  ;;  %v1217_v19 = vcombine.low (!%p113_p2), %v154_v11, %v158_v12 }
   0xb   : > { %926 = vmatprep.subr.bf16.mxu0 (!%p113_p2), %v1216_v10  ;;  %v1224_v20 = vcombine.high (!%p113_p2), %v161_v13, %v165_v15  ;;  %967 = vmatprep.subr.bf16.mxu1 (!%p113_p2), %v1218_v14  ;;  %v1226_v21 = vcombine.high (!%p113_p2), %v162_v16, %v166_v17  ;;  %v169_v22 = vld [vmem:[%s1800_s1 + $0xc0] sm:$0xff] (!%p113_p2)  ;;  %v170_v24 = vld [vmem:[%s1800_s1 + $0xc8] sm:$0xff] (!%p113_p2)  ;;  %v1223_v26 = vcombine.low (!%p113_p2), %v161_v13, %v165_v15 }
   0xc   : > { %v173_v23 = vld [vmem:[%s1800_s1 + $0xe0] sm:$0xff] (!%p113_p2)  ;;  %v174_v25 = vld [vmem:[%s1800_s1 + $0xe8] sm:$0xff] (!%p113_p2)  ;;  %v1225_v27 = vcombine.low (!%p113_p2), %v162_v16, %v166_v17 }
   0xd   : > { %v1232_v28 = vcombine.high %v169_v22, %v173_v23  ;;  %v1234_v29 = vcombine.high %v170_v24, %v174_v25  ;;  %v177_v30 = vld [vmem:[%s1800_s1 + $0x100] sm:$0xff]  ;;  %v178_v32 = vld [vmem:[%s1800_s1 + $0x108] sm:$0xff]  ;;  %s1803_s10 = smov (!%p134_p3, %s1197_s10), 1  ;;  %v1231_v34 = vcombine.low %v169_v22, %v173_v23  ;;  %v1233_v35 = vcombine.low %v170_v24, %v174_v25 }
   0xe   : > { %927 = vmatpush1.bf16.msra.mxu0 %v1215_v18  ;;  %968 = vmatpush1.bf16.msra.mxu1 %v1217_v19  ;;  %v181_v31 = vld [vmem:[%s1800_s1 + $0x120] sm:$0xff]  ;;  %v182_v33 = vld [vmem:[%s1800_s1 + $0x128] sm:$0xff]  ;;  %s1341_s5 = sshll.u32 %s1803_s10, 2  ;;  %s1342_s11 = sshll.u32 %s1803_s10, 4 }
   0xf   : > { %928 = vmatprep.subr.bf16.mxu0 %v1224_v20  ;;  %969 = vmatprep.subr.bf16.mxu1 %v1226_v21  ;;  %v1240_v36 = vcombine.high %v177_v30, %v181_v31  ;;  %v1242_v37 = vcombine.high %v178_v32, %v182_v33  ;;  %v185_v38 = vld [vmem:[%s1800_s1 + $0x140] sm:$0xff]  ;;  %v186_v40 = vld [vmem:[%s1800_s1 + $0x148] sm:$0xff]  ;;  %v1239_v42 = vcombine.low %v177_v30, %v181_v31  ;;  %s138_s14 = scalar_lea.vmem %s1799_s0, %s1341_s5 }
  0x10   : > { %v189_v39 = vld [vmem:[%s1800_s1 + $0x160] sm:$0xff]  ;;  %v190_v41 = vld [vmem:[%s1800_s1 + $0x168] sm:$0xff]  ;;  %v1241_v43 = vcombine.low %v178_v32, %v182_v33 }
  0x11   : > { %v1248_v44 = vcombine.high %v185_v38, %v189_v39  ;;  %v1250_v45 = vcombine.high %v186_v40, %v190_v41  ;;  %v193_v46 = vld [vmem:[%s1800_s1 + $0x180] sm:$0xff]  ;;  %v194_v48 = vld [vmem:[%s1800_s1 + $0x188] sm:$0xff]  ;;  %v1247_v50 = vcombine.low %v185_v38, %v189_v39  ;;  %v1249_v51 = vcombine.low %v186_v40, %v190_v41 }
  0x12   : > { %929 = vmatpush1.bf16.msra.mxu0 %v1223_v26  ;;  %970 = vmatpush1.bf16.msra.mxu1 %v1225_v27  ;;  %v197_v47 = vld [vmem:[%s1800_s1 + $0x1a0] sm:$0xff]  ;;  %v198_v49 = vld [vmem:[%s1800_s1 + $0x1a8] sm:$0xff] }
  0x13   : > { %930 = vmatprep.subr.bf16.mxu0 %v1232_v28  ;;  %971 = vmatprep.subr.bf16.mxu1 %v1234_v29  ;;  %v1256_v52 = vcombine.high %v193_v46, %v197_v47  ;;  %v1478_v53 = vld.sshfl [vmem:[%s138_s14] sm:$0x33 pattern:$0x76325410]  ;;  %v1258_v54 = vcombine.high %v194_v48, %v198_v49  ;;  %v202_v58 = vld [vmem:[%s1800_s1 + $0x1c8] sm:$0xff]  ;;  %v1255_v60 = vcombine.low %v193_v46, %v197_v47  ;;  %s143_s14 = scalar_lea.vmem %s1801_s2, %s1342_s11 }
  0x14   : > { %v201_v55 = vld [vmem:[%s1800_s1 + $0x1c0] sm:$0xff]  ;;  %v1488_v57 = vcombine.high %v1478_v53, %v1478_v53  ;;  %v206_v59 = vld [vmem:[%s1800_s1 + $0x1e8] sm:$0xff]  ;;  %v1257_v61 = vcombine.low %v194_v48, %v198_v49 }
  0x15   : > { %v205_v56 = vld [vmem:[%s1800_s1 + $0x1e0] sm:$0xff]  ;;  %v1266_v63 = vcombine.high %v202_v58, %v206_v59  ;;  %v210_v2 = vld [vmem:[%s1800_s1 + $0x208] sm:$0xff]  ;;  %v1265_v5 = vcombine.low %v202_v58, %v206_v59 }
  0x16   : > { %931 = vmatpush1.bf16.msra.mxu0 %v1231_v34  ;;  %972 = vmatpush1.bf16.msra.mxu1 %v1233_v35  ;;  %v1264_v62 = vcombine.high %v201_v55, %v205_v56  ;;  %v209_v0 = vld [vmem:[%s1800_s1 + $0x200] sm:$0xff]  ;;  %v214_v3 = vld [vmem:[%s1800_s1 + $0x228] sm:$0xff]  ;;  %v1263_v4 = vcombine.low %v201_v55, %v205_v56 }
  0x17   : > { %932 = vmatprep.subr.bf16.mxu0 %v1240_v36  ;;  %973 = vmatprep.subr.bf16.mxu1 %v1242_v37  ;;  %v213_v1 = vld [vmem:[%s1800_s1 + $0x220] sm:$0xff]  ;;  %v1274_v7 = vcombine.high %v210_v2, %v214_v3  ;;  %v218_v10 = vld [vmem:[%s1800_s1 + $0x248] sm:$0xff]  ;;  %v1273_v13 = vcombine.low %v210_v2, %v214_v3  ;;  %v147_v2 = vld [vmem:[%s1800_s1 + $0x10] sm:$0xff] }
  0x18   : > { %956 = vmatprep.mubr.bf16.mxu0 %v1488_v57  ;;  %997 = vmatprep.mubr.bf16.mxu1 %v1488_v57  ;;  %v1272_v6 = vcombine.high %v209_v0, %v213_v1  ;;  %v217_v8 = vld [vmem:[%s1800_s1 + $0x240] sm:$0xff]  ;;  %v222_v11 = vld [vmem:[%s1800_s1 + $0x268] sm:$0xff]  ;;  %v1271_v12 = vcombine.low %v209_v0, %v213_v1  ;;  %v151_v3 = vld [vmem:[%s1800_s1 + $0x30] sm:$0xff] }
  0x19   : > { %v221_v9 = vld [vmem:[%s1800_s1 + $0x260] sm:$0xff]  ;;  %v1282_v15 = vcombine.high %v218_v10, %v222_v11  ;;  %v226_v18 = vld [vmem:[%s1800_s1 + $0x288] sm:$0xff]  ;;  %v1281_v21 = vcombine.low %v218_v10, %v222_v11  ;;  %v155_v10 = vld [vmem:[%s1800_s1 + $0x50] sm:$0xff] }
  0x1a   : > { %933 = vmatpush1.bf16.msra.mxu0 %v1239_v42  ;;  %974 = vmatpush1.bf16.msra.mxu1 %v1241_v43  ;;  %v1280_v14 = vcombine.high %v217_v8, %v221_v9  ;;  %v225_v16 = vld [vmem:[%s1800_s1 + $0x280] sm:$0xff]  ;;  %v230_v19 = vld [vmem:[%s1800_s1 + $0x2a8] sm:$0xff]  ;;  %v1279_v20 = vcombine.low %v217_v8, %v221_v9  ;;  %v1212_v8 = vcombine.high %v147_v2, %v151_v3  ;;  %v159_v11 = vld [vmem:[%s1800_s1 + $0x70] sm:$0xff] }
  0x1b   : > { %934 = vmatprep.subr.bf16.mxu0 %v1248_v44  ;;  %975 = vmatprep.subr.bf16.mxu1 %v1250_v45  ;;  %v229_v17 = vld [vmem:[%s1800_s1 + $0x2a0] sm:$0xff]  ;;  %v1290_v23 = vcombine.high %v226_v18, %v230_v19  ;;  %v234_v26 = vld [vmem:[%s1800_s1 + $0x2c8] sm:$0xff]  ;;  %v1289_v29 = vcombine.low %v226_v18, %v230_v19  ;;  %v163_v18 = vld [vmem:[%s1800_s1 + $0x90] sm:$0xff] }
  0x1c   : > { %v1288_v22 = vcombine.high %v225_v16, %v229_v17  ;;  %v233_v24 = vld [vmem:[%s1800_s1 + $0x2c0] sm:$0xff]  ;;  %v238_v27 = vld [vmem:[%s1800_s1 + $0x2e8] sm:$0xff]  ;;  %v1287_v28 = vcombine.low %v225_v16, %v229_v17  ;;  %v1220_v16 = vcombine.high %v155_v10, %v159_v11  ;;  %v167_v19 = vld [vmem:[%s1800_s1 + $0xb0] sm:$0xff] }
  0x1d   : > { %v237_v25 = vld [vmem:[%s1800_s1 + $0x2e0] sm:$0xff]  ;;  %v1298_v31 = vcombine.high %v234_v26, %v238_v27  ;;  %v242_v34 = vld [vmem:[%s1800_s1 + $0x308] sm:$0xff]  ;;  %v1297_v37 = vcombine.low %v234_v26, %v238_v27  ;;  %v171_v26 = vld [vmem:[%s1800_s1 + $0xd0] sm:$0xff] }
  0x1e   : > { %935 = vmatpush1.bf16.msra.mxu0 %v1247_v50  ;;  %976 = vmatpush1.bf16.msra.mxu1 %v1249_v51  ;;  %v1296_v30 = vcombine.high %v233_v24, %v237_v25  ;;  %v241_v32 = vld [vmem:[%s1800_s1 + $0x300] sm:$0xff]  ;;  %v246_v35 = vld [vmem:[%s1800_s1 + $0x328] sm:$0xff]  ;;  %v1295_v36 = vcombine.low %v233_v24, %v237_v25  ;;  %v1228_v24 = vcombine.high %v163_v18, %v167_v19  ;;  %v175_v27 = vld [vmem:[%s1800_s1 + $0xf0] sm:$0xff] }
  0x1f   : > { %936 = vmatprep.subr.bf16.mxu0 %v1256_v52  ;;  %977 = vmatprep.subr.bf16.mxu1 %v1258_v54  ;;  %v245_v33 = vld [vmem:[%s1800_s1 + $0x320] sm:$0xff]  ;;  %v1306_v39 = vcombine.high %v242_v34, %v246_v35  ;;  %v250_v42 = vld [vmem:[%s1800_s1 + $0x348] sm:$0xff]  ;;  %v1305_v45 = vcombine.low %v242_v34, %v246_v35  ;;  %v179_v34 = vld [vmem:[%s1800_s1 + $0x110] sm:$0xff] }
  0x20   : > { %v1304_v38 = vcombine.high %v241_v32, %v245_v33  ;;  %v249_v40 = vld [vmem:[%s1800_s1 + $0x340] sm:$0xff]  ;;  %v254_v43 = vld [vmem:[%s1800_s1 + $0x368] sm:$0xff]  ;;  %v1303_v44 = vcombine.low %v241_v32, %v245_v33  ;;  %v1236_v32 = vcombine.high %v171_v26, %v175_v27  ;;  %v183_v35 = vld [vmem:[%s1800_s1 + $0x130] sm:$0xff] }
  0x21   : > { %v253_v41 = vld [vmem:[%s1800_s1 + $0x360] sm:$0xff]  ;;  %v1314_v47 = vcombine.high %v250_v42, %v254_v43  ;;  %v258_v50 = vld [vmem:[%s1800_s1 + $0x388] sm:$0xff]  ;;  %v1313_v54 = vcombine.low %v250_v42, %v254_v43  ;;  %v191_v42 = vld [vmem:[%s1800_s1 + $0x170] sm:$0xff] }
  0x22   : > { %937 = vmatpush1.bf16.msra.mxu0 %v1255_v60  ;;  %978 = vmatpush1.bf16.msra.mxu1 %v1257_v61  ;;  %v1312_v46 = vcombine.high %v249_v40, %v253_v41  ;;  %v257_v48 = vld [vmem:[%s1800_s1 + $0x380] sm:$0xff]  ;;  %v262_v51 = vld [vmem:[%s1800_s1 + $0x3a8] sm:$0xff]  ;;  %v1311_v52 = vcombine.low %v249_v40, %v253_v41  ;;  %v187_v41 = vld [vmem:[%s1800_s1 + $0x150] sm:$0xff] }
  0x23   : > { %938 = vmatprep.subr.bf16.mxu0 %v1264_v62  ;;  %979 = vmatprep.subr.bf16.mxu1 %v1266_v63  ;;  %v261_v49 = vld [vmem:[%s1800_s1 + $0x3a0] sm:$0xff]  ;;  %v1322_v56 = vcombine.high %v258_v50, %v262_v51  ;;  %v266_v60 = vld [vmem:[%s1800_s1 + $0x3c8] sm:$0xff]  ;;  %v1321_v63 = vcombine.low %v258_v50, %v262_v51  ;;  %v188_v43 = vld [vmem:[%s1800_s1 + $0x158] sm:$0xff] }
  0x24   : > { %v1320_v55 = vcombine.high %v257_v48, %v261_v49  ;;  %v265_v58 = vld [vmem:[%s1800_s1 + $0x3c0] sm:$0xff]  ;;  %v270_v61 = vld [vmem:[%s1800_s1 + $0x3e8] sm:$0xff]  ;;  %v1319_v62 = vcombine.low %v257_v48, %v261_v49  ;;  %v195_v49 = vld [vmem:[%s1800_s1 + $0x190] sm:$0xff] }
  0x25   : > { %v269_v59 = vld [vmem:[%s1800_s1 + $0x3e0] sm:$0xff]  ;;  %v1330_v1 = vcombine.high %v266_v60, %v270_v61  ;;  %v199_v50 = vld [vmem:[%s1800_s1 + $0x1b0] sm:$0xff]  ;;  %v196_v51 = vld [vmem:[%s1800_s1 + $0x198] sm:$0xff] }
  0x26   : > { %939 = vmatpush1.bf16.msra.mxu0 %v1263_v4  ;;  %980 = vmatpush1.bf16.msra.mxu1 %v1265_v5  ;;  %v1328_v0 = vcombine.high %v265_v58, %v269_v59  ;;  %v148_v4 = vld [vmem:[%s1800_s1 + $0x18] sm:$0xff] }
  0x27   : > { %940 = vmatprep.subr.bf16.mxu0 %v1272_v6  ;;  %981 = vmatprep.subr.bf16.mxu1 %v1274_v7  ;;  %v152_v5 = vld [vmem:[%s1800_s1 + $0x38] sm:$0xff]  ;;  %v1327_v6 = vcombine.low %v265_v58, %v269_v59  ;;  %v1329_v7 = vcombine.low %v266_v60, %v270_v61  ;;  %v203_v59 = vld [vmem:[%s1800_s1 + $0x1d0] sm:$0xff] }
  0x28   : > { %v1214_v9 = vcombine.high %v148_v4, %v152_v5  ;;  %v207_v60 = vld [vmem:[%s1800_s1 + $0x1f0] sm:$0xff]  ;;  %v204_v61 = vld [vmem:[%s1800_s1 + $0x1d8] sm:$0xff] }
  0x2a   : > { %941 = vmatpush1.bf16.msra.mxu0 %v1271_v12  ;;  %982 = vmatpush1.bf16.msra.mxu1 %v1273_v13  ;;  %v156_v12 = vld [vmem:[%s1800_s1 + $0x58] sm:$0xff] }
  0x2b   : > { %942 = vmatprep.subr.bf16.mxu0 %v1280_v14  ;;  %983 = vmatprep.subr.bf16.mxu1 %v1282_v15  ;;  %v160_v13 = vld [vmem:[%s1800_s1 + $0x78] sm:$0xff]  ;;  %v1211_v14 = vcombine.low %v147_v2, %v151_v3  ;;  %v1213_v15 = vcombine.low %v148_v4, %v152_v5  ;;  %v211_v3 = vld [vmem:[%s1800_s1 + $0x210] sm:$0xff] }
  0x2c   : > { %v1222_v17 = vcombine.high %v156_v12, %v160_v13  ;;  %v215_v4 = vld [vmem:[%s1800_s1 + $0x230] sm:$0xff]  ;;  %v212_v5 = vld [vmem:[%s1800_s1 + $0x218] sm:$0xff] }
  0x2e   : > { %943 = vmatpush1.bf16.msra.mxu0 %v1279_v20  ;;  %984 = vmatpush1.bf16.msra.mxu1 %v1281_v21  ;;  %v164_v20 = vld [vmem:[%s1800_s1 + $0x98] sm:$0xff] }
  0x2f   : > { %944 = vmatprep.subr.bf16.mxu0 %v1288_v22  ;;  %985 = vmatprep.subr.bf16.mxu1 %v1290_v23  ;;  %v168_v21 = vld [vmem:[%s1800_s1 + $0xb8] sm:$0xff]  ;;  %v1219_v22 = vcombine.low %v155_v10, %v159_v11  ;;  %v1221_v23 = vcombine.low %v156_v12, %v160_v13  ;;  %v219_v11 = vld [vmem:[%s1800_s1 + $0x250] sm:$0xff] }
  0x30   : > { %v1230_v25 = vcombine.high %v164_v20, %v168_v21  ;;  %v223_v12 = vld [vmem:[%s1800_s1 + $0x270] sm:$0xff]  ;;  %v220_v13 = vld [vmem:[%s1800_s1 + $0x258] sm:$0xff] }
  0x32   : > { %945 = vmatpush1.bf16.msra.mxu0 %v1287_v28  ;;  %986 = vmatpush1.bf16.msra.mxu1 %v1289_v29  ;;  %v172_v28 = vld [vmem:[%s1800_s1 + $0xd8] sm:$0xff] }
  0x33   : > { %946 = vmatprep.subr.bf16.mxu0 %v1296_v30  ;;  %987 = vmatprep.subr.bf16.mxu1 %v1298_v31  ;;  %v176_v29 = vld [vmem:[%s1800_s1 + $0xf8] sm:$0xff]  ;;  %v1227_v30 = vcombine.low %v163_v18, %v167_v19  ;;  %v1229_v31 = vcombine.low %v164_v20, %v168_v21  ;;  %v227_v19 = vld [vmem:[%s1800_s1 + $0x290] sm:$0xff] }
  0x34   : > { %v1238_v33 = vcombine.high %v172_v28, %v176_v29  ;;  %v231_v20 = vld [vmem:[%s1800_s1 + $0x2b0] sm:$0xff]  ;;  %v228_v21 = vld [vmem:[%s1800_s1 + $0x298] sm:$0xff] }
  0x36   : > { %947 = vmatpush1.bf16.msra.mxu0 %v1295_v36  ;;  %988 = vmatpush1.bf16.msra.mxu1 %v1297_v37  ;;  %v184_v36 = vld [vmem:[%s1800_s1 + $0x138] sm:$0xff]  ;;  %v1235_v37 = vcombine.low %v171_v26, %v175_v27  ;;  %v235_v27 = vld [vmem:[%s1800_s1 + $0x2d0] sm:$0xff] }
  0x37   : > { %948 = vmatprep.subr.bf16.mxu0 %v1304_v38  ;;  %989 = vmatprep.subr.bf16.mxu1 %v1306_v39  ;;  %v1237_v38 = vcombine.low %v172_v28, %v176_v29  ;;  %v1244_v39 = vcombine.high %v179_v34, %v183_v35  ;;  %v239_v28 = vld [vmem:[%s1800_s1 + $0x2f0] sm:$0xff]  ;;  %v236_v29 = vld [vmem:[%s1800_s1 + $0x2d8] sm:$0xff] }
  0x3a   : > { %949 = vmatpush1.bf16.msra.mxu0 %v1303_v44  ;;  %990 = vmatpush1.bf16.msra.mxu1 %v1305_v45  ;;  %v192_v44 = vld [vmem:[%s1800_s1 + $0x178] sm:$0xff]  ;;  %v1243_v45 = vcombine.low %v179_v34, %v183_v35  ;;  %v243_v35 = vld [vmem:[%s1800_s1 + $0x310] sm:$0xff] }
  0x3b   : > { %950 = vmatprep.subr.bf16.mxu0 %v1312_v46  ;;  %991 = vmatprep.subr.bf16.mxu1 %v1314_v47  ;;  %v1252_v47 = vcombine.high %v187_v41, %v191_v42  ;;  %v1254_v48 = vcombine.high %v188_v43, %v192_v44 }
  0x3e   : > { %951 = vmatpush1.bf16.msra.mxu0 %v1311_v52  ;;  %992 = vmatpush1.bf16.msra.mxu1 %v1313_v54  ;;  %v200_v52 = vld [vmem:[%s1800_s1 + $0x1b8] sm:$0xff]  ;;  %v1251_v54 = vcombine.low %v187_v41, %v191_v42  ;;  %v251_v42 = vld [vmem:[%s1800_s1 + $0x350] sm:$0xff] }
  0x3f   : > { %952 = vmatprep.subr.bf16.mxu0 %v1320_v55  ;;  %993 = vmatprep.subr.bf16.mxu1 %v1322_v56  ;;  %v1253_v55 = vcombine.low %v188_v43, %v192_v44  ;;  %v1260_v56 = vcombine.high %v195_v49, %v199_v50  ;;  %v1262_v58 = vcombine.high %v196_v51, %v200_v52  ;;  %v255_v43 = vld [vmem:[%s1800_s1 + $0x370] sm:$0xff]  ;;  %v252_v44 = vld [vmem:[%s1800_s1 + $0x358] sm:$0xff] }
  0x42   : > { %953 = vmatpush1.bf16.msra.mxu0 %v1319_v62  ;;  %994 = vmatpush1.bf16.msra.mxu1 %v1321_v63  ;;  %v208_v62 = vld [vmem:[%s1800_s1 + $0x1f8] sm:$0xff]  ;;  %v1259_v63 = vcombine.low %v195_v49, %v199_v50  ;;  %v259_v50 = vld [vmem:[%s1800_s1 + $0x390] sm:$0xff] }
  0x43   : > { %954 = vmatprep.subr.bf16.mxu0 %v1328_v0  ;;  %995 = vmatprep.subr.bf16.mxu1 %v1330_v1  ;;  %v1261_v0 = vcombine.low %v196_v51, %v200_v52  ;;  %v1268_v1 = vcombine.high %v203_v59, %v207_v60  ;;  %v1270_v2 = vcombine.high %v204_v61, %v208_v62  ;;  %v263_v51 = vld [vmem:[%s1800_s1 + $0x3b0] sm:$0xff]  ;;  %v260_v52 = vld [vmem:[%s1800_s1 + $0x398] sm:$0xff] }
  0x46   : > { %955 = vmatpush1.bf16.msra.mxu0 %v1327_v6  ;;  %996 = vmatpush1.bf16.msra.mxu1 %v1329_v7  ;;  %v216_v6 = vld [vmem:[%s1800_s1 + $0x238] sm:$0xff]  ;;  %v1267_v7 = vcombine.low %v203_v59, %v207_v60  ;;  %v267_v60 = vld [vmem:[%s1800_s1 + $0x3d0] sm:$0xff] }
  0x47   : > { %1006 = vmatprep.subr.bf16.mxu0 %v1212_v8  ;;  %1047 = vmatprep.subr.bf16.mxu1 %v1214_v9  ;;  %v1269_v8 = vcombine.low %v204_v61, %v208_v62  ;;  %v1276_v9 = vcombine.high %v211_v3, %v215_v4  ;;  %v1278_v10 = vcombine.high %v212_v5, %v216_v6  ;;  %v271_v61 = vld [vmem:[%s1800_s1 + $0x3f0] sm:$0xff]  ;;  %v268_v62 = vld [vmem:[%s1800_s1 + $0x3d8] sm:$0xff] }
  0x49   : > { %957 = vmatmul.mubr.bf16.vlgmr.msra.gmra.mrb[0].mxu0 %v1478_v53  ;;  %998 = vmatmul.mubr.bf16.vlgmr.msra.gmra.mrb[0].mxu1 %v1478_v53 }
  0x4a   : > { %1007 = vmatpush1.bf16.msra.mxu0 %v1211_v14  ;;  %1048 = vmatpush1.bf16.msra.mxu1 %v1213_v15  ;;  %v224_v14 = vld [vmem:[%s1800_s1 + $0x278] sm:$0xff]  ;;  %v1275_v15 = vcombine.low %v211_v3, %v215_v4  ;;  %v1331_v4 = vcombine.low %v267_v60, %v271_v61 }
  0x4b   : > { %1008 = vmatprep.subr.bf16.mxu0 %v1220_v16  ;;  %1049 = vmatprep.subr.bf16.mxu1 %v1222_v17  ;;  %v1277_v16 = vcombine.low %v212_v5, %v216_v6  ;;  %v1284_v17 = vcombine.high %v219_v11, %v223_v12  ;;  %v1286_v18 = vcombine.high %v220_v13, %v224_v14  ;;  %v1360_v6 = vmov 1983009808  }
  0x4c   : > { %1038 = vmatprep.mubr.bf16.mxu0 %v1488_v57  ;;  %1079 = vmatprep.mubr.bf16.mxu1 %v1488_v57  ;;  %v180_v57 = vld [vmem:[%s1800_s1 + $0x118] sm:$0xff] }
  0x4d   : > { %v1246_v40 = vcombine.high %v180_v57, %v184_v36  ;;  %v1245_v46 = vcombine.low %v180_v57, %v184_v36  ;;  %v247_v57 = vld [vmem:[%s1800_s1 + $0x330] sm:$0xff]  ;;  %v244_v36 = vld [vmem:[%s1800_s1 + $0x318] sm:$0xff] }
  0x4e   : > { %1009 = vmatpush1.bf16.msra.mxu0 %v1219_v22  ;;  %1050 = vmatpush1.bf16.msra.mxu1 %v1221_v23  ;;  %v232_v22 = vld [vmem:[%s1800_s1 + $0x2b8] sm:$0xff]  ;;  %v1283_v23 = vcombine.low %v219_v11, %v223_v12 }
  0x4f   : > { %1010 = vmatprep.subr.bf16.mxu0 %v1228_v24  ;;  %1051 = vmatprep.subr.bf16.mxu1 %v1230_v25  ;;  %v1285_v24 = vcombine.low %v220_v13, %v224_v14  ;;  %v1292_v25 = vcombine.high %v227_v19, %v231_v20  ;;  %v1294_v26 = vcombine.high %v228_v21, %v232_v22 }
  0x52   : > { %1011 = vmatpush1.bf16.msra.mxu0 %v1227_v30  ;;  %1052 = vmatpush1.bf16.msra.mxu1 %v1229_v31  ;;  %v240_v30 = vld [vmem:[%s1800_s1 + $0x2f8] sm:$0xff]  ;;  %v1291_v31 = vcombine.low %v227_v19, %v231_v20 }
  0x53   : > { %1012 = vmatprep.subr.bf16.mxu0 %v1236_v32  ;;  %1053 = vmatprep.subr.bf16.mxu1 %v1238_v33  ;;  %v1293_v32 = vcombine.low %v228_v21, %v232_v22  ;;  %v1300_v33 = vcombine.high %v235_v27, %v239_v28  ;;  %v1302_v34 = vcombine.high %v236_v29, %v240_v30 }
  0x56   : > { %1013 = vmatpush1.bf16.msra.mxu0 %v1235_v37  ;;  %1054 = vmatpush1.bf16.msra.mxu1 %v1237_v38  ;;  %v248_v37 = vld [vmem:[%s1800_s1 + $0x338] sm:$0xff]  ;;  %v1299_v38 = vcombine.low %v235_v27, %v239_v28 }
  0x57   : > { %1014 = vmatprep.subr.bf16.mxu0 %v1244_v39  ;;  %1055 = vmatprep.subr.bf16.mxu1 %v1246_v40  ;;  %v1301_v39 = vcombine.low %v236_v29, %v240_v30  ;;  %v1308_v40 = vcombine.high %v243_v35, %v247_v57  ;;  %v1310_v41 = vcombine.high %v244_v36, %v248_v37 }
  0x5a   : > { %1015 = vmatpush1.bf16.msra.mxu0 %v1243_v45  ;;  %1056 = vmatpush1.bf16.msra.mxu1 %v1245_v46  ;;  %v256_v45 = vld [vmem:[%s1800_s1 + $0x378] sm:$0xff]  ;;  %v1307_v46 = vcombine.low %v243_v35, %v247_v57 }
  0x5b   : > { %1016 = vmatprep.subr.bf16.mxu0 %v1252_v47  ;;  %1057 = vmatprep.subr.bf16.mxu1 %v1254_v48  ;;  %v1309_v47 = vcombine.low %v244_v36, %v248_v37  ;;  %v1316_v48 = vcombine.high %v251_v42, %v255_v43  ;;  %v1318_v49 = vcombine.high %v252_v44, %v256_v45 }
  0x5e   : > { %1017 = vmatpush1.bf16.msra.mxu0 %v1251_v54  ;;  %1058 = vmatpush1.bf16.msra.mxu1 %v1253_v55  ;;  %v264_v54 = vld [vmem:[%s1800_s1 + $0x3b8] sm:$0xff]  ;;  %v1315_v55 = vcombine.low %v251_v42, %v255_v43 }
  0x5f   : > { %1018 = vmatprep.subr.bf16.mxu0 %v1260_v56  ;;  %1059 = vmatprep.subr.bf16.mxu1 %v1262_v58  ;;  %v1317_v56 = vcombine.low %v252_v44, %v256_v45  ;;  %v1324_v58 = vcombine.high %v259_v50, %v263_v51  ;;  %v1326_v59 = vcombine.high %v260_v52, %v264_v54 }
  0x62   : > { %1019 = vmatpush1.bf16.msra.mxu0 %v1259_v63  ;;  %1060 = vmatpush1.bf16.msra.mxu1 %v1261_v0  ;;  %v272_v63 = vld [vmem:[%s1800_s1 + $0x3f8] sm:$0xff]  ;;  %v1323_v0 = vcombine.low %v259_v50, %v263_v51 }
  0x63   : > { %1020 = vmatprep.subr.bf16.mxu0 %v1268_v1  ;;  %1061 = vmatprep.subr.bf16.mxu1 %v1270_v2  ;;  %v1325_v1 = vcombine.low %v260_v52, %v264_v54  ;;  %v1332_v2 = vcombine.high %v267_v60, %v271_v61  ;;  %v1334_v3 = vcombine.high %v268_v62, %v272_v63 }
  0x64   : > { %v1333_v5 = vcombine.low %v268_v62, %v272_v63 }
  0x66   : > { %1021 = vmatpush1.bf16.msra.mxu0 %v1267_v7  ;;  %1062 = vmatpush1.bf16.msra.mxu1 %v1269_v8  ;;  %v1107_v7 = vunpack.c.l.s4 %v1360_v6  ;;  %v1109_v8 = vlaneseq }
  0x67   : > { %1022 = vmatprep.subr.bf16.mxu0 %v1276_v9  ;;  %1063 = vmatprep.subr.bf16.mxu1 %v1278_v10 }
  0x68   : > { %v1108_v9 = vunpack.c.0.s8 %v1107_v7  ;;  %v1110_v10 = vshrl.u32 %v1109_v8, 7 }
  0x6a   : > { %1023 = vmatpush1.bf16.msra.mxu0 %v1275_v15  ;;  %1064 = vmatpush1.bf16.msra.mxu1 %v1277_v16  ;;  %v1111_v12 = vsub.s32 %v1108_v9, %v1110_v10 }
  0x6b   : > { %1024 = vmatprep.subr.bf16.mxu0 %v1284_v17  ;;  %1065 = vmatprep.subr.bf16.mxu1 %v1286_v18 }
  0x6e   : > { %1025 = vmatpush1.bf16.msra.mxu0 %v1283_v23  ;;  %1066 = vmatpush1.bf16.msra.mxu1 %v1285_v24 }
  0x6f   : > { %1026 = vmatprep.subr.bf16.mxu0 %v1292_v25  ;;  %1067 = vmatprep.subr.bf16.mxu1 %v1294_v26 }
  0x72   : > { %1027 = vmatpush1.bf16.msra.mxu0 %v1291_v31  ;;  %1068 = vmatpush1.bf16.msra.mxu1 %v1293_v32 }
  0x73   : > { %1028 = vmatprep.subr.bf16.mxu0 %v1300_v33  ;;  %1069 = vmatprep.subr.bf16.mxu1 %v1302_v34 }
  0x76   : > { %1029 = vmatpush1.bf16.msra.mxu0 %v1299_v38  ;;  %1070 = vmatpush1.bf16.msra.mxu1 %v1301_v39 }
  0x77   : > { %1030 = vmatprep.subr.bf16.mxu0 %v1308_v40  ;;  %1071 = vmatprep.subr.bf16.mxu1 %v1310_v41 }
  0x7a   : > { %1031 = vmatpush1.bf16.msra.mxu0 %v1307_v46  ;;  %1072 = vmatpush1.bf16.msra.mxu1 %v1309_v47 }
  0x7b   : > { %1032 = vmatprep.subr.bf16.mxu0 %v1316_v48  ;;  %1073 = vmatprep.subr.bf16.mxu1 %v1318_v49 }
  0x7e   : > { %1033 = vmatpush1.bf16.msra.mxu0 %v1315_v55  ;;  %1074 = vmatpush1.bf16.msra.mxu1 %v1317_v56 }
  0x7f   : > { %1034 = vmatprep.subr.bf16.mxu0 %v1324_v58  ;;  %1075 = vmatprep.subr.bf16.mxu1 %v1326_v59 }
  0x82   : > { %1035 = vmatpush1.bf16.msra.mxu0 %v1323_v0  ;;  %1076 = vmatpush1.bf16.msra.mxu1 %v1325_v1 }
  0x83   : > { %1036 = vmatprep.subr.bf16.mxu0 %v1332_v2  ;;  %1077 = vmatprep.subr.bf16.mxu1 %v1334_v3 }
  0x86   : > { %1037 = vmatpush1.bf16.msra.mxu0 %v1331_v4  ;;  %1078 = vmatpush1.bf16.msra.mxu1 %v1333_v5 }
  0x89   : > { %1039 = vmatmul.mubr.bf16.vlgmr.msra.gmra.mrb[4].mxu0 %v1478_v53  ;;  %1080 = vmatmul.mubr.bf16.vlgmr.msra.gmra.mrb[4].mxu1 %v1478_v53 }
 0x11c   : > { %v958_v11 = vpop.f32.mrb[0].mxu0  ;;  %v999_v13 = vpop.f32.mrb[0].mxu1 }
 0x11d   : > { %v960_v14 = vpop.f32.mrb[1].mxu0  ;;  %v1001_v16 = vpop.f32.mrb[1].mxu1 }
 0x11e   : > { %v1335_v15 = vpack.c.bf16 %v960_v14, %v958_v11  ;;  %v962_v17 = vpop.f32.mrb[2].mxu0  ;;  %v1336_v18 = vpack.c.bf16 %v1001_v16, %v999_v13  ;;  %v1003_v19 = vpop.f32.mrb[2].mxu1 }
 0x11f   : > { %v963_v20 = vpop.f32.mrb[3].mxu0  ;;  %v1004_v22 = vpop.f32.mrb[3].mxu1 }
 0x120   : > { %v1112_v21 = vrot.slane %v1335_v15, %v1111_v12  ;;  %v1119_v23 = vrot.slane %v1336_v18, %v1111_v12 }
 0x122   : > { %v1120_v53 = vcombine.low %v1112_v21, %v1119_v23 }
 0x124   : > { %1140 = vst [vmem:[%s143_s14] sm:$0xff] %v1120_v53 }
 0x15c   : > { %v1040_v24 = vpop.f32.mrb[4].mxu0  ;;  %v1081_v25 = vpop.f32.mrb[4].mxu1 }
 0x15d   : > { %v1042_v26 = vpop.f32.mrb[5].mxu0  ;;  %v1083_v28 = vpop.f32.mrb[5].mxu1 }
 0x15e   : > { %v1337_v27 = vpack.c.bf16 %v1042_v26, %v1040_v24  ;;  %v1044_v29 = vpop.f32.mrb[6].mxu0  ;;  %v1338_v30 = vpack.c.bf16 %v1083_v28, %v1081_v25  ;;  %v1085_v31 = vpop.f32.mrb[6].mxu1 }
 0x15f   : > { %v1045_v32 = vpop.f32.mrb[7].mxu0  ;;  %v1086_v34 = vpop.f32.mrb[7].mxu1 }
 0x160   : > { %v1129_v33 = vrot.slane %v1337_v27, %v1111_v12  ;;  %v1136_v35 = vrot.slane %v1338_v30, %v1111_v12 }
 0x162   : > { %v1137_v57 = vcombine.low %v1129_v33, %v1136_v35 }
 0x164   : > { %1141 = vst [vmem:[%s143_s14 + $0x8] sm:$0xff] %v1137_v57 }
 0x165 PF: > { %s12_s9 = sadd.s32 1, %s1358_s9  }
 0x166   : > { %p9_p4 = scmp.ge.s32.totalorder %s12_s9, 4  }
 0x168   :  { %11 = sbr.rel (!%p9_p4) target bundleno = 1 (0x1), region = 58 }

// kernel: conv_autoencoder_forward.13
= control target key start
LH: loop header
LB: loop body
LE: loop exit
PB: predicated region body
PF: predicated region fallthrough
CT: control target
= control target key end

     0   :  { %s3002_s12 = smov 0   ;;  %s3454_s0 = inlined_call_operand.vmem [shape: bf16[2,4,1222], index: 0, kind: input, shape index: {}]   ;;  %s3455_s1 = inlined_call_operand.vmem [shape: bf16[9,3,4], index: 1, kind: input, shape index: {}]   ;;  %s3456_s2 = inlined_call_operand.vmem [shape: f32[3,1], index: 2, kind: input, shape index: {}]   ;;  %s3457_s3 = inlined_call_operand.vmem [shape: f32[2,3,1152], index: 3, kind: output, shape index: {}]  }
   0x1 LB: > { %s2748_s13 = sadd.s32 4294967295, %s2968_s12   ;;  %p2752_p0 = scmp.ge.s32.totalorder %s2968_s12, 1  ;;  %s2968_s12 = sphi %s3002_s12, %s13_s12  }
   0x2   : > { %p137_p1 = scmp.lt.s32.totalorder %s2968_s12, 3 }
   0x4   : > { %p138_p2 = pnand %p2752_p0, %p137_p1 }
   0x5   : > { %p161_p3 = scmp.lt.s32.totalorder (!%p138_p2), %s2748_s13, 1  ;;  %v185_v0 = vlaneseq (!%p138_p2)  ;;  %v2970_v1 = vmov (!%p138_p2), 1983009808   ;;  %v2971_v6 = vmov (!%p138_p2), 0   ;;  %s2972_s18 = smov (!%p138_p2), 127   ;;  %vm243_vm0 = vcmask (!%p138_p2), 1039360  }
   0x6   : > { %141 = sbr.rel (%p138_p2) target bundleno = 548 (0x224), region = 32  ;;  %v183_v2 = vunpack.c.l.s4 (!%p138_p2), %v2970_v1  ;;  %317 = vmatprep.mubr.bf16.mxu0 (!%p138_p2), %v2971_v6  ;;  %358 = vmatprep.mubr.bf16.mxu1 (!%p138_p2), %v2971_v6  ;;  %s2973_s19 = smov (!%p138_p2), 126   ;;  %vm257_vm1 = vcmask (!%p138_p2), 1041408   ;;  %v2755_v28 = vld [vmem:[%s3455_s1 + $0x2] sm:$0x3] (!%p138_p2)  ;;  %vm253_vm2 = vcmask (!%p138_p2), 31744  }
   0x7   : > { %v186_v3 = vshrl.u32 (!%p138_p2), %v185_v0, 7  ;;  %2941 = vset.pattern.permute.xlu0 (!%p138_p2), %v2971_v6  ;;  %s2974_s20 = smov (!%p138_p2), 94   ;;  %s2975_s21 = smov (!%p138_p2), 93   ;;  %v2979_v41 = vmov (!%p138_p2), 0.0   ;;  %vm2980_vm3 = vmmov (!%p138_p2), 0   ;;  %vm745_vm4 = vcmask (!%p138_p2), 1031168  }
   0x8   : > { %v184_v4 = vunpack.c.0.s8 (!%p138_p2), %v183_v2  ;;  %s2976_s22 = smov (!%p138_p2), 92   ;;  %s2977_s23 = smov (!%p138_p2), 60   ;;  %v175_v53 = vld [vmem:[%s3455_s1] sm:$0x3] (!%p138_p2)  ;;  %vm1020_vm5 = vcmask (!%p138_p2), 769024   ;;  %vm1295_vm6 = vcmask (!%p138_p2), 760832  }
   0x9   : > { %s2978_s24 = smov (!%p138_p2), 59   ;;  %s2981_s29 = smov (!%p138_p2), 58   ;;  %vm1570_vm7 = vcmask (!%p138_p2), 752640   ;;  %vm1845_vm8 = vcmask (!%p138_p2), 490496   ;;  %vm2120_vm9 = vcmask (!%p138_p2), 482304   ;;  %vm2395_vm10 = vcmask (!%p138_p2), 474112  }
   0xa   : > { %v187_v5 = vsub.s32 (!%p138_p2), %v184_v4, %v186_v3 }
   0xd   : > { %s3459_s13 = smov (!%p161_p3, %s2748_s13), 1 }
   0xe   : > { %s2919_s14 = smul.u32 20, %s3459_s13 }
  0x10   : > { %s165_s17 = scalar_lea.vmem %s3454_s0, %s2919_s14 }
  0x11   : > { %v172_v7 = vld [vmem:[%s165_s17] sm:$0xff]  ;;  %v173_v10 = vld [vmem:[%s165_s17 + $0x8] sm:$0xff]  ;;  %v3049_v19 = vld.sshfl [vmem:[%s165_s17 + $0x10] sm:$0x33 pattern:$0x76325410] }
  0x12   : > { %v3019_v8 = vrot.slane %v172_v7, %v187_v5  ;;  %v181_v9 = vcombine.high %v172_v7, %v172_v7  ;;  %v3033_v14 = vrot.slane %v173_v10, %v187_v5  ;;  %v198_v15 = vcombine.high %v173_v10, %v173_v10 }
  0x13   : > { %v3055_v20 = vcombine.high %v3049_v19, %v3049_v19  ;;  %v517_v61 = vsel %vm257_vm1, %v3049_v19, 0 }
  0x14   : > { %223 = vrot.lane.b32.xlu0 %v3019_v8, %s2972_s18  ;;  %v3022_v11 = vrot.slane %v181_v9, %v187_v5  ;;  %v3026_v12 = vcombine.high %v3019_v8, %v3019_v8  ;;  %v3039_v16 = vcombine.high %v3033_v14, %v3033_v14  ;;  %v3041_v17 = vrot.slane %v198_v15, %v187_v5 }
  0x15   : > { %v493_v47 = vsel %vm257_vm1, %v3019_v8, 0  ;;  %v505_v54 = vsel %vm257_vm1, %v3033_v14, 0 }
  0x16   : > { %227 = vrot.lane.b32.xlu1 %v3022_v11, %s2972_s18  ;;  %v3031_v13 = vcombine.high %v3022_v11, %v3022_v11  ;;  %v3047_v18 = vcombine.high %v3041_v17, %v3041_v17  ;;  %v499_v50 = vsel %vm257_vm1, %v3022_v11, 0  ;;  %v511_v57 = vsel %vm257_vm1, %v3041_v17, 0 }
  0x18   : > { %225 = vrot.lane.b32.xlu0 %v3026_v12, %s2972_s18 }
  0x1a   : > { %229 = vrot.lane.b32.xlu1 %v3031_v13, %s2972_s18 }
  0x1c   : > { %231 = vrot.lane.b32.xlu0 %v3033_v14, %s2972_s18 }
  0x1e   : > { %233 = vrot.lane.b32.xlu1 %v3039_v16, %s2972_s18 }
  0x20   : > { %235 = vrot.lane.b32.xlu0 %v3041_v17, %s2972_s18 }
  0x22   : > { %237 = vrot.lane.b32.xlu1 %v3047_v18, %s2972_s18 }
  0x24   : > { %239 = vrot.lane.b32.xlu0 %v3049_v19, %s2972_s18 }
  0x26   : > { %241 = vrot.lane.b32.xlu1 %v3055_v20, %s2972_s18 }
  0x28   : > { %725 = vrot.lane.b32.xlu0 %v3019_v8, %s2973_s19 }
  0x2a   : > { %727 = vrot.lane.b32.xlu1 %v3026_v12, %s2973_s19 }
  0x2c   : > { %729 = vrot.lane.b32.xlu0 %v3022_v11, %s2973_s19 }
  0x2e   : > { %731 = vrot.lane.b32.xlu1 %v3031_v13, %s2973_s19 }
  0x30   : > { %733 = vrot.lane.b32.xlu0 %v3033_v14, %s2973_s19 }
  0x32   : > { %735 = vrot.lane.b32.xlu1 %v3039_v16, %s2973_s19 }
  0x34   : > { %737 = vrot.lane.b32.xlu0 %v3041_v17, %s2973_s19 }
  0x36   : > { %739 = vrot.lane.b32.xlu1 %v3047_v18, %s2973_s19 }
  0x38   : > { %741 = vrot.lane.b32.xlu0 %v3049_v19, %s2973_s19 }
  0x3a   : > { %743 = vrot.lane.b32.xlu1 %v3055_v20, %s2973_s19 }
  0x3c   : > { %1000 = vrot.lane.b32.xlu0 %v3019_v8, %s2974_s20 }
  0x3e   : > { %1002 = vrot.lane.b32.xlu1 %v3026_v12, %s2974_s20 }
  0x40   : > { %1004 = vrot.lane.b32.xlu0 %v3022_v11, %s2974_s20 }
  0x42   : > { %1006 = vrot.lane.b32.xlu1 %v3031_v13, %s2974_s20 }
  0x44   : > { %1008 = vrot.lane.b32.xlu0 %v3033_v14, %s2974_s20 }
  0x46   : > { %1010 = vrot.lane.b32.xlu1 %v3039_v16, %s2974_s20 }
  0x48   : > { %1012 = vrot.lane.b32.xlu0 %v3041_v17, %s2974_s20 }
  0x4a   : > { %1014 = vrot.lane.b32.xlu1 %v3047_v18, %s2974_s20 }
  0x4c   : > { %1016 = vrot.lane.b32.xlu0 %v3049_v19, %s2974_s20 }
  0x4e   : > { %1018 = vrot.lane.b32.xlu1 %v3055_v20, %s2974_s20 }
  0x50   : > { %1275 = vrot.lane.b32.xlu0 %v3019_v8, %s2975_s21 }
  0x52   : > { %1277 = vrot.lane.b32.xlu1 %v3026_v12, %s2975_s21 }
  0x54   : > { %1279 = vrot.lane.b32.xlu0 %v3022_v11, %s2975_s21 }
  0x56   : > { %1281 = vrot.lane.b32.xlu1 %v3031_v13, %s2975_s21 }
  0x58   : > { %1283 = vrot.lane.b32.xlu0 %v3033_v14, %s2975_s21 }
  0x5a   : > { %1285 = vrot.lane.b32.xlu1 %v3039_v16, %s2975_s21 }
  0x5c   : > { %1287 = vrot.lane.b32.xlu0 %v3041_v17, %s2975_s21 }
  0x5e   : > { %1289 = vrot.lane.b32.xlu1 %v3047_v18, %s2975_s21 }
  0x60   : > { %1291 = vrot.lane.b32.xlu0 %v3049_v19, %s2975_s21 }
  0x62   : > { %1293 = vrot.lane.b32.xlu1 %v3055_v20, %s2975_s21  ;;  %s2920_s21 = smul.u32 36, %s3459_s13 }
  0x64   : > { %1550 = vrot.lane.b32.xlu0 %v3019_v8, %s2976_s22 }
  0x66   : > { %1552 = vrot.lane.b32.xlu1 %v3026_v12, %s2976_s22 }
  0x68   : > { %1554 = vrot.lane.b32.xlu0 %v3022_v11, %s2976_s22 }
  0x6a   : > { %1556 = vrot.lane.b32.xlu1 %v3031_v13, %s2976_s22 }
  0x6c   : > { %1558 = vrot.lane.b32.xlu0 %v3033_v14, %s2976_s22 }
  0x6e   : > { %1560 = vrot.lane.b32.xlu1 %v3039_v16, %s2976_s22 }
  0x70   : > { %1562 = vrot.lane.b32.xlu0 %v3041_v17, %s2976_s22 }
  0x72   : > { %1564 = vrot.lane.b32.xlu1 %v3047_v18, %s2976_s22 }
  0x74   : > { %1566 = vrot.lane.b32.xlu0 %v3049_v19, %s2976_s22 }
  0x76   : > { %1568 = vrot.lane.b32.xlu1 %v3055_v20, %s2976_s22 }
  0x78   : > { %1825 = vrot.lane.b32.xlu0 %v3019_v8, %s2977_s23 }
  0x7a   : > { %1827 = vrot.lane.b32.xlu1 %v3026_v12, %s2977_s23 }
  0x7c   : > { %1829 = vrot.lane.b32.xlu0 %v3022_v11, %s2977_s23 }
  0x7e   : > { %1831 = vrot.lane.b32.xlu1 %v3031_v13, %s2977_s23 }
  0x80   : > { %1833 = vrot.lane.b32.xlu0 %v3033_v14, %s2977_s23 }
  0x82   : > { %1835 = vrot.lane.b32.xlu1 %v3039_v16, %s2977_s23 }
  0x84   : > { %1837 = vrot.lane.b32.xlu0 %v3041_v17, %s2977_s23 }
  0x86   : > { %v224_v21 = vpop.permute.xlu0 %223  ;;  %1839 = vrot.lane.b32.xlu1 %v3047_v18, %s2977_s23 }
  0x88   : > { %v228_v22 = vpop.permute.xlu1 %227  ;;  %1841 = vrot.lane.b32.xlu0 %v3049_v19, %s2977_s23 }
  0x8a   : > { %v226_v23 = vpop.permute.xlu0 %225  ;;  %1843 = vrot.lane.b32.xlu1 %v3055_v20, %s2977_s23 }
  0x8b   : > { %v245_v24 = vsel %vm243_vm0, %v226_v23, %v228_v22  ;;  %v244_v25 = vsel %vm243_vm0, %v224_v21, %v226_v23 }
  0x8c   : > { %2757 = vmatprep.subr.msk.bf16.mxu0 %vm257_vm1, %v245_v24  ;;  %v230_v26 = vpop.permute.xlu1 %229  ;;  %v259_v27 = vsel %vm257_vm1, %v244_v25, 0  ;;  %2100 = vrot.lane.b32.xlu0 %v3019_v8, %s2978_s24 }
  0x8d   : > { %286 = vmatpush1.bf16.msra.mxu0 %v259_v27  ;;  %v246_v29 = vsel %vm243_vm0, %v228_v22, %v230_v26 }
  0x8e   : > { %v232_v30 = vpop.permute.xlu0 %231  ;;  %2102 = vrot.lane.b32.xlu1 %v3026_v12, %s2978_s24  ;;  %v265_v33 = vsel %vm257_vm1, %v246_v29, 0 }
  0x8f   : > { %v247_v31 = vsel %vm243_vm0, %v230_v26, %v232_v30 }
  0x90   : > { %2758 = vmatmul.mubr.msk.bf16.vlgmr.msra.gmra.mrb[0].mxu0 %vm253_vm2, %v2755_v28  ;;  %2759 = vmatprep.subr.msk.bf16.mxu1 %vm257_vm1, %v247_v31  ;;  %v234_v32 = vpop.permute.xlu1 %233 }
  0x91   : > { %v248_v34 = vsel %vm243_vm0, %v232_v30, %v234_v32  ;;  %327 = vmatpush1.bf16.msra.mxu1 %v265_v33  ;;  %399 = vmatprep.mubr.bf16.mxu0 %v2971_v6 }
  0x92   : > { %v236_v35 = vpop.permute.xlu0 %235  ;;  %2104 = vrot.lane.b32.xlu0 %v3022_v11, %s2978_s24  ;;  %2106 = vrot.lane.b32.xlu1 %v3031_v13, %s2978_s24  ;;  %v271_v37 = vsel %vm257_vm1, %v248_v34, 0 }
  0x93   : > { %v249_v36 = vsel %vm243_vm0, %v234_v32, %v236_v35 }
  0x94   : > { %2760 = vmatmul.mubr.msk.bf16.vlgmr.msra.gmra.mrb[0].mxu1 %vm253_vm2, %v2755_v28  ;;  %2761 = vmatprep.subr.msk.bf16.mxu0 %vm257_vm1, %v249_v36  ;;  %v238_v38 = vpop.permute.xlu1 %237 }
  0x95   : > { %v250_v39 = vsel %vm243_vm0, %v236_v35, %v238_v38  ;;  %368 = vmatpush1.bf16.msra.mxu0 %v271_v37  ;;  %440 = vmatprep.mubr.bf16.mxu1 %v2971_v6 }
  0x96   : > { %v240_v40 = vpop.permute.xlu0 %239  ;;  %2865 = vmatprep.subr.bf16.mxu0 %v2979_v41  ;;  %2108 = vrot.lane.b32.xlu0 %v3033_v14, %s2978_s24  ;;  %v277_v43 = vsel %vm257_vm1, %v250_v39, 0 }
  0x97   : > { %v251_v42 = vsel %vm243_vm0, %v238_v38, %v240_v40  ;;  %2110 = vrot.lane.b32.xlu1 %v3039_v16, %s2978_s24  ;;  %v2785_v38 = vld [vmem:[%s3455_s1 + $0x6] sm:$0x3] }
  0x98   : > { %2762 = vmatmul.mubr.msk.bf16.vlgmr.msra.gmra.mrb[4].mxu0 %vm253_vm2, %v2755_v28  ;;  %2763 = vmatprep.subr.msk.bf16.mxu1 %vm257_vm1, %v251_v42  ;;  %v242_v44 = vpop.permute.xlu1 %241 }
  0x99   : > { %v252_v45 = vsel %vm243_vm0, %v240_v40, %v242_v44  ;;  %409 = vmatpush1.bf16.msra.mxu1 %v277_v43  ;;  %2867 = vmatprep.mubr.msk.bf16.mxu0 %vm2980_vm3, %v2979_v41 }
  0x9a   : > { %v283_v46 = vsel %vm257_vm1, %v252_v45, 0  ;;  %2766 = vmatprep.subr.msk.bf16.mxu1 %vm257_vm1, %v3026_v12  ;;  %2112 = vrot.lane.b32.xlu0 %v3041_v17, %s2978_s24  ;;  %v726_v48 = vpop.permute.xlu0 %725 }
  0x9b   : > { %2866 = vmatpush3.bf16.msra.mxu0 %v283_v46  ;;  %2114 = vrot.lane.b32.xlu1 %v3047_v18, %s2978_s24 }
  0x9c   : > { %2764 = vmatmul.mubr.msk.bf16.vlgmr.msra.gmra.mrb[4].mxu1 %vm253_vm2, %v2755_v28  ;;  %2768 = vmatprep.subr.msk.bf16.mxu0 %vm257_vm1, %v3031_v13  ;;  %v728_v49 = vpop.permute.xlu1 %727 }
  0x9d   : > { %520 = vmatpush1.bf16.msra.mxu1 %v493_v47  ;;  %551 = vmatprep.mubr.bf16.mxu1 %v2971_v6  ;;  %v746_v63 = vsel %vm745_vm4, %v726_v48, %v728_v49 }
  0x9e   : > { %2770 = vmatprep.subr.msk.bf16.mxu1 %vm257_vm1, %v3039_v16  ;;  %2116 = vrot.lane.b32.xlu0 %v3049_v19, %s2978_s24  ;;  %v730_v51 = vpop.permute.xlu0 %729  ;;  %v759_v2 = vsel %vm257_vm1, %v746_v63, 0 }
  0x9f   : > { %2118 = vrot.lane.b32.xlu1 %v3055_v20, %s2978_s24  ;;  %v747_v59 = vsel %vm745_vm4, %v728_v49, %v730_v51  ;;  %s170_s24 = scalar_lea.vmem %s3457_s3, %s2920_s21 }
  0xa0   : > { %2868 = vmatmul.mubr.msk.bf16.vlgmr.msra.gmra.mrb[8].mxu0 %vm253_vm2, %v2755_v28  ;;  %v732_v52 = vpop.permute.xlu1 %731 }
  0xa1   : > { %561 = vmatpush1.bf16.msra.mxu0 %v499_v50  ;;  %592 = vmatprep.mubr.bf16.mxu0 %v2971_v6  ;;  %v748_v4 = vsel %vm745_vm4, %v730_v51, %v732_v52 }
  0xa2   : > { %2772 = vmatprep.subr.msk.bf16.mxu0 %vm257_vm1, %v3047_v18  ;;  %2375 = vrot.lane.b32.xlu0 %v3019_v8, %s2981_s29  ;;  %v734_v55 = vpop.permute.xlu0 %733  ;;  %v765_v8 = vsel %vm257_vm1, %v748_v4, 0 }
  0xa3   : > { %2377 = vrot.lane.b32.xlu1 %v3026_v12, %s2981_s29  ;;  %v749_v0 = vsel %vm745_vm4, %v732_v52, %v734_v55 }
  0xa4   : > { %2767 = vmatmul.mubr.msk.bf16.vlgmr.msra.gmra.mrb[8].mxu1 %vm253_vm2, %v175_v53  ;;  %v736_v56 = vpop.permute.xlu1 %735 }
  0xa5   : > { %602 = vmatpush1.bf16.msra.mxu1 %v505_v54  ;;  %633 = vmatprep.mubr.bf16.mxu1 %v2971_v6  ;;  %v750_v10 = vsel %vm745_vm4, %v734_v55, %v736_v56 }
  0xa6   : > { %2871 = vmatprep.subr.bf16.mxu1 %v2979_v41  ;;  %2379 = vrot.lane.b32.xlu0 %v3022_v11, %s2981_s29  ;;  %v738_v58 = vpop.permute.xlu0 %737 }
  0xa7   : > { %2381 = vrot.lane.b32.xlu1 %v3031_v13, %s2981_s29  ;;  %v751_v5 = vsel %vm745_vm4, %v736_v56, %v738_v58  ;;  %v2775_v13 = vld [vmem:[%s3455_s1 + $0x4] sm:$0x3] }
  0xa8   : > { %2769 = vmatmul.mubr.msk.bf16.vlgmr.msra.gmra.mrb[12].mxu0 %vm253_vm2, %v175_v53  ;;  %v740_v60 = vpop.permute.xlu1 %739 }
  0xa9   : > { %643 = vmatpush1.bf16.msra.mxu0 %v511_v57  ;;  %674 = vmatprep.mubr.bf16.mxu0 %v2971_v6 }
  0xaa   : > { %2776 = vmatprep.subr.msk.bf16.mxu0 %vm257_vm1, %v747_v59  ;;  %2383 = vrot.lane.b32.xlu0 %v3033_v14, %s2981_s29  ;;  %v742_v62 = vpop.permute.xlu0 %741  ;;  %v771_v14 = vsel %vm257_vm1, %v750_v10, 0 }
  0xab   : > { %2385 = vrot.lane.b32.xlu1 %v3039_v16, %s2981_s29  ;;  %v753_v11 = vsel %vm745_vm4, %v740_v60, %v742_v62  ;;  %v752_v16 = vsel %vm745_vm4, %v738_v58, %v740_v60 }
  0xac   : > { %2771 = vmatmul.mubr.msk.bf16.vlgmr.msra.gmra.mrb[12].mxu1 %vm253_vm2, %v175_v53  ;;  %v744_v1 = vpop.permute.xlu1 %743 }
  0xad   : > { %2872 = vmatpush3.bf16.msra.mxu1 %v517_v61  ;;  %2873 = vmatprep.mubr.msk.bf16.mxu1 %vm2980_vm3, %v2979_v41 }
  0xae   : > { %2778 = vmatprep.subr.msk.bf16.mxu1 %vm257_vm1, %v749_v0  ;;  %2387 = vrot.lane.b32.xlu0 %v3041_v17, %s2981_s29  ;;  %v1001_v3 = vpop.permute.xlu0 %1000  ;;  %v2795_v0 = vld [vmem:[%s3455_s1 + $0x8] sm:$0x3] }
  0xaf   : > { %2389 = vrot.lane.b32.xlu1 %v3047_v18, %s2981_s29  ;;  %v777_v18 = vsel %vm257_vm1, %v752_v16, 0 }
  0xb0   : > { %2773 = vmatmul.mubr.msk.bf16.vlgmr.msra.gmra.mrb[16].mxu0 %vm253_vm2, %v175_v53  ;;  %v1003_v7 = vpop.permute.xlu1 %1002 }
  0xb1   : > { %786 = vmatpush1.bf16.msra.mxu0 %v759_v2  ;;  %817 = vmatprep.mubr.bf16.mxu0 %v2971_v6  ;;  %v1021_v25 = vsel %vm1020_vm5, %v1001_v3, %v1003_v7 }
  0xb2   : > { %2780 = vmatprep.subr.msk.bf16.mxu0 %vm257_vm1, %v751_v5  ;;  %2391 = vrot.lane.b32.xlu0 %v3049_v19, %s2981_s29  ;;  %v1005_v9 = vpop.permute.xlu0 %1004  ;;  %v1034_v28 = vsel %vm257_vm1, %v1021_v25, 0 }
  0xb3   : > { %2393 = vrot.lane.b32.xlu1 %v3055_v20, %s2981_s29  ;;  %v754_v20 = vsel %vm745_vm4, %v742_v62, %v744_v1  ;;  %v1022_v21 = vsel %vm1020_vm5, %v1003_v7, %v1005_v9 }
  0xb4   : > { %2874 = vmatmul.mubr.msk.bf16.vlgmr.msra.gmra.mrb[16].mxu1 %vm253_vm2, %v175_v53  ;;  %v1007_v12 = vpop.permute.xlu1 %1006  ;;  %v783_v23 = vsel %vm257_vm1, %v754_v20, 0 }
  0xb5   : > { %827 = vmatpush1.bf16.msra.mxu1 %v765_v8  ;;  %858 = vmatprep.mubr.bf16.mxu1 %v2971_v6  ;;  %v1023_v30 = vsel %vm1020_vm5, %v1005_v9, %v1007_v12 }
  0xb6   : > { %2782 = vmatprep.subr.msk.bf16.mxu1 %vm257_vm1, %v753_v11  ;;  %v1009_v15 = vpop.permute.xlu0 %1008  ;;  %v1040_v33 = vsel %vm257_vm1, %v1023_v30, 0 }
  0xb7   : > { %v1024_v26 = vsel %vm1020_vm5, %v1007_v12, %v1009_v15 }
  0xb8   : > { %2777 = vmatmul.mubr.msk.bf16.vlgmr.msra.gmra.mrb[20].mxu0 %vm253_vm2, %v2775_v13  ;;  %v1011_v17 = vpop.permute.xlu1 %1010 }
  0xb9   : > { %868 = vmatpush1.bf16.msra.mxu0 %v771_v14  ;;  %899 = vmatprep.mubr.bf16.mxu0 %v2971_v6  ;;  %v1025_v35 = vsel %vm1020_vm5, %v1009_v15, %v1011_v17 }
  0xba   : > { %2877 = vmatprep.subr.bf16.mxu0 %v2979_v41  ;;  %v1013_v19 = vpop.permute.xlu0 %1012  ;;  %v1046_v39 = vsel %vm257_vm1, %v1025_v35, 0 }
  0xbb   : > { %v1026_v31 = vsel %vm1020_vm5, %v1011_v17, %v1013_v19 }
  0xbc   : > { %2779 = vmatmul.mubr.msk.bf16.vlgmr.msra.gmra.mrb[20].mxu1 %vm253_vm2, %v2775_v13  ;;  %v1015_v22 = vpop.permute.xlu1 %1014 }
  0xbd   : > { %909 = vmatpush1.bf16.msra.mxu1 %v777_v18  ;;  %940 = vmatprep.mubr.bf16.mxu1 %v2971_v6  ;;  %v1027_v42 = vsel %vm1020_vm5, %v1013_v19, %v1015_v22 }
  0xbe   : > { %2786 = vmatprep.subr.msk.bf16.mxu1 %vm257_vm1, %v1022_v21  ;;  %v1017_v24 = vpop.permute.xlu0 %1016  ;;  %v1052_v44 = vsel %vm257_vm1, %v1027_v42, 0 }
  0xbf   : > { %v1028_v36 = vsel %vm1020_vm5, %v1015_v22, %v1017_v24 }
  0xc0   : > { %2781 = vmatmul.mubr.msk.bf16.vlgmr.msra.gmra.mrb[24].mxu0 %vm253_vm2, %v2775_v13  ;;  %v1019_v27 = vpop.permute.xlu1 %1018 }
  0xc1   : > { %2878 = vmatpush3.bf16.msra.mxu0 %v783_v23  ;;  %2879 = vmatprep.mubr.msk.bf16.mxu0 %vm2980_vm3, %v2979_v41  ;;  %v1029_v46 = vsel %vm1020_vm5, %v1017_v24, %v1019_v27 }
  0xc2   : > { %2788 = vmatprep.subr.msk.bf16.mxu0 %vm257_vm1, %v1024_v26  ;;  %v1276_v29 = vpop.permute.xlu0 %1275  ;;  %v1058_v49 = vsel %vm257_vm1, %v1029_v46, 0  ;;  %v2805_v26 = vld [vmem:[%s3455_s1 + $0xa] sm:$0x3] }
  0xc4   : > { %2783 = vmatmul.mubr.msk.bf16.vlgmr.msra.gmra.mrb[24].mxu1 %vm253_vm2, %v2775_v13  ;;  %v1278_v32 = vpop.permute.xlu1 %1277 }
  0xc5   : > { %1061 = vmatpush1.bf16.msra.mxu1 %v1034_v28  ;;  %1092 = vmatprep.mubr.bf16.mxu1 %v2971_v6  ;;  %v1296_v51 = vsel %vm1295_vm6, %v1276_v29, %v1278_v32 }
  0xc6   : > { %2790 = vmatprep.subr.msk.bf16.mxu1 %vm257_vm1, %v1026_v31  ;;  %v1280_v34 = vpop.permute.xlu0 %1279  ;;  %v1309_v54 = vsel %vm257_vm1, %v1296_v51, 0 }
  0xc7   : > { %v1297_v47 = vsel %vm1295_vm6, %v1278_v32, %v1280_v34 }
  0xc8   : > { %2880 = vmatmul.mubr.msk.bf16.vlgmr.msra.gmra.mrb[28].mxu0 %vm253_vm2, %v2775_v13  ;;  %v1282_v37 = vpop.permute.xlu1 %1281 }
  0xc9   : > { %1102 = vmatpush1.bf16.msra.mxu0 %v1040_v33  ;;  %1133 = vmatprep.mubr.bf16.mxu0 %v2971_v6  ;;  %v1298_v56 = vsel %vm1295_vm6, %v1280_v34, %v1282_v37 }
  0xca   : > { %2792 = vmatprep.subr.msk.bf16.mxu0 %vm257_vm1, %v1028_v36  ;;  %v1284_v40 = vpop.permute.xlu0 %1283  ;;  %v1315_v59 = vsel %vm257_vm1, %v1298_v56, 0 }
  0xcb   : > { %v1299_v52 = vsel %vm1295_vm6, %v1282_v37, %v1284_v40 }
  0xcc   : > { %2787 = vmatmul.mubr.msk.bf16.vlgmr.msra.gmra.mrb[28].mxu1 %vm253_vm2, %v2785_v38  ;;  %v1286_v43 = vpop.permute.xlu1 %1285 }
  0xcd   : > { %1143 = vmatpush1.bf16.msra.mxu1 %v1046_v39  ;;  %1174 = vmatprep.mubr.bf16.mxu1 %v2971_v6  ;;  %v1300_v61 = vsel %vm1295_vm6, %v1284_v40, %v1286_v43 }
  0xce   : > { %2883 = vmatprep.subr.bf16.mxu1 %v2979_v41  ;;  %v1288_v45 = vpop.permute.xlu0 %1287  ;;  %v1321_v1 = vsel %vm257_vm1, %v1300_v61, 0 }
  0xcf   : > { %v1301_v57 = vsel %vm1295_vm6, %v1286_v43, %v1288_v45 }
  0xd0   : > { %2789 = vmatmul.mubr.msk.bf16.vlgmr.msra.gmra.mrb[32].mxu0 %vm253_vm2, %v2785_v38  ;;  %v1290_v48 = vpop.permute.xlu1 %1289 }
  0xd1   : > { %1184 = vmatpush1.bf16.msra.mxu0 %v1052_v44  ;;  %1215 = vmatprep.mubr.bf16.mxu0 %v2971_v6  ;;  %v1302_v3 = vsel %vm1295_vm6, %v1288_v45, %v1290_v48 }
  0xd2   : > { %2796 = vmatprep.subr.msk.bf16.mxu0 %vm257_vm1, %v1297_v47  ;;  %v1292_v50 = vpop.permute.xlu0 %1291  ;;  %v1327_v5 = vsel %vm257_vm1, %v1302_v3, 0 }
  0xd3   : > { %v1303_v62 = vsel %vm1295_vm6, %v1290_v48, %v1292_v50 }
  0xd4   : > { %2791 = vmatmul.mubr.msk.bf16.vlgmr.msra.gmra.mrb[32].mxu1 %vm253_vm2, %v2785_v38  ;;  %v1294_v53 = vpop.permute.xlu1 %1293 }
  0xd5   : > { %2884 = vmatpush3.bf16.msra.mxu1 %v1058_v49  ;;  %2885 = vmatprep.mubr.msk.bf16.mxu1 %vm2980_vm3, %v2979_v41  ;;  %v1304_v8 = vsel %vm1295_vm6, %v1292_v50, %v1294_v53  ;;  %v2648_v53 = vld [vmem:[%s3456_s2] sm:$0x7] }
  0xd6   : > { %2798 = vmatprep.subr.msk.bf16.mxu1 %vm257_vm1, %v1299_v52  ;;  %v1551_v55 = vpop.permute.xlu0 %1550  ;;  %v1333_v11 = vsel %vm257_vm1, %v1304_v8, 0  ;;  %v2815_v52 = vld [vmem:[%s3455_s1 + $0xc] sm:$0x3]  ;;  %2651 = vperm.xlu0 %2941, %v2648_v53  }
  0xd8   : > { %2793 = vmatmul.mubr.msk.bf16.vlgmr.msra.gmra.mrb[36].mxu0 %vm253_vm2, %v2785_v38  ;;  %v1553_v58 = vpop.permute.xlu1 %1552 }
  0xd9   : > { %1336 = vmatpush1.bf16.msra.mxu0 %v1309_v54  ;;  %1367 = vmatprep.mubr.bf16.mxu0 %v2971_v6  ;;  %v1571_v13 = vsel %vm1570_vm7, %v1551_v55, %v1553_v58 }
  0xda   : > { %2800 = vmatprep.subr.msk.bf16.mxu0 %vm257_vm1, %v1301_v57  ;;  %v1555_v60 = vpop.permute.xlu0 %1554  ;;  %v1584_v16 = vsel %vm257_vm1, %v1571_v13, 0 }
  0xdb   : > { %v1572_v9 = vsel %vm1570_vm7, %v1553_v58, %v1555_v60 }
  0xdc   : > { %2886 = vmatmul.mubr.msk.bf16.vlgmr.msra.gmra.mrb[36].mxu1 %vm253_vm2, %v2785_v38  ;;  %v1557_v63 = vpop.permute.xlu1 %1556 }
  0xdd   : > { %1377 = vmatpush1.bf16.msra.mxu1 %v1315_v59  ;;  %1408 = vmatprep.mubr.bf16.mxu1 %v2971_v6  ;;  %v1573_v18 = vsel %vm1570_vm7, %v1555_v60, %v1557_v63 }
  0xde   : > { %2802 = vmatprep.subr.msk.bf16.mxu1 %vm257_vm1, %v1303_v62  ;;  %v1559_v2 = vpop.permute.xlu0 %1558  ;;  %v1590_v21 = vsel %vm257_vm1, %v1573_v18, 0 }
  0xdf   : > { %v1574_v14 = vsel %vm1570_vm7, %v1557_v63, %v1559_v2 }
  0xe0   : > { %2797 = vmatmul.mubr.msk.bf16.vlgmr.msra.gmra.mrb[40].mxu0 %vm253_vm2, %v2795_v0  ;;  %v1561_v4 = vpop.permute.xlu1 %1560 }
  0xe1   : > { %1418 = vmatpush1.bf16.msra.mxu0 %v1321_v1  ;;  %1449 = vmatprep.mubr.bf16.mxu0 %v2971_v6  ;;  %v1575_v23 = vsel %vm1570_vm7, %v1559_v2, %v1561_v4 }
  0xe2   : > { %2889 = vmatprep.subr.bf16.mxu0 %v2979_v41  ;;  %v1563_v7 = vpop.permute.xlu0 %1562  ;;  %v1596_v27 = vsel %vm257_vm1, %v1575_v23, 0 }
  0xe3   : > { %v1576_v19 = vsel %vm1570_vm7, %v1561_v4, %v1563_v7 }
  0xe4   : > { %2799 = vmatmul.mubr.msk.bf16.vlgmr.msra.gmra.mrb[40].mxu1 %vm253_vm2, %v2795_v0  ;;  %v1565_v10 = vpop.permute.xlu1 %1564 }
  0xe5   : > { %1459 = vmatpush1.bf16.msra.mxu1 %v1327_v5  ;;  %1490 = vmatprep.mubr.bf16.mxu1 %v2971_v6  ;;  %v1577_v29 = vsel %vm1570_vm7, %v1563_v7, %v1565_v10 }
  0xe6   : > { %2806 = vmatprep.subr.msk.bf16.mxu1 %vm257_vm1, %v1572_v9  ;;  %v1567_v12 = vpop.permute.xlu0 %1566  ;;  %v1602_v31 = vsel %vm257_vm1, %v1577_v29, 0 }
  0xe7   : > { %v1578_v24 = vsel %vm1570_vm7, %v1565_v10, %v1567_v12 }
  0xe8   : > { %2801 = vmatmul.mubr.msk.bf16.vlgmr.msra.gmra.mrb[44].mxu0 %vm253_vm2, %v2795_v0  ;;  %v1569_v15 = vpop.permute.xlu1 %1568 }
  0xe9   : > { %2890 = vmatpush3.bf16.msra.mxu0 %v1333_v11  ;;  %2891 = vmatprep.mubr.msk.bf16.mxu0 %vm2980_vm3, %v2979_v41  ;;  %v1579_v33 = vsel %vm1570_vm7, %v1567_v12, %v1569_v15 }
  0xea   : > { %2808 = vmatprep.subr.msk.bf16.mxu0 %vm257_vm1, %v1574_v14  ;;  %v1826_v17 = vpop.permute.xlu0 %1825  ;;  %v1608_v36 = vsel %vm257_vm1, %v1579_v33, 0  ;;  %v2825_v14 = vld [vmem:[%s3455_s1 + $0xe] sm:$0x3] }
  0xec   : > { %2803 = vmatmul.mubr.msk.bf16.vlgmr.msra.gmra.mrb[44].mxu1 %vm253_vm2, %v2795_v0  ;;  %v1828_v20 = vpop.permute.xlu1 %1827 }
  0xed   : > { %1611 = vmatpush1.bf16.msra.mxu1 %v1584_v16  ;;  %1642 = vmatprep.mubr.bf16.mxu1 %v2971_v6  ;;  %v1846_v38 = vsel %vm1845_vm8, %v1826_v17, %v1828_v20 }
  0xee   : > { %2810 = vmatprep.subr.msk.bf16.mxu1 %vm257_vm1, %v1576_v19  ;;  %v1830_v22 = vpop.permute.xlu0 %1829  ;;  %v1859_v42 = vsel %vm257_vm1, %v1846_v38, 0 }
  0xef   : > { %v1847_v34 = vsel %vm1845_vm8, %v1828_v20, %v1830_v22 }
  0xf0   : > { %2892 = vmatmul.mubr.msk.bf16.vlgmr.msra.gmra.mrb[48].mxu0 %vm253_vm2, %v2795_v0  ;;  %v1832_v25 = vpop.permute.xlu1 %1831 }
  0xf1   : > { %1652 = vmatpush1.bf16.msra.mxu0 %v1590_v21  ;;  %1683 = vmatprep.mubr.bf16.mxu0 %v2971_v6  ;;  %v1848_v44 = vsel %vm1845_vm8, %v1830_v22, %v1832_v25 }
  0xf2   : > { %2812 = vmatprep.subr.msk.bf16.mxu0 %vm257_vm1, %v1578_v24  ;;  %v1834_v28 = vpop.permute.xlu0 %1833  ;;  %v1865_v47 = vsel %vm257_vm1, %v1848_v44, 0 }
  0xf3   : > { %v1849_v39 = vsel %vm1845_vm8, %v1832_v25, %v1834_v28 }
  0xf4   : > { %2807 = vmatmul.mubr.msk.bf16.vlgmr.msra.gmra.mrb[48].mxu1 %vm253_vm2, %v2805_v26  ;;  %v1836_v30 = vpop.permute.xlu1 %1835 }
  0xf5   : > { %1693 = vmatpush1.bf16.msra.mxu1 %v1596_v27  ;;  %1724 = vmatprep.mubr.bf16.mxu1 %v2971_v6  ;;  %v1850_v48 = vsel %vm1845_vm8, %v1834_v28, %v1836_v30 }
  0xf6   : > { %2895 = vmatprep.subr.bf16.mxu1 %v2979_v41  ;;  %v1838_v32 = vpop.permute.xlu0 %1837  ;;  %v1871_v54 = vsel %vm257_vm1, %v1850_v48, 0 }
  0xf7   : > { %v1851_v45 = vsel %vm1845_vm8, %v1836_v30, %v1838_v32 }
  0xf8   : > { %2809 = vmatmul.mubr.msk.bf16.vlgmr.msra.gmra.mrb[52].mxu0 %vm253_vm2, %v2805_v26  ;;  %v1840_v35 = vpop.permute.xlu1 %1839 }
  0xf9   : > { %1734 = vmatpush1.bf16.msra.mxu0 %v1602_v31  ;;  %1765 = vmatprep.mubr.bf16.mxu0 %v2971_v6  ;;  %v1852_v55 = vsel %vm1845_vm8, %v1838_v32, %v1840_v35 }
  0xfa   : > { %2816 = vmatprep.subr.msk.bf16.mxu0 %vm257_vm1, %v1847_v34  ;;  %v1842_v37 = vpop.permute.xlu0 %1841  ;;  %v1877_v58 = vsel %vm257_vm1, %v1852_v55, 0 }
  0xfb   : > { %v1853_v49 = vsel %vm1845_vm8, %v1840_v35, %v1842_v37  ;;  %v2835_v35 = vld [vmem:[%s3455_s1 + $0x10] sm:$0x3] }
  0xfc   : > { %2811 = vmatmul.mubr.msk.bf16.vlgmr.msra.gmra.mrb[52].mxu1 %vm253_vm2, %v2805_v26  ;;  %v1844_v40 = vpop.permute.xlu1 %1843 }
  0xfd   : > { %2896 = vmatpush3.bf16.msra.mxu1 %v1608_v36  ;;  %2897 = vmatprep.mubr.msk.bf16.mxu1 %vm2980_vm3, %v2979_v41  ;;  %v1854_v59 = vsel %vm1845_vm8, %v1842_v37, %v1844_v40 }
  0xfe   : > { %2818 = vmatprep.subr.msk.bf16.mxu1 %vm257_vm1, %v1849_v39  ;;  %v2101_v43 = vpop.permute.xlu0 %2100  ;;  %v1883_v63 = vsel %vm257_vm1, %v1854_v59, 0 }
 0x100   : > { %2813 = vmatmul.mubr.msk.bf16.vlgmr.msra.gmra.mrb[56].mxu0 %vm253_vm2, %v2805_v26  ;;  %v2103_v46 = vpop.permute.xlu1 %2102 }
 0x101   : > { %1886 = vmatpush1.bf16.msra.mxu0 %v1859_v42  ;;  %1917 = vmatprep.mubr.bf16.mxu0 %v2971_v6  ;;  %v2121_v0 = vsel %vm2120_vm9, %v2101_v43, %v2103_v46 }
 0x102   : > { %2820 = vmatprep.subr.msk.bf16.mxu0 %vm257_vm1, %v1851_v45  ;;  %v2134_v4 = vsel %vm257_vm1, %v2121_v0, 0 }
 0x104   : > { %2898 = vmatmul.mubr.msk.bf16.vlgmr.msra.gmra.mrb[56].mxu1 %vm253_vm2, %v2805_v26  ;;  %v2105_v50 = vpop.permute.xlu0 %2104  ;;  %v2107_v51 = vpop.permute.xlu1 %2106 }
 0x105   : > { %1927 = vmatpush1.bf16.msra.mxu1 %v1865_v47  ;;  %1958 = vmatprep.mubr.bf16.mxu1 %v2971_v6  ;;  %v2122_v60 = vsel %vm2120_vm9, %v2103_v46, %v2105_v50  ;;  %v2123_v5 = vsel %vm2120_vm9, %v2105_v50, %v2107_v51 }
 0x106   : > { %2822 = vmatprep.subr.msk.bf16.mxu1 %vm257_vm1, %v1853_v49  ;;  %v2140_v9 = vsel %vm257_vm1, %v2123_v5, 0 }
 0x108   : > { %2817 = vmatmul.mubr.msk.bf16.vlgmr.msra.gmra.mrb[60].mxu0 %vm253_vm2, %v2815_v52  ;;  %v2109_v56 = vpop.permute.xlu0 %2108 }
 0x109   : > { %1968 = vmatpush1.bf16.msra.mxu0 %v1871_v54  ;;  %1999 = vmatprep.mubr.bf16.mxu0 %v2971_v6  ;;  %v2111_v57 = vpop.permute.xlu1 %2110  ;;  %v2124_v1 = vsel %vm2120_vm9, %v2107_v51, %v2109_v56 }
 0x10a   : > { %2901 = vmatprep.subr.bf16.mxu0 %v2979_v41  ;;  %v2125_v11 = vsel %vm2120_vm9, %v2109_v56, %v2111_v57 }
 0x10b   : > { %v2146_v15 = vsel %vm257_vm1, %v2125_v11, 0 }
 0x10c   : > { %2819 = vmatmul.mubr.msk.bf16.vlgmr.msra.gmra.mrb[60].mxu1 %vm253_vm2, %v2815_v52  ;;  %v2113_v61 = vpop.permute.xlu0 %2112 }
 0x10d   : > { %2009 = vmatpush1.bf16.msra.mxu1 %v1877_v58  ;;  %2040 = vmatprep.mubr.bf16.mxu1 %v2971_v6  ;;  %v2115_v62 = vpop.permute.xlu1 %2114  ;;  %v2126_v7 = vsel %vm2120_vm9, %v2111_v57, %v2113_v61 }
 0x10e   : > { %2826 = vmatprep.subr.msk.bf16.mxu1 %vm257_vm1, %v2122_v60  ;;  %v2127_v16 = vsel %vm2120_vm9, %v2113_v61, %v2115_v62 }
 0x10f   : > { %v2152_v19 = vsel %vm257_vm1, %v2127_v16, 0 }
 0x110   : > { %2821 = vmatmul.mubr.msk.bf16.vlgmr.msra.gmra.mrb[64].mxu0 %vm253_vm2, %v2815_v52  ;;  %v2117_v2 = vpop.permute.xlu0 %2116 }
 0x111   : > { %2902 = vmatpush3.bf16.msra.mxu0 %v1883_v63  ;;  %2903 = vmatprep.mubr.msk.bf16.mxu0 %vm2980_vm3, %v2979_v41  ;;  %v2119_v3 = vpop.permute.xlu1 %2118  ;;  %v2128_v12 = vsel %vm2120_vm9, %v2115_v62, %v2117_v2 }
 0x112   : > { %2828 = vmatprep.subr.msk.bf16.mxu0 %vm257_vm1, %v2124_v1  ;;  %v2129_v20 = vsel %vm2120_vm9, %v2117_v2, %v2119_v3 }
 0x113   : > { %v2158_v22 = vsel %vm257_vm1, %v2129_v20, 0 }
 0x114   : > { %2823 = vmatmul.mubr.msk.bf16.vlgmr.msra.gmra.mrb[64].mxu1 %vm253_vm2, %v2815_v52  ;;  %v2376_v8 = vpop.permute.xlu0 %2375 }
 0x115   : > { %2161 = vmatpush1.bf16.msra.mxu1 %v2134_v4  ;;  %2192 = vmatprep.mubr.bf16.mxu1 %v2971_v6  ;;  %v2378_v10 = vpop.permute.xlu1 %2377 }
 0x116   : > { %2830 = vmatprep.subr.msk.bf16.mxu1 %vm257_vm1, %v2126_v7  ;;  %v2396_v25 = vsel %vm2395_vm10, %v2376_v8, %v2378_v10 }
 0x117   : > { %v2409_v27 = vsel %vm257_vm1, %v2396_v25, 0 }
 0x118   : > { %2904 = vmatmul.mubr.msk.bf16.vlgmr.msra.gmra.mrb[68].mxu0 %vm253_vm2, %v2815_v52  ;;  %v2380_v13 = vpop.permute.xlu0 %2379 }
 0x119   : > { %2202 = vmatpush1.bf16.msra.mxu0 %v2140_v9  ;;  %2233 = vmatprep.mubr.bf16.mxu0 %v2971_v6  ;;  %v2382_v18 = vpop.permute.xlu1 %2381  ;;  %v2397_v21 = vsel %vm2395_vm10, %v2378_v10, %v2380_v13 }
 0x11a   : > { %2832 = vmatprep.subr.msk.bf16.mxu0 %vm257_vm1, %v2128_v12  ;;  %v2398_v28 = vsel %vm2395_vm10, %v2380_v13, %v2382_v18 }
 0x11b   : > { %v2415_v32 = vsel %vm257_vm1, %v2398_v28, 0 }
 0x11c   : > { %2827 = vmatmul.mubr.msk.bf16.vlgmr.msra.gmra.mrb[68].mxu1 %vm253_vm2, %v2825_v14  ;;  %v2384_v17 = vpop.permute.xlu0 %2383 }
 0x11d   : > { %2243 = vmatpush1.bf16.msra.mxu1 %v2146_v15  ;;  %2274 = vmatprep.mubr.bf16.mxu1 %v2971_v6  ;;  %v2386_v24 = vpop.permute.xlu1 %2385  ;;  %v2399_v26 = vsel %vm2395_vm10, %v2382_v18, %v2384_v17 }
 0x11e   : > { %2907 = vmatprep.subr.bf16.mxu1 %v2979_v41  ;;  %v2400_v33 = vsel %vm2395_vm10, %v2384_v17, %v2386_v24 }
 0x11f   : > { %v2421_v36 = vsel %vm257_vm1, %v2400_v33, 0 }
 0x120   : > { %2829 = vmatmul.mubr.msk.bf16.vlgmr.msra.gmra.mrb[72].mxu0 %vm253_vm2, %v2825_v14  ;;  %v2388_v23 = vpop.permute.xlu0 %2387 }
 0x121   : > { %2284 = vmatpush1.bf16.msra.mxu0 %v2152_v19  ;;  %2315 = vmatprep.mubr.bf16.mxu0 %v2971_v6  ;;  %v2401_v29 = vsel %vm2395_vm10, %v2386_v24, %v2388_v23  ;;  %v2390_v31 = vpop.permute.xlu1 %2389 }
 0x122   : > { %2836 = vmatprep.subr.msk.bf16.mxu0 %vm257_vm1, %v2397_v21  ;;  %v2402_v37 = vsel %vm2395_vm10, %v2388_v23, %v2390_v31 }
 0x123   : > { %v2427_v39 = vsel %vm257_vm1, %v2402_v37, 0 }
 0x124   : > { %2831 = vmatmul.mubr.msk.bf16.vlgmr.msra.gmra.mrb[72].mxu1 %vm253_vm2, %v2825_v14  ;;  %v2392_v30 = vpop.permute.xlu0 %2391 }
 0x125   : > { %2908 = vmatpush3.bf16.msra.mxu1 %v2158_v22  ;;  %2909 = vmatprep.mubr.msk.bf16.mxu1 %vm2980_vm3, %v2979_v41  ;;  %v2403_v34 = vsel %vm2395_vm10, %v2390_v31, %v2392_v30  ;;  %v2394_v38 = vpop.permute.xlu1 %2393 }
 0x126   : > { %2838 = vmatprep.subr.msk.bf16.mxu1 %vm257_vm1, %v2399_v26  ;;  %v2404_v40 = vsel %vm2395_vm10, %v2392_v30, %v2394_v38 }
 0x127   : > { %v2433_v42 = vsel %vm257_vm1, %v2404_v40, 0 }
 0x128   : > { %2833 = vmatmul.mubr.msk.bf16.vlgmr.msra.gmra.mrb[76].mxu0 %vm253_vm2, %v2825_v14 }
 0x129   : > { %2436 = vmatpush1.bf16.msra.mxu0 %v2409_v27  ;;  %2467 = vmatprep.mubr.bf16.mxu0 %v2971_v6 }
 0x12a   : > { %2840 = vmatprep.subr.msk.bf16.mxu0 %vm257_vm1, %v2401_v29 }
 0x12c   : > { %2910 = vmatmul.mubr.msk.bf16.vlgmr.msra.gmra.mrb[76].mxu1 %vm253_vm2, %v2825_v14 }
 0x12d   : > { %2477 = vmatpush1.bf16.msra.mxu1 %v2415_v32  ;;  %2508 = vmatprep.mubr.bf16.mxu1 %v2971_v6 }
 0x12e   : > { %2842 = vmatprep.subr.msk.bf16.mxu1 %vm257_vm1, %v2403_v34 }
 0x130   : > { %2837 = vmatmul.mubr.msk.bf16.vlgmr.msra.gmra.mrb[80].mxu0 %vm253_vm2, %v2835_v35 }
 0x131   : > { %2518 = vmatpush1.bf16.msra.mxu0 %v2421_v36  ;;  %2549 = vmatprep.mubr.bf16.mxu0 %v2971_v6 }
 0x132   : > { %2913 = vmatprep.subr.bf16.mxu0 %v2979_v41 }
 0x134   : > { %2839 = vmatmul.mubr.msk.bf16.vlgmr.msra.gmra.mrb[80].mxu1 %vm253_vm2, %v2835_v35 }
 0x135   : > { %2559 = vmatpush1.bf16.msra.mxu1 %v2427_v39  ;;  %2590 = vmatprep.mubr.bf16.mxu1 %v2971_v6 }
 0x138   : > { %2841 = vmatmul.mubr.msk.bf16.vlgmr.msra.gmra.mrb[84].mxu0 %vm253_vm2, %v2835_v35 }
 0x139   : > { %2914 = vmatpush3.bf16.msra.mxu0 %v2433_v42  ;;  %2915 = vmatprep.mubr.msk.bf16.mxu0 %vm2980_vm3, %v2979_v41 }
 0x13c   : > { %2843 = vmatmul.mubr.msk.bf16.vlgmr.msra.gmra.mrb[84].mxu1 %vm253_vm2, %v2835_v35 }
 0x140   : > { %2916 = vmatmul.mubr.msk.bf16.vlgmr.msra.gmra.mrb[88].mxu0 %vm253_vm2, %v2835_v35 }
 0x163   : > { %v319_v43 = vpop.f32.mrb[0].mxu0 }
 0x164   : > { %v321_v44 = vpop.f32.mrb[1].mxu0 }
 0x165   : > { %v323_v45 = vpop.f32.mrb[2].mxu0 }
 0x166   : > { %v324_v46 = vpop.f32.mrb[3].mxu0 }
 0x167   : > { %v360_v47 = vpop.f32.mrb[0].mxu1 }
 0x168   : > { %v362_v48 = vpop.f32.mrb[1].mxu1 }
 0x169   : > { %v364_v49 = vpop.f32.mrb[2].mxu1 }
 0x16a   : > { %v365_v6 = vpop.f32.mrb[3].mxu1 }
 0x16b   : > { %v401_v50 = vpop.f32.mrb[4].mxu0 }
 0x16c   : > { %v403_v51 = vpop.f32.mrb[5].mxu0 }
 0x16d   : > { %v405_v52 = vpop.f32.mrb[6].mxu0 }
 0x16e   : > { %v406_v53 = vpop.f32.mrb[7].mxu0 }
 0x16f   : > { %v442_v54 = vpop.f32.mrb[4].mxu1 }
 0x170   : > { %v444_v55 = vpop.f32.mrb[5].mxu1 }
 0x171   : > { %v446_v56 = vpop.f32.mrb[6].mxu1 }
 0x172   : > { %v447_v41 = vpop.f32.mrb[7].mxu1 }
 0x173   : > { %v483_v57 = vpop.f32.mrb[8].mxu0 }
 0x174   : > { %v2869_v58 = vpop.f32.mrb[9].mxu0 }
 0x175   : > { %v486_v59 = vpop.f32.mrb[10].mxu0 }
 0x176   : > { %v2870_v60 = vpop.f32.mrb[11].mxu0 }
 0x177   : > { %v553_v61 = vpop.f32.mrb[8].mxu1 }
 0x178   : > { %v554_v62 = vadd.f32 %v553_v61, %v319_v43  ;;  %v555_v63 = vpop.f32.mrb[9].mxu1 }
 0x179   : > { %v556_v0 = vadd.f32 %v555_v63, %v321_v44  ;;  %v557_v1 = vpop.f32.mrb[10].mxu1 }
 0x17a   : > { %v558_v2 = vpop.f32.mrb[11].mxu1 }
 0x17b   : > { %v594_v3 = vpop.f32.mrb[12].mxu0 }
 0x17c   : > { %v595_v4 = vadd.f32 %v594_v3, %v360_v47  ;;  %v596_v5 = vpop.f32.mrb[13].mxu0 }
 0x17d   : > { %v597_v7 = vadd.f32 %v596_v5, %v362_v48  ;;  %v598_v8 = vpop.f32.mrb[14].mxu0 }
 0x17e   : > { %v599_v9 = vpop.f32.mrb[15].mxu0 }
 0x17f   : > { %v635_v10 = vpop.f32.mrb[12].mxu1 }
 0x180   : > { %v636_v11 = vadd.f32 %v635_v10, %v401_v50  ;;  %v637_v12 = vpop.f32.mrb[13].mxu1 }
 0x181   : > { %v638_v13 = vadd.f32 %v637_v12, %v403_v51  ;;  %v639_v14 = vpop.f32.mrb[14].mxu1 }
 0x182   : > { %v640_v15 = vpop.f32.mrb[15].mxu1 }
 0x183   : > { %v676_v16 = vpop.f32.mrb[16].mxu0 }
 0x184   : > { %v677_v17 = vadd.f32 %v676_v16, %v442_v54  ;;  %v678_v18 = vpop.f32.mrb[17].mxu0 }
 0x185   : > { %v679_v19 = vadd.f32 %v678_v18, %v444_v55  ;;  %v680_v20 = vpop.f32.mrb[18].mxu0 }
 0x186   : > { %v681_v21 = vpop.f32.mrb[19].mxu0 }
 0x187   : > { %v717_v22 = vpop.f32.mrb[16].mxu1 }
 0x188   : > { %v718_v23 = vadd.f32 %v717_v22, %v483_v57  ;;  %v2875_v24 = vpop.f32.mrb[17].mxu1 }
 0x189   : > { %v720_v25 = vpop.f32.mrb[18].mxu1 }
 0x18a   : > { %v2876_v26 = vpop.f32.mrb[19].mxu1 }
 0x18b   : > { %v819_v27 = vpop.f32.mrb[20].mxu0 }
 0x18c   : > { %v989_v28 = vadd.f32 %v819_v27, %v554_v62  ;;  %v821_v29 = vpop.f32.mrb[21].mxu0 }
 0x18d   : > { %v990_v30 = vadd.f32 %v821_v29, %v556_v0  ;;  %v823_v31 = vpop.f32.mrb[22].mxu0 }
 0x18e   : > { %v824_v32 = vpop.f32.mrb[23].mxu0 }
 0x18f   : > { %v860_v33 = vpop.f32.mrb[20].mxu1 }
 0x190   : > { %v991_v34 = vadd.f32 %v860_v33, %v595_v4  ;;  %v862_v35 = vpop.f32.mrb[21].mxu1 }
 0x191   : > { %v992_v36 = vadd.f32 %v862_v35, %v597_v7  ;;  %v864_v37 = vpop.f32.mrb[22].mxu1 }
 0x192   : > { %v865_v38 = vpop.f32.mrb[23].mxu1 }
 0x193   : > { %v901_v39 = vpop.f32.mrb[24].mxu0 }
 0x194   : > { %v993_v40 = vadd.f32 %v901_v39, %v636_v11  ;;  %v903_v42 = vpop.f32.mrb[25].mxu0 }
 0x195   : > { %v994_v43 = vadd.f32 %v903_v42, %v638_v13  ;;  %v905_v44 = vpop.f32.mrb[26].mxu0 }
 0x196   : > { %v906_v45 = vpop.f32.mrb[27].mxu0 }
 0x197   : > { %v942_v46 = vpop.f32.mrb[24].mxu1 }
 0x198   : > { %v995_v47 = vadd.f32 %v942_v46, %v677_v17  ;;  %v944_v48 = vpop.f32.mrb[25].mxu1 }
 0x199   : > { %v996_v49 = vadd.f32 %v944_v48, %v679_v19  ;;  %v946_v6 = vpop.f32.mrb[26].mxu1 }
 0x19a   : > { %v947_v50 = vpop.f32.mrb[27].mxu1 }
 0x19b   : > { %v983_v51 = vpop.f32.mrb[28].mxu0 }
 0x19c   : > { %v997_v52 = vadd.f32 %v983_v51, %v718_v23  ;;  %v2881_v53 = vpop.f32.mrb[29].mxu0 }
 0x19d   : > { %v986_v54 = vpop.f32.mrb[30].mxu0 }
 0x19e   : > { %v2882_v55 = vpop.f32.mrb[31].mxu0 }
 0x19f   : > { %v1094_v56 = vpop.f32.mrb[28].mxu1 }
 0x1a0   : > { %v1264_v41 = vadd.f32 %v1094_v56, %v989_v28  ;;  %v1096_v57 = vpop.f32.mrb[29].mxu1 }
 0x1a1   : > { %v1265_v58 = vadd.f32 %v1096_v57, %v990_v30  ;;  %v1098_v59 = vpop.f32.mrb[30].mxu1 }
 0x1a2   : > { %v1099_v60 = vpop.f32.mrb[31].mxu1 }
 0x1a3   : > { %v1135_v61 = vpop.f32.mrb[32].mxu0 }
 0x1a4   : > { %v1266_v62 = vadd.f32 %v1135_v61, %v991_v34  ;;  %v1137_v63 = vpop.f32.mrb[33].mxu0 }
 0x1a5   : > { %v1267_v0 = vadd.f32 %v1137_v63, %v992_v36  ;;  %v1139_v1 = vpop.f32.mrb[34].mxu0 }
 0x1a6   : > { %v1140_v2 = vpop.f32.mrb[35].mxu0 }
 0x1a7   : > { %v1176_v3 = vpop.f32.mrb[32].mxu1 }
 0x1a8   : > { %v1268_v4 = vadd.f32 %v1176_v3, %v993_v40  ;;  %v1178_v5 = vpop.f32.mrb[33].mxu1 }
 0x1a9   : > { %v1269_v7 = vadd.f32 %v1178_v5, %v994_v43  ;;  %v1180_v8 = vpop.f32.mrb[34].mxu1 }
 0x1aa   : > { %v1181_v9 = vpop.f32.mrb[35].mxu1 }
 0x1ab   : > { %v1217_v10 = vpop.f32.mrb[36].mxu0 }
 0x1ac   : > { %v1270_v11 = vadd.f32 %v1217_v10, %v995_v47  ;;  %v1219_v12 = vpop.f32.mrb[37].mxu0 }
 0x1ad   : > { %v1271_v13 = vadd.f32 %v1219_v12, %v996_v49  ;;  %v1221_v14 = vpop.f32.mrb[38].mxu0 }
 0x1ae   : > { %v1222_v15 = vpop.f32.mrb[39].mxu0 }
 0x1af   : > { %v1258_v16 = vpop.f32.mrb[36].mxu1 }
 0x1b0   : > { %v1272_v17 = vadd.f32 %v1258_v16, %v997_v52  ;;  %v2887_v18 = vpop.f32.mrb[37].mxu1 }
 0x1b1   : > { %v1261_v19 = vpop.f32.mrb[38].mxu1 }
 0x1b2   : > { %v2888_v20 = vpop.f32.mrb[39].mxu1 }
 0x1b3   : > { %v1369_v21 = vpop.f32.mrb[40].mxu0 }
 0x1b4   : > { %v1539_v22 = vadd.f32 %v1369_v21, %v1264_v41  ;;  %v1371_v23 = vpop.f32.mrb[41].mxu0 }
 0x1b5   : > { %v1540_v24 = vadd.f32 %v1371_v23, %v1265_v58  ;;  %v1373_v25 = vpop.f32.mrb[42].mxu0 }
 0x1b6   : > { %v1374_v26 = vpop.f32.mrb[43].mxu0 }
 0x1b7   : > { %v1410_v27 = vpop.f32.mrb[40].mxu1 }
 0x1b8   : > { %v1541_v28 = vadd.f32 %v1410_v27, %v1266_v62  ;;  %v1412_v29 = vpop.f32.mrb[41].mxu1 }
 0x1b9   : > { %v1542_v30 = vadd.f32 %v1412_v29, %v1267_v0  ;;  %v1414_v31 = vpop.f32.mrb[42].mxu1 }
 0x1ba   : > { %v1415_v32 = vpop.f32.mrb[43].mxu1 }
 0x1bb   : > { %v1451_v33 = vpop.f32.mrb[44].mxu0 }
 0x1bc   : > { %v1543_v34 = vadd.f32 %v1451_v33, %v1268_v4  ;;  %v1453_v35 = vpop.f32.mrb[45].mxu0 }
 0x1bd   : > { %v1544_v36 = vadd.f32 %v1453_v35, %v1269_v7  ;;  %v1455_v37 = vpop.f32.mrb[46].mxu0 }
 0x1be   : > { %v1456_v38 = vpop.f32.mrb[47].mxu0 }
 0x1bf   : > { %v1492_v39 = vpop.f32.mrb[44].mxu1 }
 0x1c0   : > { %v1545_v40 = vadd.f32 %v1492_v39, %v1270_v11  ;;  %v1494_v42 = vpop.f32.mrb[45].mxu1 }
 0x1c1   : > { %v1546_v43 = vadd.f32 %v1494_v42, %v1271_v13  ;;  %v1496_v44 = vpop.f32.mrb[46].mxu1 }
 0x1c2   : > { %v1497_v45 = vpop.f32.mrb[47].mxu1 }
 0x1c3   : > { %v1533_v46 = vpop.f32.mrb[48].mxu0 }
 0x1c4   : > { %v1547_v47 = vadd.f32 %v1533_v46, %v1272_v17  ;;  %v2893_v48 = vpop.f32.mrb[49].mxu0 }
 0x1c5   : > { %v1536_v49 = vpop.f32.mrb[50].mxu0 }
 0x1c6   : > { %v2894_v6 = vpop.f32.mrb[51].mxu0 }
 0x1c7   : > { %v1644_v50 = vpop.f32.mrb[48].mxu1 }
 0x1c8   : > { %v1814_v51 = vadd.f32 %v1644_v50, %v1539_v22  ;;  %v1646_v52 = vpop.f32.mrb[49].mxu1 }
 0x1c9   : > { %v1815_v53 = vadd.f32 %v1646_v52, %v1540_v24  ;;  %v1648_v54 = vpop.f32.mrb[50].mxu1 }
 0x1ca   : > { %v1649_v55 = vpop.f32.mrb[51].mxu1 }
 0x1cb   : > { %v1685_v56 = vpop.f32.mrb[52].mxu0 }
 0x1cc   : > { %v1816_v41 = vadd.f32 %v1685_v56, %v1541_v28  ;;  %v1687_v57 = vpop.f32.mrb[53].mxu0 }
 0x1cd   : > { %v1817_v58 = vadd.f32 %v1687_v57, %v1542_v30  ;;  %v1689_v59 = vpop.f32.mrb[54].mxu0 }
 0x1ce   : > { %v1690_v60 = vpop.f32.mrb[55].mxu0 }
 0x1cf   : > { %v1726_v61 = vpop.f32.mrb[52].mxu1 }
 0x1d0   : > { %v1818_v62 = vadd.f32 %v1726_v61, %v1543_v34  ;;  %v1728_v63 = vpop.f32.mrb[53].mxu1 }
 0x1d1   : > { %v1819_v0 = vadd.f32 %v1728_v63, %v1544_v36  ;;  %v1730_v1 = vpop.f32.mrb[54].mxu1 }
 0x1d2   : > { %v1731_v2 = vpop.f32.mrb[55].mxu1 }
 0x1d3   : > { %v1767_v3 = vpop.f32.mrb[56].mxu0 }
 0x1d4   : > { %v1820_v4 = vadd.f32 %v1767_v3, %v1545_v40  ;;  %v1769_v5 = vpop.f32.mrb[57].mxu0 }
 0x1d5   : > { %v1821_v7 = vadd.f32 %v1769_v5, %v1546_v43  ;;  %v1771_v8 = vpop.f32.mrb[58].mxu0 }
 0x1d6   : > { %v1772_v9 = vpop.f32.mrb[59].mxu0 }
 0x1d7   : > { %v1808_v10 = vpop.f32.mrb[56].mxu1 }
 0x1d8   : > { %v1822_v11 = vadd.f32 %v1808_v10, %v1547_v47  ;;  %v2899_v12 = vpop.f32.mrb[57].mxu1  ;;  %v2652_v10 = vpop.permute.xlu0 %2651 }
 0x1d9   : > { %v1811_v13 = vpop.f32.mrb[58].mxu1 }
 0x1da   : > { %v2900_v14 = vpop.f32.mrb[59].mxu1 }
 0x1db   : > { %v1919_v15 = vpop.f32.mrb[60].mxu0 }
 0x1dc   : > { %v2089_v16 = vadd.f32 %v1919_v15, %v1814_v51  ;;  %v1921_v17 = vpop.f32.mrb[61].mxu0 }
 0x1dd   : > { %v2090_v18 = vadd.f32 %v1921_v17, %v1815_v53  ;;  %v1923_v19 = vpop.f32.mrb[62].mxu0 }
 0x1de   : > { %v1924_v20 = vpop.f32.mrb[63].mxu0 }
 0x1df   : > { %v1960_v21 = vpop.f32.mrb[60].mxu1 }
 0x1e0   : > { %v2091_v22 = vadd.f32 %v1960_v21, %v1816_v41  ;;  %v1962_v23 = vpop.f32.mrb[61].mxu1 }
 0x1e1   : > { %v2092_v24 = vadd.f32 %v1962_v23, %v1817_v58  ;;  %v1964_v25 = vpop.f32.mrb[62].mxu1 }
 0x1e2   : > { %v1965_v26 = vpop.f32.mrb[63].mxu1 }
 0x1e3   : > { %v2001_v27 = vpop.f32.mrb[64].mxu0 }
 0x1e4   : > { %v2093_v28 = vadd.f32 %v2001_v27, %v1818_v62  ;;  %v2003_v29 = vpop.f32.mrb[65].mxu0 }
 0x1e5   : > { %v2094_v30 = vadd.f32 %v2003_v29, %v1819_v0  ;;  %v2005_v31 = vpop.f32.mrb[66].mxu0 }
 0x1e6   : > { %v2006_v32 = vpop.f32.mrb[67].mxu0 }
 0x1e7   : > { %v2042_v33 = vpop.f32.mrb[64].mxu1 }
 0x1e8   : > { %v2095_v34 = vadd.f32 %v2042_v33, %v1820_v4  ;;  %v2044_v35 = vpop.f32.mrb[65].mxu1 }
 0x1e9   : > { %v2096_v36 = vadd.f32 %v2044_v35, %v1821_v7  ;;  %v2046_v37 = vpop.f32.mrb[66].mxu1 }
 0x1ea   : > { %v2047_v38 = vpop.f32.mrb[67].mxu1 }
 0x1eb   : > { %v2083_v39 = vpop.f32.mrb[68].mxu0 }
 0x1ec   : > { %v2097_v40 = vadd.f32 %v2083_v39, %v1822_v11  ;;  %v2905_v42 = vpop.f32.mrb[69].mxu0 }
 0x1ed   : > { %v2086_v43 = vpop.f32.mrb[70].mxu0 }
 0x1ee   : > { %v2906_v44 = vpop.f32.mrb[71].mxu0 }
 0x1ef   : > { %v2194_v45 = vpop.f32.mrb[68].mxu1 }
 0x1f0   : > { %v2364_v46 = vadd.f32 %v2194_v45, %v2089_v16  ;;  %v2196_v47 = vpop.f32.mrb[69].mxu1 }
 0x1f1   : > { %v2365_v48 = vadd.f32 %v2196_v47, %v2090_v18  ;;  %v2198_v49 = vpop.f32.mrb[70].mxu1 }
 0x1f2   : > { %v2199_v6 = vpop.f32.mrb[71].mxu1 }
 0x1f3   : > { %v2235_v50 = vpop.f32.mrb[72].mxu0 }
 0x1f4   : > { %v2366_v51 = vadd.f32 %v2235_v50, %v2091_v22  ;;  %v2237_v52 = vpop.f32.mrb[73].mxu0 }
 0x1f5   : > { %v2367_v53 = vadd.f32 %v2237_v52, %v2092_v24  ;;  %v2239_v54 = vpop.f32.mrb[74].mxu0 }
 0x1f6   : > { %v2240_v55 = vpop.f32.mrb[75].mxu0 }
 0x1f7   : > { %v2276_v56 = vpop.f32.mrb[72].mxu1 }
 0x1f8   : > { %v2368_v41 = vadd.f32 %v2276_v56, %v2093_v28  ;;  %v2278_v57 = vpop.f32.mrb[73].mxu1 }
 0x1f9   : > { %v2369_v58 = vadd.f32 %v2278_v57, %v2094_v30  ;;  %v2280_v59 = vpop.f32.mrb[74].mxu1 }
 0x1fa   : > { %v2281_v60 = vpop.f32.mrb[75].mxu1 }
 0x1fb   : > { %v2317_v61 = vpop.f32.mrb[76].mxu0 }
 0x1fc   : > { %v2370_v62 = vadd.f32 %v2317_v61, %v2095_v34  ;;  %v2319_v63 = vpop.f32.mrb[77].mxu0 }
 0x1fd   : > { %v2371_v0 = vadd.f32 %v2319_v63, %v2096_v36  ;;  %v2321_v1 = vpop.f32.mrb[78].mxu0 }
 0x1fe   : > { %v2322_v2 = vpop.f32.mrb[79].mxu0 }
 0x1ff   : > { %v2358_v3 = vpop.f32.mrb[76].mxu1 }
 0x200   : > { %v2372_v4 = vadd.f32 %v2358_v3, %v2097_v40  ;;  %v2911_v5 = vpop.f32.mrb[77].mxu1 }
 0x201   : > { %v2361_v7 = vpop.f32.mrb[78].mxu1 }
 0x202   : > { %v2912_v8 = vpop.f32.mrb[79].mxu1 }
 0x203   : > { %v2469_v9 = vpop.f32.mrb[80].mxu0 }
 0x204   : > { %v2639_v11 = vadd.f32 %v2469_v9, %v2364_v46  ;;  %v2471_v12 = vpop.f32.mrb[81].mxu0 }
 0x205   : > { %v2640_v13 = vadd.f32 %v2471_v12, %v2365_v48  ;;  %v2473_v14 = vpop.f32.mrb[82].mxu0 }
 0x206   : > { %v2654_v15 = vadd.f32 %v2652_v10, %v2639_v11  ;;  %v2474_v16 = vpop.f32.mrb[83].mxu0 }
 0x207   : > { %v2655_v17 = vadd.f32 %v2652_v10, %v2640_v13  ;;  %v2510_v18 = vpop.f32.mrb[80].mxu1 }
 0x208   : > { %2944 = vtanh.f32 %v2654_v15  ;;  %v2641_v19 = vadd.f32 %v2510_v18, %v2366_v51  ;;  %v2512_v20 = vpop.f32.mrb[81].mxu1 }
 0x209   : > { %2946 = vtanh.f32 %v2655_v17  ;;  %v2642_v21 = vadd.f32 %v2512_v20, %v2367_v53  ;;  %v2514_v22 = vpop.f32.mrb[82].mxu1 }
 0x20a   : > { %v2656_v23 = vadd.f32 %v2652_v10, %v2641_v19  ;;  %v2515_v24 = vpop.f32.mrb[83].mxu1 }
 0x20b   : > { %v2657_v25 = vadd.f32 %v2652_v10, %v2642_v21  ;;  %v2551_v26 = vpop.f32.mrb[84].mxu0 }
 0x20c   : > { %2948 = vtanh.f32 %v2656_v23  ;;  %v2643_v27 = vadd.f32 %v2551_v26, %v2368_v41  ;;  %v2553_v28 = vpop.f32.mrb[85].mxu0 }
 0x20d   : > { %2950 = vtanh.f32 %v2657_v25  ;;  %v2644_v29 = vadd.f32 %v2553_v28, %v2369_v58  ;;  %v2555_v30 = vpop.f32.mrb[86].mxu0 }
 0x20e   : > { %v2658_v31 = vadd.f32 %v2652_v10, %v2643_v27  ;;  %v2556_v32 = vpop.f32.mrb[87].mxu0 }
 0x20f   : > { %v2659_v33 = vadd.f32 %v2652_v10, %v2644_v29  ;;  %v2592_v34 = vpop.f32.mrb[84].mxu1 }
 0x210   : > { %2952 = vtanh.f32 %v2658_v31  ;;  %v2645_v35 = vadd.f32 %v2592_v34, %v2370_v62  ;;  %v2594_v36 = vpop.f32.mrb[85].mxu1 }
 0x211   : > { %2954 = vtanh.f32 %v2659_v33  ;;  %v2646_v37 = vadd.f32 %v2594_v36, %v2371_v0  ;;  %v2596_v38 = vpop.f32.mrb[86].mxu1 }
 0x212   : > { %v2945_v39 = vpop.eup %2944  ;;  %v2660_v40 = vadd.f32 %v2652_v10, %v2645_v35  ;;  %v2597_v42 = vpop.f32.mrb[87].mxu1 }
 0x213   : > { %v2947_v43 = vpop.eup %2946  ;;  %v2661_v44 = vadd.f32 %v2652_v10, %v2646_v37  ;;  %v2633_v45 = vpop.f32.mrb[88].mxu0 }
 0x214   : > { %v2680_v46 = vcombine.low %v2945_v39, %v2947_v43  ;;  %2956 = vtanh.f32 %v2660_v40  ;;  %v2647_v47 = vadd.f32 %v2633_v45, %v2372_v4  ;;  %v2917_v48 = vpop.f32.mrb[89].mxu0 }
 0x215   : > { %2958 = vtanh.f32 %v2661_v44  ;;  %v2636_v49 = vpop.f32.mrb[90].mxu0 }
 0x216   : > { %v2949_v6 = vpop.eup %2948  ;;  %2688 = vst [vmem:[%s170_s24] sm:$0x77] %v2680_v46  ;;  %v2662_v50 = vadd.f32 %v2652_v10, %v2647_v47  ;;  %v2918_v51 = vpop.f32.mrb[91].mxu0 }
 0x217   : > { %v2951_v52 = vpop.eup %2950 }
 0x218   : > { %v2681_v53 = vcombine.low %v2949_v6, %v2951_v52  ;;  %2960 = vtanh.f32 %v2662_v50 }
 0x21a   : > { %v2953_v54 = vpop.eup %2952  ;;  %2689 = vst [vmem:[%s170_s24 + $0x8] sm:$0x77] %v2681_v53 }
 0x21b   : > { %v2955_v55 = vpop.eup %2954 }
 0x21c   : > { %v2682_v56 = vcombine.low %v2953_v54, %v2955_v55 }
 0x21e   : > { %v2957_v41 = vpop.eup %2956  ;;  %2690 = vst [vmem:[%s170_s24 + $0x10] sm:$0x77] %v2682_v56 }
 0x21f   : > { %v2959_v57 = vpop.eup %2958 }
 0x220   : > { %v2683_v58 = vcombine.low %v2957_v41, %v2959_v57 }
 0x222   : > { %v2961_v59 = vpop.eup %2960  ;;  %2691 = vst [vmem:[%s170_s24 + $0x18] sm:$0x77] %v2683_v58 }
 0x223   : > { %2692 = vst [vmem:[%s170_s24 + $0x20] sm:$0x7] %v2961_v59 }
 0x224 PF: > { %s13_s12 = sadd.s32 1, %s2968_s12  }
 0x225   : > { %p10_p4 = scmp.ge.s32.totalorder %s13_s12, 4  }
 0x227   :  { %12 = sbr.rel (!%p10_p4) target bundleno = 1 (0x1), region = 70 }

</bundles_post_ra>
